<compile_context>
chip_gen: v6e
topology: v6e:2x2x1
jax: 0.10.0
libtpu: 0.0.40
codegen_flags: <defaults>
</compile_context>

<pallas_src>
import functools

import jax
import jax.numpy as jnp
from jax.experimental import pallas as pl
from jax.experimental.pallas import tpu as pltpu


# ----------------------------------------------------------------------------
# Sizes (scaled-down analogue of the 1280/1280/320 + mlp2 config; in_size 5760
# -> here 2 * (32+32+16) = 160).
# ----------------------------------------------------------------------------
VOCAB = 25
EMB_DIM = 16
HID_SIZES = (32, 32, 16)
SUM_H = sum(HID_SIZES)
MLP_HID = 32
N_CLASSES = 8
F_PAD = 128          # per-direction encoder feature dim padded to 128 lanes
C_PAD = 128          # lane-dense padded logit dim
T_CHUNK = 32         # time steps per grid iteration (amortizes per-step overhead)


# ----------------------------------------------------------------------------
# Fused encoder kernel: 3 stacked LSTM layers, both directions folded into the
# sublane (batch) dim, one chunk of TC time steps per grid point.
#
# Row convention inside the kernel:  rows [0:Bh]  = forward direction
#                                    rows [Bh:2Bh] = reverse direction
# 2-D activation slabs use row = step*Bh + b (fwd, step order) or
# row = local_time*Bh + b (rev, aligned time order).
# ----------------------------------------------------------------------------
def _make_encoder_kernel(TC, Bh, hid_sizes, f_pad):
    H1, H2, H3 = hid_sizes
    sum_h = H1 + H2 + H3
    pad_w = f_pad - sum_h

    def kernel(xf_ref, xr_ref,
               w1_ref, u1_ref, b1_ref,
               w2_ref, u2_ref, b2_ref,
               w3_ref, u3_ref, b3_ref,
               of_ref, or_ref,
               h1, c1, h2, c2, h3, c3):
        tc = pl.program_id(0)

        @pl.when(tc == 0)
        def _():
            for st in (h1, c1, h2, c2, h3, c3):
                st[...] = jnp.zeros_like(st)

        def run_layer(f_in, r_in, w_ref, u_ref, b_ref, h_st, c_st):
            """f_in: (TC*Bh, D) fwd inputs, row = step*Bh + b.
               r_in: (TC*Bh, D) rev inputs in *time* order (row j holds the
                     input of reverse recurrence step TC-1-j).
               Returns (F_l, R_l) with the same row conventions."""
            H = u_ref.shape[1]
            wf, wr = w_ref[0], w_ref[1]
            uf, ur = u_ref[0], u_ref[1]
            bf, br = b_ref[0], b_ref[1]
            # Hoisted, time-independent input projection: one (TC*Bh, D)x(D,4H)
            # matmul per direction per chunk instead of TC tiny ones.
            # (Production sizes: cast operands to bf16, keep f32 accumulation.)
            pf = jnp.dot(f_in, wf, preferred_element_type=jnp.float32) + bf
            pr = jnp.dot(r_in, wr, preferred_element_type=jnp.float32) + br
            h = h_st[...]
            c = c_st[...]
            hs = []
            for s in range(TC):                               # unrolled, static slices
                gf = pf[s * Bh:(s + 1) * Bh] + jnp.dot(
                    h[:Bh], uf, preferred_element_type=jnp.float32)
                gr = pr[(TC - 1 - s) * Bh:(TC - s) * Bh] + jnp.dot(
                    h[Bh:], ur, preferred_element_type=jnp.float32)
                g = jnp.concatenate([gf, gr], axis=0)         # (2*Bh, 4H), both dirs
                # gate column layout [i | f | o | g]: one wide sigmoid + one tanh
                sig = jax.nn.sigmoid(g[:, :3 * H])
                g_g = jnp.tanh(g[:, 3 * H:])
                c = sig[:, H:2 * H] * c + sig[:, :H] * g_g
                h = sig[:, 2 * H:3 * H] * jnp.tanh(c)
                hs.append(h)
            h_st[...] = h
            c_st[...] = c
            # These slabs serve both as the next layer's inputs and as the
            # output feature blocks (no io_ref VMEM roundtrip).
            F_l = jnp.concatenate([hs[s][:Bh] for s in range(TC)], axis=0)
            R_l = jnp.concatenate([hs[TC - 1 - j][Bh:] for j in range(TC)], axis=0)
            return F_l, R_l

        F1, R1 = run_layer(xf_ref[...], xr_ref[...], w1_ref, u1_ref, b1_ref, h1, c1)
        F2, R2 = run_layer(F1, R1, w2_ref, u2_ref, b2_ref, h2, c2)
        F3, R3 = run_layer(F2, R2, w3_ref, u3_ref, b3_ref, h3, c3)

        # One lane-dense (TC*Bh, 128) store per direction per chunk.
        zpad = jnp.zeros((TC * Bh, pad_w), jnp.float32)
        of_ref[...] = jnp.concatenate([F1, F2, F3, zpad], axis=-1)
        or_ref[...] = jnp.concatenate([R1, R2, R3, zpad], axis=-1)

    return kernel


def bidir_stacked_lstm(x_rows, layers, *, T, Bh):
    """x_rows: (T*Bh, E), row = t*Bh + b (batch zero-padded to Bh per direction).
    layers: [(w_ih (2,D,4H), w_hh (2,H,4H), bias (2,1,4H)) x 3] (axis 0 = fwd/rev).
    Returns (enc_fwd, enc_rev): each (T*Bh, F_PAD) f32, time-aligned, features
    laid out as [layer1 | layer2 | layer3 | zero pad]."""
    E = x_rows.shape[1]
    (w1, u1, b1), (w2, u2, b2), (w3, u3, b3) = layers
    H1, H2, H3 = u1.shape[1], u2.shape[1], u3.shape[1]

    TC = T if T <= T_CHUNK else T_CHUNK
    assert T % TC == 0, "T must be a multiple of the time chunk"
    assert (TC * Bh) % 8 == 0, "chunk rows must be sublane-aligned"
    n_tc = T // TC

    kernel = _make_encoder_kernel(TC, Bh, (H1, H2, H3), F_PAD)
    wmap = lambda tc: (0, 0, 0)
    out_sds = jax.ShapeDtypeStruct((T * Bh, F_PAD), jnp.float32)

    return pl.pallas_call(
        kernel,
        out_shape=(out_sds, out_sds),
        grid_spec=pltpu.PrefetchScalarGridSpec(
            num_scalar_prefetch=0,
            grid=(n_tc,),
            in_specs=[
                # same embedding array passed twice: forward chunk + reversed-block
                # chunk for the reverse direction (no materialized reversed copy)
                pl.BlockSpec((TC * Bh, E), lambda tc: (tc, 0)),
                pl.BlockSpec((TC * Bh, E), lambda tc: (n_tc - 1 - tc, 0)),
                # resident per-direction weights (production: bf16 + Buffered(1)
                # + explicit vmem_limit_bytes)
                pl.BlockSpec((2, E, 4 * H1), wmap),
                pl.BlockSpec((2, H1, 4 * H1), wmap),
                pl.BlockSpec((2, 1, 4 * H1), wmap),
                pl.BlockSpec((2, H1, 4 * H2), wmap),
                pl.BlockSpec((2, H2, 4 * H2), wmap),
                pl.BlockSpec((2, 1, 4 * H2), wmap),
                pl.BlockSpec((2, H2, 4 * H3), wmap),
                pl.BlockSpec((2, H3, 4 * H3), wmap),
                pl.BlockSpec((2, 1, 4 * H3), wmap),
            ],
            out_specs=[
                pl.BlockSpec((TC * Bh, F_PAD), lambda tc: (tc, 0)),
                # reverse direction written back time-aligned (block reversed;
                # step order flipped in-kernel)
                pl.BlockSpec((TC * Bh, F_PAD), lambda tc: (n_tc - 1 - tc, 0)),
            ],
            scratch_shapes=[
                pltpu.VMEM((2 * Bh, H1), jnp.float32), pltpu.VMEM((2 * Bh, H1), jnp.float32),
                pltpu.VMEM((2 * Bh, H2), jnp.float32), pltpu.VMEM((2 * Bh, H2), jnp.float32),
                pltpu.VMEM((2 * Bh, H3), jnp.float32), pltpu.VMEM((2 * Bh, H3), jnp.float32),
            ],
        ),
        compiler_params=pltpu.CompilerParams(
            # single sequential recurrence axis (direction lives in the sublanes)
            dimension_semantics=("arbitrary",),
        ),
    )(x_rows, x_rows, w1, u1, b1, w2, u2, b2, w3, u3, b3)


# ----------------------------------------------------------------------------
# Decoder: 2-layer MLP.  Takes the fwd and rev encoder slabs as two refs and
# sums the split first-layer weight blocks in-kernel (no wrapper concat).
# ----------------------------------------------------------------------------
def _mlp2_kernel(xf_ref, xr_ref, w1f_ref, w1r_ref, b1_ref, w2_ref, b2_ref, o_ref):
    h = (jnp.dot(xf_ref[...], w1f_ref[...], preferred_element_type=jnp.float32)
         + jnp.dot(xr_ref[...], w1r_ref[...], preferred_element_type=jnp.float32)
         + b1_ref[...])
    h = jnp.maximum(h, 0.0)
    o = jnp.dot(h, w2_ref[...], preferred_element_type=jnp.float32) + b2_ref[...]
    o_ref[...] = o.astype(o_ref.dtype)


def mlp2_decoder(xf, xr, w1f, w1r, b1, w2_pad, b2_pad):
    """xf, xr: (N, F_PAD) f32 -> (N, C_PAD) f32 logits (lane-padded; caller slices)."""
    N, F = xf.shape
    hid = w1f.shape[1]
    c_pad = w2_pad.shape[1]

    # Production note: cap NB so NB*F*4B*2dirs*2buf stays under the scoped VMEM
    # limit on v7x (64 MiB physical); raise toward 1024 on v5e/v6e.
    NB = 512
    if N <= NB:
        NB = N
    elif N % NB != 0:
        pad = (-N) % NB
        z = jnp.zeros((pad, F), xf.dtype)
        xf = jnp.concatenate([xf, z], axis=0)
        xr = jnp.concatenate([xr, z], axis=0)
    Np = xf.shape[0]

    out = pl.pallas_call(
        _mlp2_kernel,
        out_shape=jax.ShapeDtypeStruct((Np, c_pad), jnp.float32),
        grid_spec=pltpu.PrefetchScalarGridSpec(
            num_scalar_prefetch=0,
            grid=(Np // NB,),
            in_specs=[
                pl.BlockSpec((NB, F), lambda i: (i, 0)),
                pl.BlockSpec((NB, F), lambda i: (i, 0)),
                pl.BlockSpec((F, hid), lambda i: (0, 0)),
                pl.BlockSpec((F, hid), lambda i: (0, 0)),
                pl.BlockSpec((1, hid), lambda i: (0, 0)),
                pl.BlockSpec((hid, c_pad), lambda i: (0, 0)),
                pl.BlockSpec((1, c_pad), lambda i: (0, 0)),
            ],
            out_specs=pl.BlockSpec((NB, c_pad), lambda i: (i, 0)),
        ),
        compiler_params=pltpu.CompilerParams(dimension_semantics=("parallel",)),
    )(xf, xr, w1f, w1r, b1.reshape(1, -1), w2_pad, b2_pad.reshape(1, -1))
    return out[:N]


# ----------------------------------------------------------------------------
# Parameters (deterministic synthetic init — no checkpoint loading).
# Gate column layout of W_ih / W_hh / bias is [i | f | o | g]; a real PyTorch
# checkpoint ([i|f|g|o]) would need its columns permuted accordingly.
# ----------------------------------------------------------------------------
def init_params(key):
    params = {}
    ks = iter(jax.random.split(key, 32))

    params["emb"] = 0.1 * jax.random.normal(next(ks), (VOCAB, EMB_DIM), jnp.float32)

    layers = []
    d_in = EMB_DIM
    for H in HID_SIZES:
        w_ih = 0.1 * jax.random.normal(next(ks), (2, d_in, 4 * H), jnp.float32)   # fwd/rev
        w_hh = 0.1 * jax.random.normal(next(ks), (2, H, 4 * H), jnp.float32)
        bias = 0.01 * jax.random.normal(next(ks), (2, 1, 4 * H), jnp.float32)
        layers.append((w_ih, w_hh, bias))
        d_in = H
    params["lstm"] = layers

    # Decoder first layer: logical (2*SUM_H, MLP_HID), stored split per direction
    # with rows zero-padded to F_PAD so the encoder's lane padding contributes 0.
    w1 = 0.1 * jax.random.normal(next(ks), (2 * SUM_H, MLP_HID), jnp.float32)
    params["dec_w1f"] = jnp.zeros((F_PAD, MLP_HID), jnp.float32).at[:SUM_H].set(w1[:SUM_H])
    params["dec_w1r"] = jnp.zeros((F_PAD, MLP_HID), jnp.float32).at[:SUM_H].set(w1[SUM_H:])
    params["dec_b1"] = 0.01 * jax.random.normal(next(ks), (MLP_HID,), jnp.float32)

    w2 = 0.1 * jax.random.normal(next(ks), (MLP_HID, N_CLASSES), jnp.float32)
    b2 = 0.01 * jax.random.normal(next(ks), (N_CLASSES,), jnp.float32)
    params["dec_w2"] = jnp.zeros((MLP_HID, C_PAD), jnp.float32).at[:, :N_CLASSES].set(w2)
    params["dec_b2"] = jnp.zeros((C_PAD,), jnp.float32).at[:N_CLASSES].set(b2)
    return params


# ----------------------------------------------------------------------------
# Full forward pass (Model.forward equivalent).
# ----------------------------------------------------------------------------
def model_forward(params, inp, seq_len):
    """inp: (T, B) integer tokens; seq_len: (B,) int32 lengths."""
    del seq_len  # TODO(synk): per-sequence seq_len masking / length-aware reversal not implemented.
    inp = inp.astype(jnp.int32)                      # inp.long()
    emb = jnp.take(params["emb"], inp, axis=0)       # (T, B, E) embedding gather (XLA glue)
    T, B, E = emb.shape

    Bh = ((B + 3) // 4) * 4                          # per-direction pad: 2*Bh multiple of 8
    x_rows = jnp.zeros((T, Bh, E), jnp.float32).at[:, :B].set(emb).reshape(T * Bh, E)

    # (T*Bh, F_PAD) per direction; reverse features already flipped back to
    # natural time order in-kernel.
    # TODO(synk): assumes the reference encoder returns all_hid_rev re-reversed
    # (position-aligned); if it returns recurrence order, drop the in-kernel flip.
    enc_f, enc_r = bidir_stacked_lstm(x_rows, params["lstm"], T=T, Bh=Bh)

    logits = mlp2_decoder(enc_f, enc_r,
                          params["dec_w1f"], params["dec_w1r"], params["dec_b1"],
                          params["dec_w2"], params["dec_b2"])
    logits = logits.reshape(T, Bh, C_PAD)[:, :B, :N_CLASSES]   # (T, B, C)
    return jnp.transpose(logits, (1, 0, 2))                    # (B, T, C)


if __name__ == "__main__":
    key = jax.random.PRNGKey(0)
    pkey, dkey = jax.random.split(key)

    params = init_params(pkey)

    T, B = 8, 2
    inp = jax.random.randint(dkey, (T, B), 0, VOCAB, dtype=jnp.int32)
    seq_len = jnp.array([T, T - 2], dtype=jnp.int32)

    fwd = jax.jit(functools.partial(model_forward, params))
    out = jax.block_until_ready(fwd(inp, seq_len))

    assert out.shape == (B, T, N_CLASSES), out.shape
    assert bool(jnp.all(jnp.isfinite(out)))
    print("KERNEL_OK")
</pallas_src>

<mosaic_0001>
module attributes {stable_mosaic.version = 11 : i64} {
  func.func @_mlp2_kernel(%arg0: i32, %arg1: memref<32x128xf32, #tpu.memory_space<vmem>>, %arg2: memref<32x128xf32, #tpu.memory_space<vmem>>, %arg3: memref<128x32xf32, #tpu.memory_space<vmem>>, %arg4: memref<128x32xf32, #tpu.memory_space<vmem>>, %arg5: memref<1x32xf32, #tpu.memory_space<vmem>>, %arg6: memref<32x128xf32, #tpu.memory_space<vmem>>, %arg7: memref<1x128xf32, #tpu.memory_space<vmem>>, %arg8: memref<32x128xf32, #tpu.memory_space<vmem>>) attributes {dimension_semantics = [#tpu.dimension_semantics<parallel>], iteration_bounds = array<i64: 1>, scalar_prefetch = 0 : i64, scratch_operands = 0 : i64, tpu.core_type = #tpu.core_type<tc>, window_params = [{transform_indices = @transform_0, window_bounds = array<i64: 32, 128>}, {transform_indices = @transform_1, window_bounds = array<i64: 32, 128>}, {pipeline_mode = #tpu.pipeline_mode<synchronous>, transform_indices = @transform_2, window_bounds = array<i64: 128, 32>}, {pipeline_mode = #tpu.pipeline_mode<synchronous>, transform_indices = @transform_3, window_bounds = array<i64: 128, 32>}, {pipeline_mode = #tpu.pipeline_mode<synchronous>, transform_indices = @transform_4, window_bounds = array<i64: 1, 32>}, {pipeline_mode = #tpu.pipeline_mode<synchronous>, transform_indices = @transform_5, window_bounds = array<i64: 32, 128>}, {pipeline_mode = #tpu.pipeline_mode<synchronous>, transform_indices = @transform_6, window_bounds = array<i64: 1, 128>}, {transform_indices = @transform_7, window_bounds = array<i64: 32, 128>}]} {
    %c0 = arith.constant 0 : index
    %c0_0 = arith.constant 0 : index
    %0 = vector.load %arg1[%c0, %c0_0] : memref<32x128xf32, #tpu.memory_space<vmem>>, vector<32x128xf32>
    %c0_1 = arith.constant 0 : index
    %c0_2 = arith.constant 0 : index
    %1 = vector.load %arg3[%c0_1, %c0_2] : memref<128x32xf32, #tpu.memory_space<vmem>>, vector<128x32xf32>
    %cst = arith.constant dense<0.000000e+00> : vector<32x32xf32>
    %2 = tpu.matmul %0, %1, %cst {dimension_numbers = #tpu.dot_dimension_numbers<[1], [0], [0], [1], [0, 0, 1, 1], [], []>} : vector<32x128xf32>, vector<128x32xf32>, vector<32x32xf32> -> vector<32x32xf32>
    %c0_3 = arith.constant 0 : index
    %c0_4 = arith.constant 0 : index
    %3 = vector.load %arg2[%c0_3, %c0_4] : memref<32x128xf32, #tpu.memory_space<vmem>>, vector<32x128xf32>
    %c0_5 = arith.constant 0 : index
    %c0_6 = arith.constant 0 : index
    %4 = vector.load %arg4[%c0_5, %c0_6] : memref<128x32xf32, #tpu.memory_space<vmem>>, vector<128x32xf32>
    %cst_7 = arith.constant dense<0.000000e+00> : vector<32x32xf32>
    %5 = tpu.matmul %3, %4, %cst_7 {dimension_numbers = #tpu.dot_dimension_numbers<[1], [0], [0], [1], [0, 0, 1, 1], [], []>} : vector<32x128xf32>, vector<128x32xf32>, vector<32x32xf32> -> vector<32x32xf32>
    %6 = arith.addf %2, %5 : vector<32x32xf32>
    %c0_8 = arith.constant 0 : index
    %c0_9 = arith.constant 0 : index
    %7 = vector.load %arg5[%c0_8, %c0_9] : memref<1x32xf32, #tpu.memory_space<vmem>>, vector<1x32xf32>
    %8 = vector.broadcast %7 : vector<1x32xf32> to vector<32x32xf32>
    %9 = arith.addf %6, %8 : vector<32x32xf32>
    %cst_10 = arith.constant 0.000000e+00 : f32
    %10 = vector.broadcast %cst_10 : f32 to vector<32x32xf32>
    %11 = arith.maximumf %9, %10 : vector<32x32xf32>
    %c0_11 = arith.constant 0 : index
    %c0_12 = arith.constant 0 : index
    %12 = vector.load %arg6[%c0_11, %c0_12] : memref<32x128xf32, #tpu.memory_space<vmem>>, vector<32x128xf32>
    %cst_13 = arith.constant dense<0.000000e+00> : vector<32x128xf32>
    %13 = tpu.matmul %11, %12, %cst_13 {dimension_numbers = #tpu.dot_dimension_numbers<[1], [0], [0], [1], [0, 0, 1, 1], [], []>} : vector<32x32xf32>, vector<32x128xf32>, vector<32x128xf32> -> vector<32x128xf32>
    %c0_14 = arith.constant 0 : index
    %c0_15 = arith.constant 0 : index
    %14 = vector.load %arg7[%c0_14, %c0_15] : memref<1x128xf32, #tpu.memory_space<vmem>>, vector<1x128xf32>
    %15 = vector.broadcast %14 : vector<1x128xf32> to vector<32x128xf32>
    %16 = arith.addf %13, %15 : vector<32x128xf32>
    %c0_16 = arith.constant 0 : index
    %c0_17 = arith.constant 0 : index
    %17 = vector.load %arg8[%c0_16, %c0_17] : memref<32x128xf32, #tpu.memory_space<vmem>>, vector<32x128xf32>
    tpu.vector_store %arg8[%c0_16, %c0_17], %16 {strides = array<i32>} : memref<32x128xf32, #tpu.memory_space<vmem>>, vector<32x128xf32>,
    return
  }
  func.func @transform_0(%arg0: i32) -> (i32, i32) {
    %c0_i32 = arith.constant 0 : i32
    %c0_i32_0 = arith.constant 0 : i32
    return %arg0, %c0_i32 : i32, i32
  }
  func.func @transform_1(%arg0: i32) -> (i32, i32) {
    %c0_i32 = arith.constant 0 : i32
    %c0_i32_0 = arith.constant 0 : i32
    return %arg0, %c0_i32 : i32, i32
  }
  func.func @transform_2(%arg0: i32) -> (i32, i32) {
    %c0_i32 = arith.constant 0 : i32
    %c0_i32_0 = arith.constant 0 : i32
    %c0_i32_1 = arith.constant 0 : i32
    return %c0_i32, %c0_i32_0 : i32, i32
  }
  func.func @transform_3(%arg0: i32) -> (i32, i32) {
    %c0_i32 = arith.constant 0 : i32
    %c0_i32_0 = arith.constant 0 : i32
    %c0_i32_1 = arith.constant 0 : i32
    return %c0_i32, %c0_i32_0 : i32, i32
  }
  func.func @transform_4(%arg0: i32) -> (i32, i32) {
    %c0_i32 = arith.constant 0 : i32
    %c0_i32_0 = arith.constant 0 : i32
    %c0_i32_1 = arith.constant 0 : i32
    return %c0_i32, %c0_i32_0 : i32, i32
  }
  func.func @transform_5(%arg0: i32) -> (i32, i32) {
    %c0_i32 = arith.constant 0 : i32
    %c0_i32_0 = arith.constant 0 : i32
    %c0_i32_1 = arith.constant 0 : i32
    return %c0_i32, %c0_i32_0 : i32, i32
  }
  func.func @transform_6(%arg0: i32) -> (i32, i32) {
    %c0_i32 = arith.constant 0 : i32
    %c0_i32_0 = arith.constant 0 : i32
    %c0_i32_1 = arith.constant 0 : i32
    return %c0_i32, %c0_i32_0 : i32, i32
  }
  func.func @transform_7(%arg0: i32) -> (i32, i32) {
    %c0_i32 = arith.constant 0 : i32
    %c0_i32_0 = arith.constant 0 : i32
    return %arg0, %c0_i32 : i32, i32
  }
}

module attributes {stable_mosaic.version = 11 : i64} {
  func.func @kernel(%arg0: i32, %arg1: memref<32x16xf32, #tpu.memory_space<vmem>>, %arg2: memref<32x16xf32, #tpu.memory_space<vmem>>, %arg3: memref<2x16x128xf32, #tpu.memory_space<vmem>>, %arg4: memref<2x32x128xf32, #tpu.memory_space<vmem>>, %arg5: memref<2x1x128xf32, #tpu.memory_space<vmem>>, %arg6: memref<2x32x128xf32, #tpu.memory_space<vmem>>, %arg7: memref<2x32x128xf32, #tpu.memory_space<vmem>>, %arg8: memref<2x1x128xf32, #tpu.memory_space<vmem>>, %arg9: memref<2x32x64xf32, #tpu.memory_space<vmem>>, %arg10: memref<2x16x64xf32, #tpu.memory_space<vmem>>, %arg11: memref<2x1x64xf32, #tpu.memory_space<vmem>>, %arg12: memref<32x128xf32, #tpu.memory_space<vmem>>, %arg13: memref<32x128xf32, #tpu.memory_space<vmem>>, %arg14: memref<8x32xf32, #tpu.memory_space<vmem>>, %arg15: memref<8x32xf32, #tpu.memory_space<vmem>>, %arg16: memref<8x32xf32, #tpu.memory_space<vmem>>, %arg17: memref<8x32xf32, #tpu.memory_space<vmem>>, %arg18: memref<8x16xf32, #tpu.memory_space<vmem>>, %arg19: memref<8x16xf32, #tpu.memory_space<vmem>>) attributes {dimension_semantics = [#tpu.dimension_semantics<arbitrary>], iteration_bounds = array<i64: 1>, scalar_prefetch = 0 : i64, scratch_operands = 6 : i64, tpu.core_type = #tpu.core_type<tc>, window_params = [{transform_indices = @transform_0, window_bounds = array<i64: 32, 16>}, {transform_indices = @transform_1, window_bounds = array<i64: 32, 16>}, {pipeline_mode = #tpu.pipeline_mode<synchronous>, transform_indices = @transform_2, window_bounds = array<i64: 2, 16, 128>}, {pipeline_mode = #tpu.pipeline_mode<synchronous>, transform_indices = @transform_3, window_bounds = array<i64: 2, 32, 128>}, {pipeline_mode = #tpu.pipeline_mode<synchronous>, transform_indices = @transform_4, window_bounds = array<i64: 2, 1, 128>}, {pipeline_mode = #tpu.pipeline_mode<synchronous>, transform_indices = @transform_5, window_bounds = array<i64: 2, 32, 128>}, {pipeline_mode = #tpu.pipeline_mode<synchronous>, transform_indices = @transform_6, window_bounds = array<i64: 2, 32, 128>}, {pipeline_mode = #tpu.pipeline_mode<synchronous>, transform_indices = @transform_7, window_bounds = array<i64: 2, 1, 128>}, {pipeline_mode = #tpu.pipeline_mode<synchronous>, transform_indices = @transform_8, window_bounds = array<i64: 2, 32, 64>}, {pipeline_mode = #tpu.pipeline_mode<synchronous>, transform_indices = @transform_9, window_bounds = array<i64: 2, 16, 64>}, {pipeline_mode = #tpu.pipeline_mode<synchronous>, transform_indices = @transform_10, window_bounds = array<i64: 2, 1, 64>}, {transform_indices = @transform_11, window_bounds = array<i64: 32, 128>}, {transform_indices = @transform_12, window_bounds = array<i64: 32, 128>}]} {
    %c0_i32 = arith.constant 0 : i32
    %0 = arith.cmpi eq, %arg0, %c0_i32 : i32
    %1 = arith.extui %0 : i1 to i32
    %c0_i32_0 = arith.constant 0 : i32
    %2 = arith.cmpi ne, %1, %c0_i32_0 : i32
    scf.if %2 {
      %cst_163 = arith.constant 0.000000e+00 : f32
      %730 = vector.broadcast %cst_163 : f32 to vector<8x32xf32>
      %c0_164 = arith.constant 0 : index
      %c0_165 = arith.constant 0 : index
      %731 = vector.load %arg14[%c0_164, %c0_165] : memref<8x32xf32, #tpu.memory_space<vmem>>, vector<8x32xf32>
      tpu.vector_store %arg14[%c0_164, %c0_165], %730 {strides = array<i32>} : memref<8x32xf32, #tpu.memory_space<vmem>>, vector<8x32xf32>,
      %cst_166 = arith.constant 0.000000e+00 : f32
      %732 = vector.broadcast %cst_166 : f32 to vector<8x32xf32>
      %c0_167 = arith.constant 0 : index
      %c0_168 = arith.constant 0 : index
      %733 = vector.load %arg15[%c0_167, %c0_168] : memref<8x32xf32, #tpu.memory_space<vmem>>, vector<8x32xf32>
      tpu.vector_store %arg15[%c0_167, %c0_168], %732 {strides = array<i32>} : memref<8x32xf32, #tpu.memory_space<vmem>>, vector<8x32xf32>,
      %cst_169 = arith.constant 0.000000e+00 : f32
      %734 = vector.broadcast %cst_169 : f32 to vector<8x32xf32>
      %c0_170 = arith.constant 0 : index
      %c0_171 = arith.constant 0 : index
      %735 = vector.load %arg16[%c0_170, %c0_171] : memref<8x32xf32, #tpu.memory_space<vmem>>, vector<8x32xf32>
      tpu.vector_store %arg16[%c0_170, %c0_171], %734 {strides = array<i32>} : memref<8x32xf32, #tpu.memory_space<vmem>>, vector<8x32xf32>,
      %cst_172 = arith.constant 0.000000e+00 : f32
      %736 = vector.broadcast %cst_172 : f32 to vector<8x32xf32>
      %c0_173 = arith.constant 0 : index
      %c0_174 = arith.constant 0 : index
      %737 = vector.load %arg17[%c0_173, %c0_174] : memref<8x32xf32, #tpu.memory_space<vmem>>, vector<8x32xf32>
      tpu.vector_store %arg17[%c0_173, %c0_174], %736 {strides = array<i32>} : memref<8x32xf32, #tpu.memory_space<vmem>>, vector<8x32xf32>,
      %cst_175 = arith.constant 0.000000e+00 : f32
      %738 = vector.broadcast %cst_175 : f32 to vector<8x16xf32>
      %c0_176 = arith.constant 0 : index
      %c0_177 = arith.constant 0 : index
      %739 = vector.load %arg18[%c0_176, %c0_177] : memref<8x16xf32, #tpu.memory_space<vmem>>, vector<8x16xf32>
      tpu.vector_store %arg18[%c0_176, %c0_177], %738 {strides = array<i32>} : memref<8x16xf32, #tpu.memory_space<vmem>>, vector<8x16xf32>,
      %cst_178 = arith.constant 0.000000e+00 : f32
      %740 = vector.broadcast %cst_178 : f32 to vector<8x16xf32>
      %c0_179 = arith.constant 0 : index
      %c0_180 = arith.constant 0 : index
      %741 = vector.load %arg19[%c0_179, %c0_180] : memref<8x16xf32, #tpu.memory_space<vmem>>, vector<8x16xf32>
      tpu.vector_store %arg19[%c0_179, %c0_180], %740 {strides = array<i32>} : memref<8x16xf32, #tpu.memory_space<vmem>>, vector<8x16xf32>,
    } else {
    }
    %c0 = arith.constant 0 : index
    %c0_1 = arith.constant 0 : index
    %3 = vector.load %arg1[%c0, %c0_1] : memref<32x16xf32, #tpu.memory_space<vmem>>, vector<32x16xf32>
    %c0_2 = arith.constant 0 : index
    %c0_3 = arith.constant 0 : index
    %4 = vector.load %arg2[%c0_2, %c0_3] : memref<32x16xf32, #tpu.memory_space<vmem>>, vector<32x16xf32>
    %c0_4 = arith.constant 0 : index
    %c0_5 = arith.constant 0 : index
    %c0_6 = arith.constant 0 : index
    %5 = vector.load %arg3[%c0_4, %c0_5, %c0_6] : memref<2x16x128xf32, #tpu.memory_space<vmem>>, vector<1x16x128xf32>
    %6 = vector.shape_cast %5 : vector<1x16x128xf32> to vector<16x128xf32>
    %c1 = arith.constant 1 : index
    %c0_7 = arith.constant 0 : index
    %c0_8 = arith.constant 0 : index
    %7 = vector.load %arg3[%c1, %c0_7, %c0_8] : memref<2x16x128xf32, #tpu.memory_space<vmem>>, vector<1x16x128xf32>
    %8 = vector.shape_cast %7 : vector<1x16x128xf32> to vector<16x128xf32>
    %c0_9 = arith.constant 0 : index
    %c0_10 = arith.constant 0 : index
    %c0_11 = arith.constant 0 : index
    %9 = vector.load %arg4[%c0_9, %c0_10, %c0_11] : memref<2x32x128xf32, #tpu.memory_space<vmem>>, vector<1x32x128xf32>
    %10 = vector.shape_cast %9 : vector<1x32x128xf32> to vector<32x128xf32>
    %c1_12 = arith.constant 1 : index
    %c0_13 = arith.constant 0 : index
    %c0_14 = arith.constant 0 : index
    %11 = vector.load %arg4[%c1_12, %c0_13, %c0_14] : memref<2x32x128xf32, #tpu.memory_space<vmem>>, vector<1x32x128xf32>
    %12 = vector.shape_cast %11 : vector<1x32x128xf32> to vector<32x128xf32>
    %c0_15 = arith.constant 0 : index
    %c0_16 = arith.constant 0 : index
    %c0_17 = arith.constant 0 : index
    %13 = vector.load %arg5[%c0_15, %c0_16, %c0_17] : memref<2x1x128xf32, #tpu.memory_space<vmem>>, vector<1x1x128xf32>
    %14 = vector.shape_cast %13 : vector<1x1x128xf32> to vector<1x128xf32>
    %c1_18 = arith.constant 1 : index
    %c0_19 = arith.constant 0 : index
    %c0_20 = arith.constant 0 : index
    %15 = vector.load %arg5[%c1_18, %c0_19, %c0_20] : memref<2x1x128xf32, #tpu.memory_space<vmem>>, vector<1x1x128xf32>
    %16 = vector.shape_cast %15 : vector<1x1x128xf32> to vector<1x128xf32>
    %cst = arith.constant dense<0.000000e+00> : vector<32x128xf32>
    %17 = tpu.matmul %3, %6, %cst {dimension_numbers = #tpu.dot_dimension_numbers<[1], [0], [0], [1], [0, 0, 1, 1], [], []>} : vector<32x16xf32>, vector<16x128xf32>, vector<32x128xf32> -> vector<32x128xf32>
    %18 = vector.broadcast %14 : vector<1x128xf32> to vector<32x128xf32>
    %19 = arith.addf %17, %18 : vector<32x128xf32>
    %cst_21 = arith.constant dense<0.000000e+00> : vector<32x128xf32>
    %20 = tpu.matmul %4, %8, %cst_21 {dimension_numbers = #tpu.dot_dimension_numbers<[1], [0], [0], [1], [0, 0, 1, 1], [], []>} : vector<32x16xf32>, vector<16x128xf32>, vector<32x128xf32> -> vector<32x128xf32>
    %21 = vector.broadcast %16 : vector<1x128xf32> to vector<32x128xf32>
    %22 = arith.addf %20, %21 : vector<32x128xf32>
    %c0_22 = arith.constant 0 : index
    %c0_23 = arith.constant 0 : index
    %23 = vector.load %arg14[%c0_22, %c0_23] : memref<8x32xf32, #tpu.memory_space<vmem>>, vector<8x32xf32>
    %c0_24 = arith.constant 0 : index
    %c0_25 = arith.constant 0 : index
    %24 = vector.load %arg15[%c0_24, %c0_25] : memref<8x32xf32, #tpu.memory_space<vmem>>, vector<8x32xf32>
    %25 = vector.extract_strided_slice %19 {offsets = [0, 0], sizes = [4, 128], strides = [1, 1]} : vector<32x128xf32> to vector<4x128xf32>
    %26 = vector.extract_strided_slice %23 {offsets = [0, 0], sizes = [4, 32], strides = [1, 1]} : vector<8x32xf32> to vector<4x32xf32>
    %cst_26 = arith.constant dense<0.000000e+00> : vector<4x128xf32>
    %27 = tpu.matmul %26, %10, %cst_26 {dimension_numbers = #tpu.dot_dimension_numbers<[1], [0], [0], [1], [0, 0, 1, 1], [], []>} : vector<4x32xf32>, vector<32x128xf32>, vector<4x128xf32> -> vector<4x128xf32>
    %28 = arith.addf %25, %27 : vector<4x128xf32>
    %29 = vector.extract_strided_slice %22 {offsets = [28, 0], sizes = [4, 128], strides = [1, 1]} : vector<32x128xf32> to vector<4x128xf32>
    %30 = vector.extract_strided_slice %23 {offsets = [4, 0], sizes = [4, 32], strides = [1, 1]} : vector<8x32xf32> to vector<4x32xf32>
    %cst_27 = arith.constant dense<0.000000e+00> : vector<4x128xf32>
    %31 = tpu.matmul %30, %12, %cst_27 {dimension_numbers = #tpu.dot_dimension_numbers<[1], [0], [0], [1], [0, 0, 1, 1], [], []>} : vector<4x32xf32>, vector<32x128xf32>, vector<4x128xf32> -> vector<4x128xf32>
    %32 = arith.addf %29, %31 : vector<4x128xf32>
    %33 = tpu.concatenate %28, %32 in 0 : vector<4x128xf32>, vector<4x128xf32> -> vector<8x128xf32>
    %34 = vector.extract_strided_slice %33 {offsets = [0, 0], sizes = [8, 96], strides = [1, 1]} : vector<8x128xf32> to vector<8x96xf32>
    %35 = arith.negf %34 : vector<8x96xf32>
    %36 = math.exp %35 : vector<8x96xf32>
    %cst_28 = arith.constant 1.000000e+00 : f32
    %37 = vector.broadcast %cst_28 : f32 to vector<8x96xf32>
    %38 = arith.addf %37, %36 : vector<8x96xf32>
    %39 = arith.divf %37, %38 : vector<8x96xf32>
    %40 = vector.extract_strided_slice %33 {offsets = [0, 96], sizes = [8, 32], strides = [1, 1]} : vector<8x128xf32> to vector<8x32xf32>
    %41 = math.tanh %40 : vector<8x32xf32>
    %42 = vector.extract_strided_slice %39 {offsets = [0, 32], sizes = [8, 32], strides = [1, 1]} : vector<8x96xf32> to vector<8x32xf32>
    %43 = arith.mulf %42, %24 : vector<8x32xf32>
    %44 = vector.extract_strided_slice %39 {offsets = [0, 0], sizes = [8, 32], strides = [1, 1]} : vector<8x96xf32> to vector<8x32xf32>
    %45 = arith.mulf %44, %41 : vector<8x32xf32>
    %46 = arith.addf %43, %45 : vector<8x32xf32>
    %47 = vector.extract_strided_slice %39 {offsets = [0, 64], sizes = [8, 32], strides = [1, 1]} : vector<8x96xf32> to vector<8x32xf32>
    %48 = math.tanh %46 : vector<8x32xf32>
    %49 = arith.mulf %47, %48 : vector<8x32xf32>
    %50 = vector.extract_strided_slice %19 {offsets = [4, 0], sizes = [4, 128], strides = [1, 1]} : vector<32x128xf32> to vector<4x128xf32>
    %51 = vector.extract_strided_slice %49 {offsets = [0, 0], sizes = [4, 32], strides = [1, 1]} : vector<8x32xf32> to vector<4x32xf32>
    %cst_29 = arith.constant dense<0.000000e+00> : vector<4x128xf32>
    %52 = tpu.matmul %51, %10, %cst_29 {dimension_numbers = #tpu.dot_dimension_numbers<[1], [0], [0], [1], [0, 0, 1, 1], [], []>} : vector<4x32xf32>, vector<32x128xf32>, vector<4x128xf32> -> vector<4x128xf32>
    %53 = arith.addf %50, %52 : vector<4x128xf32>
    %54 = vector.extract_strided_slice %22 {offsets = [24, 0], sizes = [4, 128], strides = [1, 1]} : vector<32x128xf32> to vector<4x128xf32>
    %55 = vector.extract_strided_slice %49 {offsets = [4, 0], sizes = [4, 32], strides = [1, 1]} : vector<8x32xf32> to vector<4x32xf32>
    %cst_30 = arith.constant dense<0.000000e+00> : vector<4x128xf32>
    %56 = tpu.matmul %55, %12, %cst_30 {dimension_numbers = #tpu.dot_dimension_numbers<[1], [0], [0], [1], [0, 0, 1, 1], [], []>} : vector<4x32xf32>, vector<32x128xf32>, vector<4x128xf32> -> vector<4x128xf32>
    %57 = arith.addf %54, %56 : vector<4x128xf32>
    %58 = tpu.concatenate %53, %57 in 0 : vector<4x128xf32>, vector<4x128xf32> -> vector<8x128xf32>
    %59 = vector.extract_strided_slice %58 {offsets = [0, 0], sizes = [8, 96], strides = [1, 1]} : vector<8x128xf32> to vector<8x96xf32>
    %60 = arith.negf %59 : vector<8x96xf32>
    %61 = math.exp %60 : vector<8x96xf32>
    %cst_31 = arith.constant 1.000000e+00 : f32
    %62 = vector.broadcast %cst_31 : f32 to vector<8x96xf32>
    %63 = arith.addf %62, %61 : vector<8x96xf32>
    %64 = arith.divf %62, %63 : vector<8x96xf32>
    %65 = vector.extract_strided_slice %58 {offsets = [0, 96], sizes = [8, 32], strides = [1, 1]} : vector<8x128xf32> to vector<8x32xf32>
    %66 = math.tanh %65 : vector<8x32xf32>
    %67 = vector.extract_strided_slice %64 {offsets = [0, 32], sizes = [8, 32], strides = [1, 1]} : vector<8x96xf32> to vector<8x32xf32>
    %68 = arith.mulf %67, %46 : vector<8x32xf32>
    %69 = vector.extract_strided_slice %64 {offsets = [0, 0], sizes = [8, 32], strides = [1, 1]} : vector<8x96xf32> to vector<8x32xf32>
    %70 = arith.mulf %69, %66 : vector<8x32xf32>
    %71 = arith.addf %68, %70 : vector<8x32xf32>
    %72 = vector.extract_strided_slice %64 {offsets = [0, 64], sizes = [8, 32], strides = [1, 1]} : vector<8x96xf32> to vector<8x32xf32>
    %73 = math.tanh %71 : vector<8x32xf32>
    %74 = arith.mulf %72, %73 : vector<8x32xf32>
    %75 = vector.extract_strided_slice %19 {offsets = [8, 0], sizes = [4, 128], strides = [1, 1]} : vector<32x128xf32> to vector<4x128xf32>
    %76 = vector.extract_strided_slice %74 {offsets = [0, 0], sizes = [4, 32], strides = [1, 1]} : vector<8x32xf32> to vector<4x32xf32>
    %cst_32 = arith.constant dense<0.000000e+00> : vector<4x128xf32>
    %77 = tpu.matmul %76, %10, %cst_32 {dimension_numbers = #tpu.dot_dimension_numbers<[1], [0], [0], [1], [0, 0, 1, 1], [], []>} : vector<4x32xf32>, vector<32x128xf32>, vector<4x128xf32> -> vector<4x128xf32>
    %78 = arith.addf %75, %77 : vector<4x128xf32>
    %79 = vector.extract_strided_slice %22 {offsets = [20, 0], sizes = [4, 128], strides = [1, 1]} : vector<32x128xf32> to vector<4x128xf32>
    %80 = vector.extract_strided_slice %74 {offsets = [4, 0], sizes = [4, 32], strides = [1, 1]} : vector<8x32xf32> to vector<4x32xf32>
    %cst_33 = arith.constant dense<0.000000e+00> : vector<4x128xf32>
    %81 = tpu.matmul %80, %12, %cst_33 {dimension_numbers = #tpu.dot_dimension_numbers<[1], [0], [0], [1], [0, 0, 1, 1], [], []>} : vector<4x32xf32>, vector<32x128xf32>, vector<4x128xf32> -> vector<4x128xf32>
    %82 = arith.addf %79, %81 : vector<4x128xf32>
    %83 = tpu.concatenate %78, %82 in 0 : vector<4x128xf32>, vector<4x128xf32> -> vector<8x128xf32>
    %84 = vector.extract_strided_slice %83 {offsets = [0, 0], sizes = [8, 96], strides = [1, 1]} : vector<8x128xf32> to vector<8x96xf32>
    %85 = arith.negf %84 : vector<8x96xf32>
    %86 = math.exp %85 : vector<8x96xf32>
    %cst_34 = arith.constant 1.000000e+00 : f32
    %87 = vector.broadcast %cst_34 : f32 to vector<8x96xf32>
    %88 = arith.addf %87, %86 : vector<8x96xf32>
    %89 = arith.divf %87, %88 : vector<8x96xf32>
    %90 = vector.extract_strided_slice %83 {offsets = [0, 96], sizes = [8, 32], strides = [1, 1]} : vector<8x128xf32> to vector<8x32xf32>
    %91 = math.tanh %90 : vector<8x32xf32>
    %92 = vector.extract_strided_slice %89 {offsets = [0, 32], sizes = [8, 32], strides = [1, 1]} : vector<8x96xf32> to vector<8x32xf32>
    %93 = arith.mulf %92, %71 : vector<8x32xf32>
    %94 = vector.extract_strided_slice %89 {offsets = [0, 0], sizes = [8, 32], strides = [1, 1]} : vector<8x96xf32> to vector<8x32xf32>
    %95 = arith.mulf %94, %91 : vector<8x32xf32>
    %96 = arith.addf %93, %95 : vector<8x32xf32>
    %97 = vector.extract_strided_slice %89 {offsets = [0, 64], sizes = [8, 32], strides = [1, 1]} : vector<8x96xf32> to vector<8x32xf32>
    %98 = math.tanh %96 : vector<8x32xf32>
    %99 = arith.mulf %97, %98 : vector<8x32xf32>
    %100 = vector.extract_strided_slice %19 {offsets = [12, 0], sizes = [4, 128], strides = [1, 1]} : vector<32x128xf32> to vector<4x128xf32>
    %101 = vector.extract_strided_slice %99 {offsets = [0, 0], sizes = [4, 32], strides = [1, 1]} : vector<8x32xf32> to vector<4x32xf32>
    %cst_35 = arith.constant dense<0.000000e+00> : vector<4x128xf32>
    %102 = tpu.matmul %101, %10, %cst_35 {dimension_numbers = #tpu.dot_dimension_numbers<[1], [0], [0], [1], [0, 0, 1, 1], [], []>} : vector<4x32xf32>, vector<32x128xf32>, vector<4x128xf32> -> vector<4x128xf32>
    %103 = arith.addf %100, %102 : vector<4x128xf32>
    %104 = vector.extract_strided_slice %22 {offsets = [16, 0], sizes = [4, 128], strides = [1, 1]} : vector<32x128xf32> to vector<4x128xf32>
    %105 = vector.extract_strided_slice %99 {offsets = [4, 0], sizes = [4, 32], strides = [1, 1]} : vector<8x32xf32> to vector<4x32xf32>
    %cst_36 = arith.constant dense<0.000000e+00> : vector<4x128xf32>
    %106 = tpu.matmul %105, %12, %cst_36 {dimension_numbers = #tpu.dot_dimension_numbers<[1], [0], [0], [1], [0, 0, 1, 1], [], []>} : vector<4x32xf32>, vector<32x128xf32>, vector<4x128xf32> -> vector<4x128xf32>
    %107 = arith.addf %104, %106 : vector<4x128xf32>
    %108 = tpu.concatenate %103, %107 in 0 : vector<4x128xf32>, vector<4x128xf32> -> vector<8x128xf32>
    %109 = vector.extract_strided_slice %108 {offsets = [0, 0], sizes = [8, 96], strides = [1, 1]} : vector<8x128xf32> to vector<8x96xf32>
    %110 = arith.negf %109 : vector<8x96xf32>
    %111 = math.exp %110 : vector<8x96xf32>
    %cst_37 = arith.constant 1.000000e+00 : f32
    %112 = vector.broadcast %cst_37 : f32 to vector<8x96xf32>
    %113 = arith.addf %112, %111 : vector<8x96xf32>
    %114 = arith.divf %112, %113 : vector<8x96xf32>
    %115 = vector.extract_strided_slice %108 {offsets = [0, 96], sizes = [8, 32], strides = [1, 1]} : vector<8x128xf32> to vector<8x32xf32>
    %116 = math.tanh %115 : vector<8x32xf32>
    %117 = vector.extract_strided_slice %114 {offsets = [0, 32], sizes = [8, 32], strides = [1, 1]} : vector<8x96xf32> to vector<8x32xf32>
    %118 = arith.mulf %117, %96 : vector<8x32xf32>
    %119 = vector.extract_strided_slice %114 {offsets = [0, 0], sizes = [8, 32], strides = [1, 1]} : vector<8x96xf32> to vector<8x32xf32>
    %120 = arith.mulf %119, %116 : vector<8x32xf32>
    %121 = arith.addf %118, %120 : vector<8x32xf32>
    %122 = vector.extract_strided_slice %114 {offsets = [0, 64], sizes = [8, 32], strides = [1, 1]} : vector<8x96xf32> to vector<8x32xf32>
    %123 = math.tanh %121 : vector<8x32xf32>
    %124 = arith.mulf %122, %123 : vector<8x32xf32>
    %125 = vector.extract_strided_slice %19 {offsets = [16, 0], sizes = [4, 128], strides = [1, 1]} : vector<32x128xf32> to vector<4x128xf32>
    %126 = vector.extract_strided_slice %124 {offsets = [0, 0], sizes = [4, 32], strides = [1, 1]} : vector<8x32xf32> to vector<4x32xf32>
    %cst_38 = arith.constant dense<0.000000e+00> : vector<4x128xf32>
    %127 = tpu.matmul %126, %10, %cst_38 {dimension_numbers = #tpu.dot_dimension_numbers<[1], [0], [0], [1], [0, 0, 1, 1], [], []>} : vector<4x32xf32>, vector<32x128xf32>, vector<4x128xf32> -> vector<4x128xf32>
    %128 = arith.addf %125, %127 : vector<4x128xf32>
    %129 = vector.extract_strided_slice %22 {offsets = [12, 0], sizes = [4, 128], strides = [1, 1]} : vector<32x128xf32> to vector<4x128xf32>
    %130 = vector.extract_strided_slice %124 {offsets = [4, 0], sizes = [4, 32], strides = [1, 1]} : vector<8x32xf32> to vector<4x32xf32>
    %cst_39 = arith.constant dense<0.000000e+00> : vector<4x128xf32>
    %131 = tpu.matmul %130, %12, %cst_39 {dimension_numbers = #tpu.dot_dimension_numbers<[1], [0], [0], [1], [0, 0, 1, 1], [], []>} : vector<4x32xf32>, vector<32x128xf32>, vector<4x128xf32> -> vector<4x128xf32>
    %132 = arith.addf %129, %131 : vector<4x128xf32>
    %133 = tpu.concatenate %128, %132 in 0 : vector<4x128xf32>, vector<4x128xf32> -> vector<8x128xf32>
    %134 = vector.extract_strided_slice %133 {offsets = [0, 0], sizes = [8, 96], strides = [1, 1]} : vector<8x128xf32> to vector<8x96xf32>
    %135 = arith.negf %134 : vector<8x96xf32>
    %136 = math.exp %135 : vector<8x96xf32>
    %cst_40 = arith.constant 1.000000e+00 : f32
    %137 = vector.broadcast %cst_40 : f32 to vector<8x96xf32>
    %138 = arith.addf %137, %136 : vector<8x96xf32>
    %139 = arith.divf %137, %138 : vector<8x96xf32>
    %140 = vector.extract_strided_slice %133 {offsets = [0, 96], sizes = [8, 32], strides = [1, 1]} : vector<8x128xf32> to vector<8x32xf32>
    %141 = math.tanh %140 : vector<8x32xf32>
    %142 = vector.extract_strided_slice %139 {offsets = [0, 32], sizes = [8, 32], strides = [1, 1]} : vector<8x96xf32> to vector<8x32xf32>
    %143 = arith.mulf %142, %121 : vector<8x32xf32>
    %144 = vector.extract_strided_slice %139 {offsets = [0, 0], sizes = [8, 32], strides = [1, 1]} : vector<8x96xf32> to vector<8x32xf32>
    %145 = arith.mulf %144, %141 : vector<8x32xf32>
    %146 = arith.addf %143, %145 : vector<8x32xf32>
    %147 = vector.extract_strided_slice %139 {offsets = [0, 64], sizes = [8, 32], strides = [1, 1]} : vector<8x96xf32> to vector<8x32xf32>
    %148 = math.tanh %146 : vector<8x32xf32>
    %149 = arith.mulf %147, %148 : vector<8x32xf32>
    %150 = vector.extract_strided_slice %19 {offsets = [20, 0], sizes = [4, 128], strides = [1, 1]} : vector<32x128xf32> to vector<4x128xf32>
    %151 = vector.extract_strided_slice %149 {offsets = [0, 0], sizes = [4, 32], strides = [1, 1]} : vector<8x32xf32> to vector<4x32xf32>
    %cst_41 = arith.constant dense<0.000000e+00> : vector<4x128xf32>
    %152 = tpu.matmul %151, %10, %cst_41 {dimension_numbers = #tpu.dot_dimension_numbers<[1], [0], [0], [1], [0, 0, 1, 1], [], []>} : vector<4x32xf32>, vector<32x128xf32>, vector<4x128xf32> -> vector<4x128xf32>
    %153 = arith.addf %150, %152 : vector<4x128xf32>
    %154 = vector.extract_strided_slice %22 {offsets = [8, 0], sizes = [4, 128], strides = [1, 1]} : vector<32x128xf32> to vector<4x128xf32>
    %155 = vector.extract_strided_slice %149 {offsets = [4, 0], sizes = [4, 32], strides = [1, 1]} : vector<8x32xf32> to vector<4x32xf32>
    %cst_42 = arith.constant dense<0.000000e+00> : vector<4x128xf32>
    %156 = tpu.matmul %155, %12, %cst_42 {dimension_numbers = #tpu.dot_dimension_numbers<[1], [0], [0], [1], [0, 0, 1, 1], [], []>} : vector<4x32xf32>, vector<32x128xf32>, vector<4x128xf32> -> vector<4x128xf32>
    %157 = arith.addf %154, %156 : vector<4x128xf32>
    %158 = tpu.concatenate %153, %157 in 0 : vector<4x128xf32>, vector<4x128xf32> -> vector<8x128xf32>
    %159 = vector.extract_strided_slice %158 {offsets = [0, 0], sizes = [8, 96], strides = [1, 1]} : vector<8x128xf32> to vector<8x96xf32>
    %160 = arith.negf %159 : vector<8x96xf32>
    %161 = math.exp %160 : vector<8x96xf32>
    %cst_43 = arith.constant 1.000000e+00 : f32
    %162 = vector.broadcast %cst_43 : f32 to vector<8x96xf32>
    %163 = arith.addf %162, %161 : vector<8x96xf32>
    %164 = arith.divf %162, %163 : vector<8x96xf32>
    %165 = vector.extract_strided_slice %158 {offsets = [0, 96], sizes = [8, 32], strides = [1, 1]} : vector<8x128xf32> to vector<8x32xf32>
    %166 = math.tanh %165 : vector<8x32xf32>
    %167 = vector.extract_strided_slice %164 {offsets = [0, 32], sizes = [8, 32], strides = [1, 1]} : vector<8x96xf32> to vector<8x32xf32>
    %168 = arith.mulf %167, %146 : vector<8x32xf32>
    %169 = vector.extract_strided_slice %164 {offsets = [0, 0], sizes = [8, 32], strides = [1, 1]} : vector<8x96xf32> to vector<8x32xf32>
    %170 = arith.mulf %169, %166 : vector<8x32xf32>
    %171 = arith.addf %168, %170 : vector<8x32xf32>
    %172 = vector.extract_strided_slice %164 {offsets = [0, 64], sizes = [8, 32], strides = [1, 1]} : vector<8x96xf32> to vector<8x32xf32>
    %173 = math.tanh %171 : vector<8x32xf32>
    %174 = arith.mulf %172, %173 : vector<8x32xf32>
    %175 = vector.extract_strided_slice %19 {offsets = [24, 0], sizes = [4, 128], strides = [1, 1]} : vector<32x128xf32> to vector<4x128xf32>
    %176 = vector.extract_strided_slice %174 {offsets = [0, 0], sizes = [4, 32], strides = [1, 1]} : vector<8x32xf32> to vector<4x32xf32>
    %cst_44 = arith.constant dense<0.000000e+00> : vector<4x128xf32>
    %177 = tpu.matmul %176, %10, %cst_44 {dimension_numbers = #tpu.dot_dimension_numbers<[1], [0], [0], [1], [0, 0, 1, 1], [], []>} : vector<4x32xf32>, vector<32x128xf32>, vector<4x128xf32> -> vector<4x128xf32>
    %178 = arith.addf %175, %177 : vector<4x128xf32>
    %179 = vector.extract_strided_slice %22 {offsets = [4, 0], sizes = [4, 128], strides = [1, 1]} : vector<32x128xf32> to vector<4x128xf32>
    %180 = vector.extract_strided_slice %174 {offsets = [4, 0], sizes = [4, 32], strides = [1, 1]} : vector<8x32xf32> to vector<4x32xf32>
    %cst_45 = arith.constant dense<0.000000e+00> : vector<4x128xf32>
    %181 = tpu.matmul %180, %12, %cst_45 {dimension_numbers = #tpu.dot_dimension_numbers<[1], [0], [0], [1], [0, 0, 1, 1], [], []>} : vector<4x32xf32>, vector<32x128xf32>, vector<4x128xf32> -> vector<4x128xf32>
    %182 = arith.addf %179, %181 : vector<4x128xf32>
    %183 = tpu.concatenate %178, %182 in 0 : vector<4x128xf32>, vector<4x128xf32> -> vector<8x128xf32>
    %184 = vector.extract_strided_slice %183 {offsets = [0, 0], sizes = [8, 96], strides = [1, 1]} : vector<8x128xf32> to vector<8x96xf32>
    %185 = arith.negf %184 : vector<8x96xf32>
    %186 = math.exp %185 : vector<8x96xf32>
    %cst_46 = arith.constant 1.000000e+00 : f32
    %187 = vector.broadcast %cst_46 : f32 to vector<8x96xf32>
    %188 = arith.addf %187, %186 : vector<8x96xf32>
    %189 = arith.divf %187, %188 : vector<8x96xf32>
    %190 = vector.extract_strided_slice %183 {offsets = [0, 96], sizes = [8, 32], strides = [1, 1]} : vector<8x128xf32> to vector<8x32xf32>
    %191 = math.tanh %190 : vector<8x32xf32>
    %192 = vector.extract_strided_slice %189 {offsets = [0, 32], sizes = [8, 32], strides = [1, 1]} : vector<8x96xf32> to vector<8x32xf32>
    %193 = arith.mulf %192, %171 : vector<8x32xf32>
    %194 = vector.extract_strided_slice %189 {offsets = [0, 0], sizes = [8, 32], strides = [1, 1]} : vector<8x96xf32> to vector<8x32xf32>
    %195 = arith.mulf %194, %191 : vector<8x32xf32>
    %196 = arith.addf %193, %195 : vector<8x32xf32>
    %197 = vector.extract_strided_slice %189 {offsets = [0, 64], sizes = [8, 32], strides = [1, 1]} : vector<8x96xf32> to vector<8x32xf32>
    %198 = math.tanh %196 : vector<8x32xf32>
    %199 = arith.mulf %197, %198 : vector<8x32xf32>
    %200 = vector.extract_strided_slice %19 {offsets = [28, 0], sizes = [4, 128], strides = [1, 1]} : vector<32x128xf32> to vector<4x128xf32>
    %201 = vector.extract_strided_slice %199 {offsets = [0, 0], sizes = [4, 32], strides = [1, 1]} : vector<8x32xf32> to vector<4x32xf32>
    %cst_47 = arith.constant dense<0.000000e+00> : vector<4x128xf32>
    %202 = tpu.matmul %201, %10, %cst_47 {dimension_numbers = #tpu.dot_dimension_numbers<[1], [0], [0], [1], [0, 0, 1, 1], [], []>} : vector<4x32xf32>, vector<32x128xf32>, vector<4x128xf32> -> vector<4x128xf32>
    %203 = arith.addf %200, %202 : vector<4x128xf32>
    %204 = vector.extract_strided_slice %22 {offsets = [0, 0], sizes = [4, 128], strides = [1, 1]} : vector<32x128xf32> to vector<4x128xf32>
    %205 = vector.extract_strided_slice %199 {offsets = [4, 0], sizes = [4, 32], strides = [1, 1]} : vector<8x32xf32> to vector<4x32xf32>
    %cst_48 = arith.constant dense<0.000000e+00> : vector<4x128xf32>
    %206 = tpu.matmul %205, %12, %cst_48 {dimension_numbers = #tpu.dot_dimension_numbers<[1], [0], [0], [1], [0, 0, 1, 1], [], []>} : vector<4x32xf32>, vector<32x128xf32>, vector<4x128xf32> -> vector<4x128xf32>
    %207 = arith.addf %204, %206 : vector<4x128xf32>
    %208 = tpu.concatenate %203, %207 in 0 : vector<4x128xf32>, vector<4x128xf32> -> vector<8x128xf32>
    %209 = vector.extract_strided_slice %208 {offsets = [0, 0], sizes = [8, 96], strides = [1, 1]} : vector<8x128xf32> to vector<8x96xf32>
    %210 = arith.negf %209 : vector<8x96xf32>
    %211 = math.exp %210 : vector<8x96xf32>
    %cst_49 = arith.constant 1.000000e+00 : f32
    %212 = vector.broadcast %cst_49 : f32 to vector<8x96xf32>
    %213 = arith.addf %212, %211 : vector<8x96xf32>
    %214 = arith.divf %212, %213 : vector<8x96xf32>
    %215 = vector.extract_strided_slice %208 {offsets = [0, 96], sizes = [8, 32], strides = [1, 1]} : vector<8x128xf32> to vector<8x32xf32>
    %216 = math.tanh %215 : vector<8x32xf32>
    %217 = vector.extract_strided_slice %214 {offsets = [0, 32], sizes = [8, 32], strides = [1, 1]} : vector<8x96xf32> to vector<8x32xf32>
    %218 = arith.mulf %217, %196 : vector<8x32xf32>
    %219 = vector.extract_strided_slice %214 {offsets = [0, 0], sizes = [8, 32], strides = [1, 1]} : vector<8x96xf32> to vector<8x32xf32>
    %220 = arith.mulf %219, %216 : vector<8x32xf32>
    %221 = arith.addf %218, %220 : vector<8x32xf32>
    %222 = vector.extract_strided_slice %214 {offsets = [0, 64], sizes = [8, 32], strides = [1, 1]} : vector<8x96xf32> to vector<8x32xf32>
    %223 = math.tanh %221 : vector<8x32xf32>
    %224 = arith.mulf %222, %223 : vector<8x32xf32>
    %c0_50 = arith.constant 0 : index
    %c0_51 = arith.constant 0 : index
    %225 = vector.load %arg14[%c0_50, %c0_51] : memref<8x32xf32, #tpu.memory_space<vmem>>, vector<8x32xf32>
    tpu.vector_store %arg14[%c0_50, %c0_51], %224 {strides = array<i32>} : memref<8x32xf32, #tpu.memory_space<vmem>>, vector<8x32xf32>,
    %c0_52 = arith.constant 0 : index
    %c0_53 = arith.constant 0 : index
    %226 = vector.load %arg15[%c0_52, %c0_53] : memref<8x32xf32, #tpu.memory_space<vmem>>, vector<8x32xf32>
    tpu.vector_store %arg15[%c0_52, %c0_53], %221 {strides = array<i32>} : memref<8x32xf32, #tpu.memory_space<vmem>>, vector<8x32xf32>,
    %227 = vector.extract_strided_slice %49 {offsets = [0, 0], sizes = [4, 32], strides = [1, 1]} : vector<8x32xf32> to vector<4x32xf32>
    %228 = vector.extract_strided_slice %74 {offsets = [0, 0], sizes = [4, 32], strides = [1, 1]} : vector<8x32xf32> to vector<4x32xf32>
    %229 = vector.extract_strided_slice %99 {offsets = [0, 0], sizes = [4, 32], strides = [1, 1]} : vector<8x32xf32> to vector<4x32xf32>
    %230 = vector.extract_strided_slice %124 {offsets = [0, 0], sizes = [4, 32], strides = [1, 1]} : vector<8x32xf32> to vector<4x32xf32>
    %231 = vector.extract_strided_slice %149 {offsets = [0, 0], sizes = [4, 32], strides = [1, 1]} : vector<8x32xf32> to vector<4x32xf32>
    %232 = vector.extract_strided_slice %174 {offsets = [0, 0], sizes = [4, 32], strides = [1, 1]} : vector<8x32xf32> to vector<4x32xf32>
    %233 = vector.extract_strided_slice %199 {offsets = [0, 0], sizes = [4, 32], strides = [1, 1]} : vector<8x32xf32> to vector<4x32xf32>
    %234 = vector.extract_strided_slice %224 {offsets = [0, 0], sizes = [4, 32], strides = [1, 1]} : vector<8x32xf32> to vector<4x32xf32>
    %235 = tpu.concatenate %227, %228, %229, %230, %231, %232, %233, %234 in 0 : vector<4x32xf32>, vector<4x32xf32>, vector<4x32xf32>, vector<4x32xf32>, vector<4x32xf32>, vector<4x32xf32>, vector<4x32xf32>, vector<4x32xf32> -> vector<32x32xf32>
    %236 = vector.extract_strided_slice %224 {offsets = [4, 0], sizes = [4, 32], strides = [1, 1]} : vector<8x32xf32> to vector<4x32xf32>
    %237 = vector.extract_strided_slice %199 {offsets = [4, 0], sizes = [4, 32], strides = [1, 1]} : vector<8x32xf32> to vector<4x32xf32>
    %238 = vector.extract_strided_slice %174 {offsets = [4, 0], sizes = [4, 32], strides = [1, 1]} : vector<8x32xf32> to vector<4x32xf32>
    %239 = vector.extract_strided_slice %149 {offsets = [4, 0], sizes = [4, 32], strides = [1, 1]} : vector<8x32xf32> to vector<4x32xf32>
    %240 = vector.extract_strided_slice %124 {offsets = [4, 0], sizes = [4, 32], strides = [1, 1]} : vector<8x32xf32> to vector<4x32xf32>
    %241 = vector.extract_strided_slice %99 {offsets = [4, 0], sizes = [4, 32], strides = [1, 1]} : vector<8x32xf32> to vector<4x32xf32>
    %242 = vector.extract_strided_slice %74 {offsets = [4, 0], sizes = [4, 32], strides = [1, 1]} : vector<8x32xf32> to vector<4x32xf32>
    %243 = vector.extract_strided_slice %49 {offsets = [4, 0], sizes = [4, 32], strides = [1, 1]} : vector<8x32xf32> to vector<4x32xf32>
    %244 = tpu.concatenate %236, %237, %238, %239, %240, %241, %242, %243 in 0 : vector<4x32xf32>, vector<4x32xf32>, vector<4x32xf32>, vector<4x32xf32>, vector<4x32xf32>, vector<4x32xf32>, vector<4x32xf32>, vector<4x32xf32> -> vector<32x32xf32>
    %c0_54 = arith.constant 0 : index
    %c0_55 = arith.constant 0 : index
    %c0_56 = arith.constant 0 : index
    %245 = vector.load %arg6[%c0_54, %c0_55, %c0_56] : memref<2x32x128xf32, #tpu.memory_space<vmem>>, vector<1x32x128xf32>
    %246 = vector.shape_cast %245 : vector<1x32x128xf32> to vector<32x128xf32>
    %c1_57 = arith.constant 1 : index
    %c0_58 = arith.constant 0 : index
    %c0_59 = arith.constant 0 : index
    %247 = vector.load %arg6[%c1_57, %c0_58, %c0_59] : memref<2x32x128xf32, #tpu.memory_space<vmem>>, vector<1x32x128xf32>
    %248 = vector.shape_cast %247 : vector<1x32x128xf32> to vector<32x128xf32>
    %c0_60 = arith.constant 0 : index
    %c0_61 = arith.constant 0 : index
    %c0_62 = arith.constant 0 : index
    %249 = vector.load %arg7[%c0_60, %c0_61, %c0_62] : memref<2x32x128xf32, #tpu.memory_space<vmem>>, vector<1x32x128xf32>
    %250 = vector.shape_cast %249 : vector<1x32x128xf32> to vector<32x128xf32>
    %c1_63 = arith.constant 1 : index
    %c0_64 = arith.constant 0 : index
    %c0_65 = arith.constant 0 : index
    %251 = vector.load %arg7[%c1_63, %c0_64, %c0_65] : memref<2x32x128xf32, #tpu.memory_space<vmem>>, vector<1x32x128xf32>
    %252 = vector.shape_cast %251 : vector<1x32x128xf32> to vector<32x128xf32>
    %c0_66 = arith.constant 0 : index
    %c0_67 = arith.constant 0 : index
    %c0_68 = arith.constant 0 : index
    %253 = vector.load %arg8[%c0_66, %c0_67, %c0_68] : memref<2x1x128xf32, #tpu.memory_space<vmem>>, vector<1x1x128xf32>
    %254 = vector.shape_cast %253 : vector<1x1x128xf32> to vector<1x128xf32>
    %c1_69 = arith.constant 1 : index
    %c0_70 = arith.constant 0 : index
    %c0_71 = arith.constant 0 : index
    %255 = vector.load %arg8[%c1_69, %c0_70, %c0_71] : memref<2x1x128xf32, #tpu.memory_space<vmem>>, vector<1x1x128xf32>
    %256 = vector.shape_cast %255 : vector<1x1x128xf32> to vector<1x128xf32>
    %cst_72 = arith.constant dense<0.000000e+00> : vector<32x128xf32>
    %257 = tpu.matmul %235, %246, %cst_72 {dimension_numbers = #tpu.dot_dimension_numbers<[1], [0], [0], [1], [0, 0, 1, 1], [], []>} : vector<32x32xf32>, vector<32x128xf32>, vector<32x128xf32> -> vector<32x128xf32>
    %258 = vector.broadcast %254 : vector<1x128xf32> to vector<32x128xf32>
    %259 = arith.addf %257, %258 : vector<32x128xf32>
    %cst_73 = arith.constant dense<0.000000e+00> : vector<32x128xf32>
    %260 = tpu.matmul %244, %248, %cst_73 {dimension_numbers = #tpu.dot_dimension_numbers<[1], [0], [0], [1], [0, 0, 1, 1], [], []>} : vector<32x32xf32>, vector<32x128xf32>, vector<32x128xf32> -> vector<32x128xf32>
    %261 = vector.broadcast %256 : vector<1x128xf32> to vector<32x128xf32>
    %262 = arith.addf %260, %261 : vector<32x128xf32>
    %c0_74 = arith.constant 0 : index
    %c0_75 = arith.constant 0 : index
    %263 = vector.load %arg16[%c0_74, %c0_75] : memref<8x32xf32, #tpu.memory_space<vmem>>, vector<8x32xf32>
    %c0_76 = arith.constant 0 : index
    %c0_77 = arith.constant 0 : index
    %264 = vector.load %arg17[%c0_76, %c0_77] : memref<8x32xf32, #tpu.memory_space<vmem>>, vector<8x32xf32>
    %265 = vector.extract_strided_slice %259 {offsets = [0, 0], sizes = [4, 128], strides = [1, 1]} : vector<32x128xf32> to vector<4x128xf32>
    %266 = vector.extract_strided_slice %263 {offsets = [0, 0], sizes = [4, 32], strides = [1, 1]} : vector<8x32xf32> to vector<4x32xf32>
    %cst_78 = arith.constant dense<0.000000e+00> : vector<4x128xf32>
    %267 = tpu.matmul %266, %250, %cst_78 {dimension_numbers = #tpu.dot_dimension_numbers<[1], [0], [0], [1], [0, 0, 1, 1], [], []>} : vector<4x32xf32>, vector<32x128xf32>, vector<4x128xf32> -> vector<4x128xf32>
    %268 = arith.addf %265, %267 : vector<4x128xf32>
    %269 = vector.extract_strided_slice %262 {offsets = [28, 0], sizes = [4, 128], strides = [1, 1]} : vector<32x128xf32> to vector<4x128xf32>
    %270 = vector.extract_strided_slice %263 {offsets = [4, 0], sizes = [4, 32], strides = [1, 1]} : vector<8x32xf32> to vector<4x32xf32>
    %cst_79 = arith.constant dense<0.000000e+00> : vector<4x128xf32>
    %271 = tpu.matmul %270, %252, %cst_79 {dimension_numbers = #tpu.dot_dimension_numbers<[1], [0], [0], [1], [0, 0, 1, 1], [], []>} : vector<4x32xf32>, vector<32x128xf32>, vector<4x128xf32> -> vector<4x128xf32>
    %272 = arith.addf %269, %271 : vector<4x128xf32>
    %273 = tpu.concatenate %268, %272 in 0 : vector<4x128xf32>, vector<4x128xf32> -> vector<8x128xf32>
    %274 = vector.extract_strided_slice %273 {offsets = [0, 0], sizes = [8, 96], strides = [1, 1]} : vector<8x128xf32> to vector<8x96xf32>
    %275 = arith.negf %274 : vector<8x96xf32>
    %276 = math.exp %275 : vector<8x96xf32>
    %cst_80 = arith.constant 1.000000e+00 : f32
    %277 = vector.broadcast %cst_80 : f32 to vector<8x96xf32>
    %278 = arith.addf %277, %276 : vector<8x96xf32>
    %279 = arith.divf %277, %278 : vector<8x96xf32>
    %280 = vector.extract_strided_slice %273 {offsets = [0, 96], sizes = [8, 32], strides = [1, 1]} : vector<8x128xf32> to vector<8x32xf32>
    %281 = math.tanh %280 : vector<8x32xf32>
    %282 = vector.extract_strided_slice %279 {offsets = [0, 32], sizes = [8, 32], strides = [1, 1]} : vector<8x96xf32> to vector<8x32xf32>
    %283 = arith.mulf %282, %264 : vector<8x32xf32>
    %284 = vector.extract_strided_slice %279 {offsets = [0, 0], sizes = [8, 32], strides = [1, 1]} : vector<8x96xf32> to vector<8x32xf32>
    %285 = arith.mulf %284, %281 : vector<8x32xf32>
    %286 = arith.addf %283, %285 : vector<8x32xf32>
    %287 = vector.extract_strided_slice %279 {offsets = [0, 64], sizes = [8, 32], strides = [1, 1]} : vector<8x96xf32> to vector<8x32xf32>
    %288 = math.tanh %286 : vector<8x32xf32>
    %289 = arith.mulf %287, %288 : vector<8x32xf32>
    %290 = vector.extract_strided_slice %259 {offsets = [4, 0], sizes = [4, 128], strides = [1, 1]} : vector<32x128xf32> to vector<4x128xf32>
    %291 = vector.extract_strided_slice %289 {offsets = [0, 0], sizes = [4, 32], strides = [1, 1]} : vector<8x32xf32> to vector<4x32xf32>
    %cst_81 = arith.constant dense<0.000000e+00> : vector<4x128xf32>
    %292 = tpu.matmul %291, %250, %cst_81 {dimension_numbers = #tpu.dot_dimension_numbers<[1], [0], [0], [1], [0, 0, 1, 1], [], []>} : vector<4x32xf32>, vector<32x128xf32>, vector<4x128xf32> -> vector<4x128xf32>
    %293 = arith.addf %290, %292 : vector<4x128xf32>
    %294 = vector.extract_strided_slice %262 {offsets = [24, 0], sizes = [4, 128], strides = [1, 1]} : vector<32x128xf32> to vector<4x128xf32>
    %295 = vector.extract_strided_slice %289 {offsets = [4, 0], sizes = [4, 32], strides = [1, 1]} : vector<8x32xf32> to vector<4x32xf32>
    %cst_82 = arith.constant dense<0.000000e+00> : vector<4x128xf32>
    %296 = tpu.matmul %295, %252, %cst_82 {dimension_numbers = #tpu.dot_dimension_numbers<[1], [0], [0], [1], [0, 0, 1, 1], [], []>} : vector<4x32xf32>, vector<32x128xf32>, vector<4x128xf32> -> vector<4x128xf32>
    %297 = arith.addf %294, %296 : vector<4x128xf32>
    %298 = tpu.concatenate %293, %297 in 0 : vector<4x128xf32>, vector<4x128xf32> -> vector<8x128xf32>
    %299 = vector.extract_strided_slice %298 {offsets = [0, 0], sizes = [8, 96], strides = [1, 1]} : vector<8x128xf32> to vector<8x96xf32>
    %300 = arith.negf %299 : vector<8x96xf32>
    %301 = math.exp %300 : vector<8x96xf32>
    %cst_83 = arith.constant 1.000000e+00 : f32
    %302 = vector.broadcast %cst_83 : f32 to vector<8x96xf32>
    %303 = arith.addf %302, %301 : vector<8x96xf32>
    %304 = arith.divf %302, %303 : vector<8x96xf32>
    %305 = vector.extract_strided_slice %298 {offsets = [0, 96], sizes = [8, 32], strides = [1, 1]} : vector<8x128xf32> to vector<8x32xf32>
    %306 = math.tanh %305 : vector<8x32xf32>
    %307 = vector.extract_strided_slice %304 {offsets = [0, 32], sizes = [8, 32], strides = [1, 1]} : vector<8x96xf32> to vector<8x32xf32>
    %308 = arith.mulf %307, %286 : vector<8x32xf32>
    %309 = vector.extract_strided_slice %304 {offsets = [0, 0], sizes = [8, 32], strides = [1, 1]} : vector<8x96xf32> to vector<8x32xf32>
    %310 = arith.mulf %309, %306 : vector<8x32xf32>
    %311 = arith.addf %308, %310 : vector<8x32xf32>
    %312 = vector.extract_strided_slice %304 {offsets = [0, 64], sizes = [8, 32], strides = [1, 1]} : vector<8x96xf32> to vector<8x32xf32>
    %313 = math.tanh %311 : vector<8x32xf32>
    %314 = arith.mulf %312, %313 : vector<8x32xf32>
    %315 = vector.extract_strided_slice %259 {offsets = [8, 0], sizes = [4, 128], strides = [1, 1]} : vector<32x128xf32> to vector<4x128xf32>
    %316 = vector.extract_strided_slice %314 {offsets = [0, 0], sizes = [4, 32], strides = [1, 1]} : vector<8x32xf32> to vector<4x32xf32>
    %cst_84 = arith.constant dense<0.000000e+00> : vector<4x128xf32>
    %317 = tpu.matmul %316, %250, %cst_84 {dimension_numbers = #tpu.dot_dimension_numbers<[1], [0], [0], [1], [0, 0, 1, 1], [], []>} : vector<4x32xf32>, vector<32x128xf32>, vector<4x128xf32> -> vector<4x128xf32>
    %318 = arith.addf %315, %317 : vector<4x128xf32>
    %319 = vector.extract_strided_slice %262 {offsets = [20, 0], sizes = [4, 128], strides = [1, 1]} : vector<32x128xf32> to vector<4x128xf32>
    %320 = vector.extract_strided_slice %314 {offsets = [4, 0], sizes = [4, 32], strides = [1, 1]} : vector<8x32xf32> to vector<4x32xf32>
    %cst_85 = arith.constant dense<0.000000e+00> : vector<4x128xf32>
    %321 = tpu.matmul %320, %252, %cst_85 {dimension_numbers = #tpu.dot_dimension_numbers<[1], [0], [0], [1], [0, 0, 1, 1], [], []>} : vector<4x32xf32>, vector<32x128xf32>, vector<4x128xf32> -> vector<4x128xf32>
    %322 = arith.addf %319, %321 : vector<4x128xf32>
    %323 = tpu.concatenate %318, %322 in 0 : vector<4x128xf32>, vector<4x128xf32> -> vector<8x128xf32>
    %324 = vector.extract_strided_slice %323 {offsets = [0, 0], sizes = [8, 96], strides = [1, 1]} : vector<8x128xf32> to vector<8x96xf32>
    %325 = arith.negf %324 : vector<8x96xf32>
    %326 = math.exp %325 : vector<8x96xf32>
    %cst_86 = arith.constant 1.000000e+00 : f32
    %327 = vector.broadcast %cst_86 : f32 to vector<8x96xf32>
    %328 = arith.addf %327, %326 : vector<8x96xf32>
    %329 = arith.divf %327, %328 : vector<8x96xf32>
    %330 = vector.extract_strided_slice %323 {offsets = [0, 96], sizes = [8, 32], strides = [1, 1]} : vector<8x128xf32> to vector<8x32xf32>
    %331 = math.tanh %330 : vector<8x32xf32>
    %332 = vector.extract_strided_slice %329 {offsets = [0, 32], sizes = [8, 32], strides = [1, 1]} : vector<8x96xf32> to vector<8x32xf32>
    %333 = arith.mulf %332, %311 : vector<8x32xf32>
    %334 = vector.extract_strided_slice %329 {offsets = [0, 0], sizes = [8, 32], strides = [1, 1]} : vector<8x96xf32> to vector<8x32xf32>
    %335 = arith.mulf %334, %331 : vector<8x32xf32>
    %336 = arith.addf %333, %335 : vector<8x32xf32>
    %337 = vector.extract_strided_slice %329 {offsets = [0, 64], sizes = [8, 32], strides = [1, 1]} : vector<8x96xf32> to vector<8x32xf32>
    %338 = math.tanh %336 : vector<8x32xf32>
    %339 = arith.mulf %337, %338 : vector<8x32xf32>
    %340 = vector.extract_strided_slice %259 {offsets = [12, 0], sizes = [4, 128], strides = [1, 1]} : vector<32x128xf32> to vector<4x128xf32>
    %341 = vector.extract_strided_slice %339 {offsets = [0, 0], sizes = [4, 32], strides = [1, 1]} : vector<8x32xf32> to vector<4x32xf32>
    %cst_87 = arith.constant dense<0.000000e+00> : vector<4x128xf32>
    %342 = tpu.matmul %341, %250, %cst_87 {dimension_numbers = #tpu.dot_dimension_numbers<[1], [0], [0], [1], [0, 0, 1, 1], [], []>} : vector<4x32xf32>, vector<32x128xf32>, vector<4x128xf32> -> vector<4x128xf32>
    %343 = arith.addf %340, %342 : vector<4x128xf32>
    %344 = vector.extract_strided_slice %262 {offsets = [16, 0], sizes = [4, 128], strides = [1, 1]} : vector<32x128xf32> to vector<4x128xf32>
    %345 = vector.extract_strided_slice %339 {offsets = [4, 0], sizes = [4, 32], strides = [1, 1]} : vector<8x32xf32> to vector<4x32xf32>
    %cst_88 = arith.constant dense<0.000000e+00> : vector<4x128xf32>
    %346 = tpu.matmul %345, %252, %cst_88 {dimension_numbers = #tpu.dot_dimension_numbers<[1], [0], [0], [1], [0, 0, 1, 1], [], []>} : vector<4x32xf32>, vector<32x128xf32>, vector<4x128xf32> -> vector<4x128xf32>
    %347 = arith.addf %344, %346 : vector<4x128xf32>
    %348 = tpu.concatenate %343, %347 in 0 : vector<4x128xf32>, vector<4x128xf32> -> vector<8x128xf32>
    %349 = vector.extract_strided_slice %348 {offsets = [0, 0], sizes = [8, 96], strides = [1, 1]} : vector<8x128xf32> to vector<8x96xf32>
    %350 = arith.negf %349 : vector<8x96xf32>
    %351 = math.exp %350 : vector<8x96xf32>
    %cst_89 = arith.constant 1.000000e+00 : f32
    %352 = vector.broadcast %cst_89 : f32 to vector<8x96xf32>
    %353 = arith.addf %352, %351 : vector<8x96xf32>
    %354 = arith.divf %352, %353 : vector<8x96xf32>
    %355 = vector.extract_strided_slice %348 {offsets = [0, 96], sizes = [8, 32], strides = [1, 1]} : vector<8x128xf32> to vector<8x32xf32>
    %356 = math.tanh %355 : vector<8x32xf32>
    %357 = vector.extract_strided_slice %354 {offsets = [0, 32], sizes = [8, 32], strides = [1, 1]} : vector<8x96xf32> to vector<8x32xf32>
    %358 = arith.mulf %357, %336 : vector<8x32xf32>
    %359 = vector.extract_strided_slice %354 {offsets = [0, 0], sizes = [8, 32], strides = [1, 1]} : vector<8x96xf32> to vector<8x32xf32>
    %360 = arith.mulf %359, %356 : vector<8x32xf32>
    %361 = arith.addf %358, %360 : vector<8x32xf32>
    %362 = vector.extract_strided_slice %354 {offsets = [0, 64], sizes = [8, 32], strides = [1, 1]} : vector<8x96xf32> to vector<8x32xf32>
    %363 = math.tanh %361 : vector<8x32xf32>
    %364 = arith.mulf %362, %363 : vector<8x32xf32>
    %365 = vector.extract_strided_slice %259 {offsets = [16, 0], sizes = [4, 128], strides = [1, 1]} : vector<32x128xf32> to vector<4x128xf32>
    %366 = vector.extract_strided_slice %364 {offsets = [0, 0], sizes = [4, 32], strides = [1, 1]} : vector<8x32xf32> to vector<4x32xf32>
    %cst_90 = arith.constant dense<0.000000e+00> : vector<4x128xf32>
    %367 = tpu.matmul %366, %250, %cst_90 {dimension_numbers = #tpu.dot_dimension_numbers<[1], [0], [0], [1], [0, 0, 1, 1], [], []>} : vector<4x32xf32>, vector<32x128xf32>, vector<4x128xf32> -> vector<4x128xf32>
    %368 = arith.addf %365, %367 : vector<4x128xf32>
    %369 = vector.extract_strided_slice %262 {offsets = [12, 0], sizes = [4, 128], strides = [1, 1]} : vector<32x128xf32> to vector<4x128xf32>
    %370 = vector.extract_strided_slice %364 {offsets = [4, 0], sizes = [4, 32], strides = [1, 1]} : vector<8x32xf32> to vector<4x32xf32>
    %cst_91 = arith.constant dense<0.000000e+00> : vector<4x128xf32>
    %371 = tpu.matmul %370, %252, %cst_91 {dimension_numbers = #tpu.dot_dimension_numbers<[1], [0], [0], [1], [0, 0, 1, 1], [], []>} : vector<4x32xf32>, vector<32x128xf32>, vector<4x128xf32> -> vector<4x128xf32>
    %372 = arith.addf %369, %371 : vector<4x128xf32>
    %373 = tpu.concatenate %368, %372 in 0 : vector<4x128xf32>, vector<4x128xf32> -> vector<8x128xf32>
    %374 = vector.extract_strided_slice %373 {offsets = [0, 0], sizes = [8, 96], strides = [1, 1]} : vector<8x128xf32> to vector<8x96xf32>
    %375 = arith.negf %374 : vector<8x96xf32>
    %376 = math.exp %375 : vector<8x96xf32>
    %cst_92 = arith.constant 1.000000e+00 : f32
    %377 = vector.broadcast %cst_92 : f32 to vector<8x96xf32>
    %378 = arith.addf %377, %376 : vector<8x96xf32>
    %379 = arith.divf %377, %378 : vector<8x96xf32>
    %380 = vector.extract_strided_slice %373 {offsets = [0, 96], sizes = [8, 32], strides = [1, 1]} : vector<8x128xf32> to vector<8x32xf32>
    %381 = math.tanh %380 : vector<8x32xf32>
    %382 = vector.extract_strided_slice %379 {offsets = [0, 32], sizes = [8, 32], strides = [1, 1]} : vector<8x96xf32> to vector<8x32xf32>
    %383 = arith.mulf %382, %361 : vector<8x32xf32>
    %384 = vector.extract_strided_slice %379 {offsets = [0, 0], sizes = [8, 32], strides = [1, 1]} : vector<8x96xf32> to vector<8x32xf32>
    %385 = arith.mulf %384, %381 : vector<8x32xf32>
    %386 = arith.addf %383, %385 : vector<8x32xf32>
    %387 = vector.extract_strided_slice %379 {offsets = [0, 64], sizes = [8, 32], strides = [1, 1]} : vector<8x96xf32> to vector<8x32xf32>
    %388 = math.tanh %386 : vector<8x32xf32>
    %389 = arith.mulf %387, %388 : vector<8x32xf32>
    %390 = vector.extract_strided_slice %259 {offsets = [20, 0], sizes = [4, 128], strides = [1, 1]} : vector<32x128xf32> to vector<4x128xf32>
    %391 = vector.extract_strided_slice %389 {offsets = [0, 0], sizes = [4, 32], strides = [1, 1]} : vector<8x32xf32> to vector<4x32xf32>
    %cst_93 = arith.constant dense<0.000000e+00> : vector<4x128xf32>
    %392 = tpu.matmul %391, %250, %cst_93 {dimension_numbers = #tpu.dot_dimension_numbers<[1], [0], [0], [1], [0, 0, 1, 1], [], []>} : vector<4x32xf32>, vector<32x128xf32>, vector<4x128xf32> -> vector<4x128xf32>
    %393 = arith.addf %390, %392 : vector<4x128xf32>
    %394 = vector.extract_strided_slice %262 {offsets = [8, 0], sizes = [4, 128], strides = [1, 1]} : vector<32x128xf32> to vector<4x128xf32>
    %395 = vector.extract_strided_slice %389 {offsets = [4, 0], sizes = [4, 32], strides = [1, 1]} : vector<8x32xf32> to vector<4x32xf32>
    %cst_94 = arith.constant dense<0.000000e+00> : vector<4x128xf32>
    %396 = tpu.matmul %395, %252, %cst_94 {dimension_numbers = #tpu.dot_dimension_numbers<[1], [0], [0], [1], [0, 0, 1, 1], [], []>} : vector<4x32xf32>, vector<32x128xf32>, vector<4x128xf32> -> vector<4x128xf32>
    %397 = arith.addf %394, %396 : vector<4x128xf32>
    %398 = tpu.concatenate %393, %397 in 0 : vector<4x128xf32>, vector<4x128xf32> -> vector<8x128xf32>
    %399 = vector.extract_strided_slice %398 {offsets = [0, 0], sizes = [8, 96], strides = [1, 1]} : vector<8x128xf32> to vector<8x96xf32>
    %400 = arith.negf %399 : vector<8x96xf32>
    %401 = math.exp %400 : vector<8x96xf32>
    %cst_95 = arith.constant 1.000000e+00 : f32
    %402 = vector.broadcast %cst_95 : f32 to vector<8x96xf32>
    %403 = arith.addf %402, %401 : vector<8x96xf32>
    %404 = arith.divf %402, %403 : vector<8x96xf32>
    %405 = vector.extract_strided_slice %398 {offsets = [0, 96], sizes = [8, 32], strides = [1, 1]} : vector<8x128xf32> to vector<8x32xf32>
    %406 = math.tanh %405 : vector<8x32xf32>
    %407 = vector.extract_strided_slice %404 {offsets = [0, 32], sizes = [8, 32], strides = [1, 1]} : vector<8x96xf32> to vector<8x32xf32>
    %408 = arith.mulf %407, %386 : vector<8x32xf32>
    %409 = vector.extract_strided_slice %404 {offsets = [0, 0], sizes = [8, 32], strides = [1, 1]} : vector<8x96xf32> to vector<8x32xf32>
    %410 = arith.mulf %409, %406 : vector<8x32xf32>
    %411 = arith.addf %408, %410 : vector<8x32xf32>
    %412 = vector.extract_strided_slice %404 {offsets = [0, 64], sizes = [8, 32], strides = [1, 1]} : vector<8x96xf32> to vector<8x32xf32>
    %413 = math.tanh %411 : vector<8x32xf32>
    %414 = arith.mulf %412, %413 : vector<8x32xf32>
    %415 = vector.extract_strided_slice %259 {offsets = [24, 0], sizes = [4, 128], strides = [1, 1]} : vector<32x128xf32> to vector<4x128xf32>
    %416 = vector.extract_strided_slice %414 {offsets = [0, 0], sizes = [4, 32], strides = [1, 1]} : vector<8x32xf32> to vector<4x32xf32>
    %cst_96 = arith.constant dense<0.000000e+00> : vector<4x128xf32>
    %417 = tpu.matmul %416, %250, %cst_96 {dimension_numbers = #tpu.dot_dimension_numbers<[1], [0], [0], [1], [0, 0, 1, 1], [], []>} : vector<4x32xf32>, vector<32x128xf32>, vector<4x128xf32> -> vector<4x128xf32>
    %418 = arith.addf %415, %417 : vector<4x128xf32>
    %419 = vector.extract_strided_slice %262 {offsets = [4, 0], sizes = [4, 128], strides = [1, 1]} : vector<32x128xf32> to vector<4x128xf32>
    %420 = vector.extract_strided_slice %414 {offsets = [4, 0], sizes = [4, 32], strides = [1, 1]} : vector<8x32xf32> to vector<4x32xf32>
    %cst_97 = arith.constant dense<0.000000e+00> : vector<4x128xf32>
    %421 = tpu.matmul %420, %252, %cst_97 {dimension_numbers = #tpu.dot_dimension_numbers<[1], [0], [0], [1], [0, 0, 1, 1], [], []>} : vector<4x32xf32>, vector<32x128xf32>, vector<4x128xf32> -> vector<4x128xf32>
    %422 = arith.addf %419, %421 : vector<4x128xf32>
    %423 = tpu.concatenate %418, %422 in 0 : vector<4x128xf32>, vector<4x128xf32> -> vector<8x128xf32>
    %424 = vector.extract_strided_slice %423 {offsets = [0, 0], sizes = [8, 96], strides = [1, 1]} : vector<8x128xf32> to vector<8x96xf32>
    %425 = arith.negf %424 : vector<8x96xf32>
    %426 = math.exp %425 : vector<8x96xf32>
    %cst_98 = arith.constant 1.000000e+00 : f32
    %427 = vector.broadcast %cst_98 : f32 to vector<8x96xf32>
    %428 = arith.addf %427, %426 : vector<8x96xf32>
    %429 = arith.divf %427, %428 : vector<8x96xf32>
    %430 = vector.extract_strided_slice %423 {offsets = [0, 96], sizes = [8, 32], strides = [1, 1]} : vector<8x128xf32> to vector<8x32xf32>
    %431 = math.tanh %430 : vector<8x32xf32>
    %432 = vector.extract_strided_slice %429 {offsets = [0, 32], sizes = [8, 32], strides = [1, 1]} : vector<8x96xf32> to vector<8x32xf32>
    %433 = arith.mulf %432, %411 : vector<8x32xf32>
    %434 = vector.extract_strided_slice %429 {offsets = [0, 0], sizes = [8, 32], strides = [1, 1]} : vector<8x96xf32> to vector<8x32xf32>
    %435 = arith.mulf %434, %431 : vector<8x32xf32>
    %436 = arith.addf %433, %435 : vector<8x32xf32>
    %437 = vector.extract_strided_slice %429 {offsets = [0, 64], sizes = [8, 32], strides = [1, 1]} : vector<8x96xf32> to vector<8x32xf32>
    %438 = math.tanh %436 : vector<8x32xf32>
    %439 = arith.mulf %437, %438 : vector<8x32xf32>
    %440 = vector.extract_strided_slice %259 {offsets = [28, 0], sizes = [4, 128], strides = [1, 1]} : vector<32x128xf32> to vector<4x128xf32>
    %441 = vector.extract_strided_slice %439 {offsets = [0, 0], sizes = [4, 32], strides = [1, 1]} : vector<8x32xf32> to vector<4x32xf32>
    %cst_99 = arith.constant dense<0.000000e+00> : vector<4x128xf32>
    %442 = tpu.matmul %441, %250, %cst_99 {dimension_numbers = #tpu.dot_dimension_numbers<[1], [0], [0], [1], [0, 0, 1, 1], [], []>} : vector<4x32xf32>, vector<32x128xf32>, vector<4x128xf32> -> vector<4x128xf32>
    %443 = arith.addf %440, %442 : vector<4x128xf32>
    %444 = vector.extract_strided_slice %262 {offsets = [0, 0], sizes = [4, 128], strides = [1, 1]} : vector<32x128xf32> to vector<4x128xf32>
    %445 = vector.extract_strided_slice %439 {offsets = [4, 0], sizes = [4, 32], strides = [1, 1]} : vector<8x32xf32> to vector<4x32xf32>
    %cst_100 = arith.constant dense<0.000000e+00> : vector<4x128xf32>
    %446 = tpu.matmul %445, %252, %cst_100 {dimension_numbers = #tpu.dot_dimension_numbers<[1], [0], [0], [1], [0, 0, 1, 1], [], []>} : vector<4x32xf32>, vector<32x128xf32>, vector<4x128xf32> -> vector<4x128xf32>
    %447 = arith.addf %444, %446 : vector<4x128xf32>
    %448 = tpu.concatenate %443, %447 in 0 : vector<4x128xf32>, vector<4x128xf32> -> vector<8x128xf32>
    %449 = vector.extract_strided_slice %448 {offsets = [0, 0], sizes = [8, 96], strides = [1, 1]} : vector<8x128xf32> to vector<8x96xf32>
    %450 = arith.negf %449 : vector<8x96xf32>
    %451 = math.exp %450 : vector<8x96xf32>
    %cst_101 = arith.constant 1.000000e+00 : f32
    %452 = vector.broadcast %cst_101 : f32 to vector<8x96xf32>
    %453 = arith.addf %452, %451 : vector<8x96xf32>
    %454 = arith.divf %452, %453 : vector<8x96xf32>
    %455 = vector.extract_strided_slice %448 {offsets = [0, 96], sizes = [8, 32], strides = [1, 1]} : vector<8x128xf32> to vector<8x32xf32>
    %456 = math.tanh %455 : vector<8x32xf32>
    %457 = vector.extract_strided_slice %454 {offsets = [0, 32], sizes = [8, 32], strides = [1, 1]} : vector<8x96xf32> to vector<8x32xf32>
    %458 = arith.mulf %457, %436 : vector<8x32xf32>
    %459 = vector.extract_strided_slice %454 {offsets = [0, 0], sizes = [8, 32], strides = [1, 1]} : vector<8x96xf32> to vector<8x32xf32>
    %460 = arith.mulf %459, %456 : vector<8x32xf32>
    %461 = arith.addf %458, %460 : vector<8x32xf32>
    %462 = vector.extract_strided_slice %454 {offsets = [0, 64], sizes = [8, 32], strides = [1, 1]} : vector<8x96xf32> to vector<8x32xf32>
    %463 = math.tanh %461 : vector<8x32xf32>
    %464 = arith.mulf %462, %463 : vector<8x32xf32>
    %c0_102 = arith.constant 0 : index
    %c0_103 = arith.constant 0 : index
    %465 = vector.load %arg16[%c0_102, %c0_103] : memref<8x32xf32, #tpu.memory_space<vmem>>, vector<8x32xf32>
    tpu.vector_store %arg16[%c0_102, %c0_103], %464 {strides = array<i32>} : memref<8x32xf32, #tpu.memory_space<vmem>>, vector<8x32xf32>,
    %c0_104 = arith.constant 0 : index
    %c0_105 = arith.constant 0 : index
    %466 = vector.load %arg17[%c0_104, %c0_105] : memref<8x32xf32, #tpu.memory_space<vmem>>, vector<8x32xf32>
    tpu.vector_store %arg17[%c0_104, %c0_105], %461 {strides = array<i32>} : memref<8x32xf32, #tpu.memory_space<vmem>>, vector<8x32xf32>,
    %467 = vector.extract_strided_slice %289 {offsets = [0, 0], sizes = [4, 32], strides = [1, 1]} : vector<8x32xf32> to vector<4x32xf32>
    %468 = vector.extract_strided_slice %314 {offsets = [0, 0], sizes = [4, 32], strides = [1, 1]} : vector<8x32xf32> to vector<4x32xf32>
    %469 = vector.extract_strided_slice %339 {offsets = [0, 0], sizes = [4, 32], strides = [1, 1]} : vector<8x32xf32> to vector<4x32xf32>
    %470 = vector.extract_strided_slice %364 {offsets = [0, 0], sizes = [4, 32], strides = [1, 1]} : vector<8x32xf32> to vector<4x32xf32>
    %471 = vector.extract_strided_slice %389 {offsets = [0, 0], sizes = [4, 32], strides = [1, 1]} : vector<8x32xf32> to vector<4x32xf32>
    %472 = vector.extract_strided_slice %414 {offsets = [0, 0], sizes = [4, 32], strides = [1, 1]} : vector<8x32xf32> to vector<4x32xf32>
    %473 = vector.extract_strided_slice %439 {offsets = [0, 0], sizes = [4, 32], strides = [1, 1]} : vector<8x32xf32> to vector<4x32xf32>
    %474 = vector.extract_strided_slice %464 {offsets = [0, 0], sizes = [4, 32], strides = [1, 1]} : vector<8x32xf32> to vector<4x32xf32>
    %475 = tpu.concatenate %467, %468, %469, %470, %471, %472, %473, %474 in 0 : vector<4x32xf32>, vector<4x32xf32>, vector<4x32xf32>, vector<4x32xf32>, vector<4x32xf32>, vector<4x32xf32>, vector<4x32xf32>, vector<4x32xf32> -> vector<32x32xf32>
    %476 = vector.extract_strided_slice %464 {offsets = [4, 0], sizes = [4, 32], strides = [1, 1]} : vector<8x32xf32> to vector<4x32xf32>
    %477 = vector.extract_strided_slice %439 {offsets = [4, 0], sizes = [4, 32], strides = [1, 1]} : vector<8x32xf32> to vector<4x32xf32>
    %478 = vector.extract_strided_slice %414 {offsets = [4, 0], sizes = [4, 32], strides = [1, 1]} : vector<8x32xf32> to vector<4x32xf32>
    %479 = vector.extract_strided_slice %389 {offsets = [4, 0], sizes = [4, 32], strides = [1, 1]} : vector<8x32xf32> to vector<4x32xf32>
    %480 = vector.extract_strided_slice %364 {offsets = [4, 0], sizes = [4, 32], strides = [1, 1]} : vector<8x32xf32> to vector<4x32xf32>
    %481 = vector.extract_strided_slice %339 {offsets = [4, 0], sizes = [4, 32], strides = [1, 1]} : vector<8x32xf32> to vector<4x32xf32>
    %482 = vector.extract_strided_slice %314 {offsets = [4, 0], sizes = [4, 32], strides = [1, 1]} : vector<8x32xf32> to vector<4x32xf32>
    %483 = vector.extract_strided_slice %289 {offsets = [4, 0], sizes = [4, 32], strides = [1, 1]} : vector<8x32xf32> to vector<4x32xf32>
    %484 = tpu.concatenate %476, %477, %478, %479, %480, %481, %482, %483 in 0 : vector<4x32xf32>, vector<4x32xf32>, vector<4x32xf32>, vector<4x32xf32>, vector<4x32xf32>, vector<4x32xf32>, vector<4x32xf32>, vector<4x32xf32> -> vector<32x32xf32>
    %c0_106 = arith.constant 0 : index
    %c0_107 = arith.constant 0 : index
    %c0_108 = arith.constant 0 : index
    %485 = vector.load %arg9[%c0_106, %c0_107, %c0_108] : memref<2x32x64xf32, #tpu.memory_space<vmem>>, vector<1x32x64xf32>
    %486 = vector.shape_cast %485 : vector<1x32x64xf32> to vector<32x64xf32>
    %c1_109 = arith.constant 1 : index
    %c0_110 = arith.constant 0 : index
    %c0_111 = arith.constant 0 : index
    %487 = vector.load %arg9[%c1_109, %c0_110, %c0_111] : memref<2x32x64xf32, #tpu.memory_space<vmem>>, vector<1x32x64xf32>
    %488 = vector.shape_cast %487 : vector<1x32x64xf32> to vector<32x64xf32>
    %c0_112 = arith.constant 0 : index
    %c0_113 = arith.constant 0 : index
    %c0_114 = arith.constant 0 : index
    %489 = vector.load %arg10[%c0_112, %c0_113, %c0_114] : memref<2x16x64xf32, #tpu.memory_space<vmem>>, vector<1x16x64xf32>
    %490 = vector.shape_cast %489 : vector<1x16x64xf32> to vector<16x64xf32>
    %c1_115 = arith.constant 1 : index
    %c0_116 = arith.constant 0 : index
    %c0_117 = arith.constant 0 : index
    %491 = vector.load %arg10[%c1_115, %c0_116, %c0_117] : memref<2x16x64xf32, #tpu.memory_space<vmem>>, vector<1x16x64xf32>
    %492 = vector.shape_cast %491 : vector<1x16x64xf32> to vector<16x64xf32>
    %c0_118 = arith.constant 0 : index
    %c0_119 = arith.constant 0 : index
    %c0_120 = arith.constant 0 : index
    %493 = vector.load %arg11[%c0_118, %c0_119, %c0_120] : memref<2x1x64xf32, #tpu.memory_space<vmem>>, vector<1x1x64xf32>
    %494 = vector.shape_cast %493 : vector<1x1x64xf32> to vector<1x64xf32>
    %c1_121 = arith.constant 1 : index
    %c0_122 = arith.constant 0 : index
    %c0_123 = arith.constant 0 : index
    %495 = vector.load %arg11[%c1_121, %c0_122, %c0_123] : memref<2x1x64xf32, #tpu.memory_space<vmem>>, vector<1x1x64xf32>
    %496 = vector.shape_cast %495 : vector<1x1x64xf32> to vector<1x64xf32>
    %cst_124 = arith.constant dense<0.000000e+00> : vector<32x64xf32>
    %497 = tpu.matmul %475, %486, %cst_124 {dimension_numbers = #tpu.dot_dimension_numbers<[1], [0], [0], [1], [0, 0, 1, 1], [], []>} : vector<32x32xf32>, vector<32x64xf32>, vector<32x64xf32> -> vector<32x64xf32>
    %498 = vector.broadcast %494 : vector<1x64xf32> to vector<32x64xf32>
    %499 = arith.addf %497, %498 : vector<32x64xf32>
    %cst_125 = arith.constant dense<0.000000e+00> : vector<32x64xf32>
    %500 = tpu.matmul %484, %488, %cst_125 {dimension_numbers = #tpu.dot_dimension_numbers<[1], [0], [0], [1], [0, 0, 1, 1], [], []>} : vector<32x32xf32>, vector<32x64xf32>, vector<32x64xf32> -> vector<32x64xf32>
    %501 = vector.broadcast %496 : vector<1x64xf32> to vector<32x64xf32>
    %502 = arith.addf %500, %501 : vector<32x64xf32>
    %c0_126 = arith.constant 0 : index
    %c0_127 = arith.constant 0 : index
    %503 = vector.load %arg18[%c0_126, %c0_127] : memref<8x16xf32, #tpu.memory_space<vmem>>, vector<8x16xf32>
    %c0_128 = arith.constant 0 : index
    %c0_129 = arith.constant 0 : index
    %504 = vector.load %arg19[%c0_128, %c0_129] : memref<8x16xf32, #tpu.memory_space<vmem>>, vector<8x16xf32>
    %505 = vector.extract_strided_slice %499 {offsets = [0, 0], sizes = [4, 64], strides = [1, 1]} : vector<32x64xf32> to vector<4x64xf32>
    %506 = vector.extract_strided_slice %503 {offsets = [0, 0], sizes = [4, 16], strides = [1, 1]} : vector<8x16xf32> to vector<4x16xf32>
    %cst_130 = arith.constant dense<0.000000e+00> : vector<4x64xf32>
    %507 = tpu.matmul %506, %490, %cst_130 {dimension_numbers = #tpu.dot_dimension_numbers<[1], [0], [0], [1], [0, 0, 1, 1], [], []>} : vector<4x16xf32>, vector<16x64xf32>, vector<4x64xf32> -> vector<4x64xf32>
    %508 = arith.addf %505, %507 : vector<4x64xf32>
    %509 = vector.extract_strided_slice %502 {offsets = [28, 0], sizes = [4, 64], strides = [1, 1]} : vector<32x64xf32> to vector<4x64xf32>
    %510 = vector.extract_strided_slice %503 {offsets = [4, 0], sizes = [4, 16], strides = [1, 1]} : vector<8x16xf32> to vector<4x16xf32>
    %cst_131 = arith.constant dense<0.000000e+00> : vector<4x64xf32>
    %511 = tpu.matmul %510, %492, %cst_131 {dimension_numbers = #tpu.dot_dimension_numbers<[1], [0], [0], [1], [0, 0, 1, 1], [], []>} : vector<4x16xf32>, vector<16x64xf32>, vector<4x64xf32> -> vector<4x64xf32>
    %512 = arith.addf %509, %511 : vector<4x64xf32>
    %513 = tpu.concatenate %508, %512 in 0 : vector<4x64xf32>, vector<4x64xf32> -> vector<8x64xf32>
    %514 = vector.extract_strided_slice %513 {offsets = [0, 0], sizes = [8, 48], strides = [1, 1]} : vector<8x64xf32> to vector<8x48xf32>
    %515 = arith.negf %514 : vector<8x48xf32>
    %516 = math.exp %515 : vector<8x48xf32>
    %cst_132 = arith.constant 1.000000e+00 : f32
    %517 = vector.broadcast %cst_132 : f32 to vector<8x48xf32>
    %518 = arith.addf %517, %516 : vector<8x48xf32>
    %519 = arith.divf %517, %518 : vector<8x48xf32>
    %520 = vector.extract_strided_slice %513 {offsets = [0, 48], sizes = [8, 16], strides = [1, 1]} : vector<8x64xf32> to vector<8x16xf32>
    %521 = math.tanh %520 : vector<8x16xf32>
    %522 = vector.extract_strided_slice %519 {offsets = [0, 16], sizes = [8, 16], strides = [1, 1]} : vector<8x48xf32> to vector<8x16xf32>
    %523 = arith.mulf %522, %504 : vector<8x16xf32>
    %524 = vector.extract_strided_slice %519 {offsets = [0, 0], sizes = [8, 16], strides = [1, 1]} : vector<8x48xf32> to vector<8x16xf32>
    %525 = arith.mulf %524, %521 : vector<8x16xf32>
    %526 = arith.addf %523, %525 : vector<8x16xf32>
    %527 = vector.extract_strided_slice %519 {offsets = [0, 32], sizes = [8, 16], strides = [1, 1]} : vector<8x48xf32> to vector<8x16xf32>
    %528 = math.tanh %526 : vector<8x16xf32>
    %529 = arith.mulf %527, %528 : vector<8x16xf32>
    %530 = vector.extract_strided_slice %499 {offsets = [4, 0], sizes = [4, 64], strides = [1, 1]} : vector<32x64xf32> to vector<4x64xf32>
    %531 = vector.extract_strided_slice %529 {offsets = [0, 0], sizes = [4, 16], strides = [1, 1]} : vector<8x16xf32> to vector<4x16xf32>
    %cst_133 = arith.constant dense<0.000000e+00> : vector<4x64xf32>
    %532 = tpu.matmul %531, %490, %cst_133 {dimension_numbers = #tpu.dot_dimension_numbers<[1], [0], [0], [1], [0, 0, 1, 1], [], []>} : vector<4x16xf32>, vector<16x64xf32>, vector<4x64xf32> -> vector<4x64xf32>
    %533 = arith.addf %530, %532 : vector<4x64xf32>
    %534 = vector.extract_strided_slice %502 {offsets = [24, 0], sizes = [4, 64], strides = [1, 1]} : vector<32x64xf32> to vector<4x64xf32>
    %535 = vector.extract_strided_slice %529 {offsets = [4, 0], sizes = [4, 16], strides = [1, 1]} : vector<8x16xf32> to vector<4x16xf32>
    %cst_134 = arith.constant dense<0.000000e+00> : vector<4x64xf32>
    %536 = tpu.matmul %535, %492, %cst_134 {dimension_numbers = #tpu.dot_dimension_numbers<[1], [0], [0], [1], [0, 0, 1, 1], [], []>} : vector<4x16xf32>, vector<16x64xf32>, vector<4x64xf32> -> vector<4x64xf32>
    %537 = arith.addf %534, %536 : vector<4x64xf32>
    %538 = tpu.concatenate %533, %537 in 0 : vector<4x64xf32>, vector<4x64xf32> -> vector<8x64xf32>
    %539 = vector.extract_strided_slice %538 {offsets = [0, 0], sizes = [8, 48], strides = [1, 1]} : vector<8x64xf32> to vector<8x48xf32>
    %540 = arith.negf %539 : vector<8x48xf32>
    %541 = math.exp %540 : vector<8x48xf32>
    %cst_135 = arith.constant 1.000000e+00 : f32
    %542 = vector.broadcast %cst_135 : f32 to vector<8x48xf32>
    %543 = arith.addf %542, %541 : vector<8x48xf32>
    %544 = arith.divf %542, %543 : vector<8x48xf32>
    %545 = vector.extract_strided_slice %538 {offsets = [0, 48], sizes = [8, 16], strides = [1, 1]} : vector<8x64xf32> to vector<8x16xf32>
    %546 = math.tanh %545 : vector<8x16xf32>
    %547 = vector.extract_strided_slice %544 {offsets = [0, 16], sizes = [8, 16], strides = [1, 1]} : vector<8x48xf32> to vector<8x16xf32>
    %548 = arith.mulf %547, %526 : vector<8x16xf32>
    %549 = vector.extract_strided_slice %544 {offsets = [0, 0], sizes = [8, 16], strides = [1, 1]} : vector<8x48xf32> to vector<8x16xf32>
    %550 = arith.mulf %549, %546 : vector<8x16xf32>
    %551 = arith.addf %548, %550 : vector<8x16xf32>
    %552 = vector.extract_strided_slice %544 {offsets = [0, 32], sizes = [8, 16], strides = [1, 1]} : vector<8x48xf32> to vector<8x16xf32>
    %553 = math.tanh %551 : vector<8x16xf32>
    %554 = arith.mulf %552, %553 : vector<8x16xf32>
    %555 = vector.extract_strided_slice %499 {offsets = [8, 0], sizes = [4, 64], strides = [1, 1]} : vector<32x64xf32> to vector<4x64xf32>
    %556 = vector.extract_strided_slice %554 {offsets = [0, 0], sizes = [4, 16], strides = [1, 1]} : vector<8x16xf32> to vector<4x16xf32>
    %cst_136 = arith.constant dense<0.000000e+00> : vector<4x64xf32>
    %557 = tpu.matmul %556, %490, %cst_136 {dimension_numbers = #tpu.dot_dimension_numbers<[1], [0], [0], [1], [0, 0, 1, 1], [], []>} : vector<4x16xf32>, vector<16x64xf32>, vector<4x64xf32> -> vector<4x64xf32>
    %558 = arith.addf %555, %557 : vector<4x64xf32>
    %559 = vector.extract_strided_slice %502 {offsets = [20, 0], sizes = [4, 64], strides = [1, 1]} : vector<32x64xf32> to vector<4x64xf32>
    %560 = vector.extract_strided_slice %554 {offsets = [4, 0], sizes = [4, 16], strides = [1, 1]} : vector<8x16xf32> to vector<4x16xf32>
    %cst_137 = arith.constant dense<0.000000e+00> : vector<4x64xf32>
    %561 = tpu.matmul %560, %492, %cst_137 {dimension_numbers = #tpu.dot_dimension_numbers<[1], [0], [0], [1], [0, 0, 1, 1], [], []>} : vector<4x16xf32>, vector<16x64xf32>, vector<4x64xf32> -> vector<4x64xf32>
    %562 = arith.addf %559, %561 : vector<4x64xf32>
    %563 = tpu.concatenate %558, %562 in 0 : vector<4x64xf32>, vector<4x64xf32> -> vector<8x64xf32>
    %564 = vector.extract_strided_slice %563 {offsets = [0, 0], sizes = [8, 48], strides = [1, 1]} : vector<8x64xf32> to vector<8x48xf32>
    %565 = arith.negf %564 : vector<8x48xf32>
    %566 = math.exp %565 : vector<8x48xf32>
    %cst_138 = arith.constant 1.000000e+00 : f32
    %567 = vector.broadcast %cst_138 : f32 to vector<8x48xf32>
    %568 = arith.addf %567, %566 : vector<8x48xf32>
    %569 = arith.divf %567, %568 : vector<8x48xf32>
    %570 = vector.extract_strided_slice %563 {offsets = [0, 48], sizes = [8, 16], strides = [1, 1]} : vector<8x64xf32> to vector<8x16xf32>
    %571 = math.tanh %570 : vector<8x16xf32>
    %572 = vector.extract_strided_slice %569 {offsets = [0, 16], sizes = [8, 16], strides = [1, 1]} : vector<8x48xf32> to vector<8x16xf32>
    %573 = arith.mulf %572, %551 : vector<8x16xf32>
    %574 = vector.extract_strided_slice %569 {offsets = [0, 0], sizes = [8, 16], strides = [1, 1]} : vector<8x48xf32> to vector<8x16xf32>
    %575 = arith.mulf %574, %571 : vector<8x16xf32>
    %576 = arith.addf %573, %575 : vector<8x16xf32>
    %577 = vector.extract_strided_slice %569 {offsets = [0, 32], sizes = [8, 16], strides = [1, 1]} : vector<8x48xf32> to vector<8x16xf32>
    %578 = math.tanh %576 : vector<8x16xf32>
    %579 = arith.mulf %577, %578 : vector<8x16xf32>
    %580 = vector.extract_strided_slice %499 {offsets = [12, 0], sizes = [4, 64], strides = [1, 1]} : vector<32x64xf32> to vector<4x64xf32>
    %581 = vector.extract_strided_slice %579 {offsets = [0, 0], sizes = [4, 16], strides = [1, 1]} : vector<8x16xf32> to vector<4x16xf32>
    %cst_139 = arith.constant dense<0.000000e+00> : vector<4x64xf32>
    %582 = tpu.matmul %581, %490, %cst_139 {dimension_numbers = #tpu.dot_dimension_numbers<[1], [0], [0], [1], [0, 0, 1, 1], [], []>} : vector<4x16xf32>, vector<16x64xf32>, vector<4x64xf32> -> vector<4x64xf32>
    %583 = arith.addf %580, %582 : vector<4x64xf32>
    %584 = vector.extract_strided_slice %502 {offsets = [16, 0], sizes = [4, 64], strides = [1, 1]} : vector<32x64xf32> to vector<4x64xf32>
    %585 = vector.extract_strided_slice %579 {offsets = [4, 0], sizes = [4, 16], strides = [1, 1]} : vector<8x16xf32> to vector<4x16xf32>
    %cst_140 = arith.constant dense<0.000000e+00> : vector<4x64xf32>
    %586 = tpu.matmul %585, %492, %cst_140 {dimension_numbers = #tpu.dot_dimension_numbers<[1], [0], [0], [1], [0, 0, 1, 1], [], []>} : vector<4x16xf32>, vector<16x64xf32>, vector<4x64xf32> -> vector<4x64xf32>
    %587 = arith.addf %584, %586 : vector<4x64xf32>
    %588 = tpu.concatenate %583, %587 in 0 : vector<4x64xf32>, vector<4x64xf32> -> vector<8x64xf32>
    %589 = vector.extract_strided_slice %588 {offsets = [0, 0], sizes = [8, 48], strides = [1, 1]} : vector<8x64xf32> to vector<8x48xf32>
    %590 = arith.negf %589 : vector<8x48xf32>
    %591 = math.exp %590 : vector<8x48xf32>
    %cst_141 = arith.constant 1.000000e+00 : f32
    %592 = vector.broadcast %cst_141 : f32 to vector<8x48xf32>
    %593 = arith.addf %592, %591 : vector<8x48xf32>
    %594 = arith.divf %592, %593 : vector<8x48xf32>
    %595 = vector.extract_strided_slice %588 {offsets = [0, 48], sizes = [8, 16], strides = [1, 1]} : vector<8x64xf32> to vector<8x16xf32>
    %596 = math.tanh %595 : vector<8x16xf32>
    %597 = vector.extract_strided_slice %594 {offsets = [0, 16], sizes = [8, 16], strides = [1, 1]} : vector<8x48xf32> to vector<8x16xf32>
    %598 = arith.mulf %597, %576 : vector<8x16xf32>
    %599 = vector.extract_strided_slice %594 {offsets = [0, 0], sizes = [8, 16], strides = [1, 1]} : vector<8x48xf32> to vector<8x16xf32>
    %600 = arith.mulf %599, %596 : vector<8x16xf32>
    %601 = arith.addf %598, %600 : vector<8x16xf32>
    %602 = vector.extract_strided_slice %594 {offsets = [0, 32], sizes = [8, 16], strides = [1, 1]} : vector<8x48xf32> to vector<8x16xf32>
    %603 = math.tanh %601 : vector<8x16xf32>
    %604 = arith.mulf %602, %603 : vector<8x16xf32>
    %605 = vector.extract_strided_slice %499 {offsets = [16, 0], sizes = [4, 64], strides = [1, 1]} : vector<32x64xf32> to vector<4x64xf32>
    %606 = vector.extract_strided_slice %604 {offsets = [0, 0], sizes = [4, 16], strides = [1, 1]} : vector<8x16xf32> to vector<4x16xf32>
    %cst_142 = arith.constant dense<0.000000e+00> : vector<4x64xf32>
    %607 = tpu.matmul %606, %490, %cst_142 {dimension_numbers = #tpu.dot_dimension_numbers<[1], [0], [0], [1], [0, 0, 1, 1], [], []>} : vector<4x16xf32>, vector<16x64xf32>, vector<4x64xf32> -> vector<4x64xf32>
    %608 = arith.addf %605, %607 : vector<4x64xf32>
    %609 = vector.extract_strided_slice %502 {offsets = [12, 0], sizes = [4, 64], strides = [1, 1]} : vector<32x64xf32> to vector<4x64xf32>
    %610 = vector.extract_strided_slice %604 {offsets = [4, 0], sizes = [4, 16], strides = [1, 1]} : vector<8x16xf32> to vector<4x16xf32>
    %cst_143 = arith.constant dense<0.000000e+00> : vector<4x64xf32>
    %611 = tpu.matmul %610, %492, %cst_143 {dimension_numbers = #tpu.dot_dimension_numbers<[1], [0], [0], [1], [0, 0, 1, 1], [], []>} : vector<4x16xf32>, vector<16x64xf32>, vector<4x64xf32> -> vector<4x64xf32>
    %612 = arith.addf %609, %611 : vector<4x64xf32>
    %613 = tpu.concatenate %608, %612 in 0 : vector<4x64xf32>, vector<4x64xf32> -> vector<8x64xf32>
    %614 = vector.extract_strided_slice %613 {offsets = [0, 0], sizes = [8, 48], strides = [1, 1]} : vector<8x64xf32> to vector<8x48xf32>
    %615 = arith.negf %614 : vector<8x48xf32>
    %616 = math.exp %615 : vector<8x48xf32>
    %cst_144 = arith.constant 1.000000e+00 : f32
    %617 = vector.broadcast %cst_144 : f32 to vector<8x48xf32>
    %618 = arith.addf %617, %616 : vector<8x48xf32>
    %619 = arith.divf %617, %618 : vector<8x48xf32>
    %620 = vector.extract_strided_slice %613 {offsets = [0, 48], sizes = [8, 16], strides = [1, 1]} : vector<8x64xf32> to vector<8x16xf32>
    %621 = math.tanh %620 : vector<8x16xf32>
    %622 = vector.extract_strided_slice %619 {offsets = [0, 16], sizes = [8, 16], strides = [1, 1]} : vector<8x48xf32> to vector<8x16xf32>
    %623 = arith.mulf %622, %601 : vector<8x16xf32>
    %624 = vector.extract_strided_slice %619 {offsets = [0, 0], sizes = [8, 16], strides = [1, 1]} : vector<8x48xf32> to vector<8x16xf32>
    %625 = arith.mulf %624, %621 : vector<8x16xf32>
    %626 = arith.addf %623, %625 : vector<8x16xf32>
    %627 = vector.extract_strided_slice %619 {offsets = [0, 32], sizes = [8, 16], strides = [1, 1]} : vector<8x48xf32> to vector<8x16xf32>
    %628 = math.tanh %626 : vector<8x16xf32>
    %629 = arith.mulf %627, %628 : vector<8x16xf32>
    %630 = vector.extract_strided_slice %499 {offsets = [20, 0], sizes = [4, 64], strides = [1, 1]} : vector<32x64xf32> to vector<4x64xf32>
    %631 = vector.extract_strided_slice %629 {offsets = [0, 0], sizes = [4, 16], strides = [1, 1]} : vector<8x16xf32> to vector<4x16xf32>
    %cst_145 = arith.constant dense<0.000000e+00> : vector<4x64xf32>
    %632 = tpu.matmul %631, %490, %cst_145 {dimension_numbers = #tpu.dot_dimension_numbers<[1], [0], [0], [1], [0, 0, 1, 1], [], []>} : vector<4x16xf32>, vector<16x64xf32>, vector<4x64xf32> -> vector<4x64xf32>
    %633 = arith.addf %630, %632 : vector<4x64xf32>
    %634 = vector.extract_strided_slice %502 {offsets = [8, 0], sizes = [4, 64], strides = [1, 1]} : vector<32x64xf32> to vector<4x64xf32>
    %635 = vector.extract_strided_slice %629 {offsets = [4, 0], sizes = [4, 16], strides = [1, 1]} : vector<8x16xf32> to vector<4x16xf32>
    %cst_146 = arith.constant dense<0.000000e+00> : vector<4x64xf32>
    %636 = tpu.matmul %635, %492, %cst_146 {dimension_numbers = #tpu.dot_dimension_numbers<[1], [0], [0], [1], [0, 0, 1, 1], [], []>} : vector<4x16xf32>, vector<16x64xf32>, vector<4x64xf32> -> vector<4x64xf32>
    %637 = arith.addf %634, %636 : vector<4x64xf32>
    %638 = tpu.concatenate %633, %637 in 0 : vector<4x64xf32>, vector<4x64xf32> -> vector<8x64xf32>
    %639 = vector.extract_strided_slice %638 {offsets = [0, 0], sizes = [8, 48], strides = [1, 1]} : vector<8x64xf32> to vector<8x48xf32>
    %640 = arith.negf %639 : vector<8x48xf32>
    %641 = math.exp %640 : vector<8x48xf32>
    %cst_147 = arith.constant 1.000000e+00 : f32
    %642 = vector.broadcast %cst_147 : f32 to vector<8x48xf32>
    %643 = arith.addf %642, %641 : vector<8x48xf32>
    %644 = arith.divf %642, %643 : vector<8x48xf32>
    %645 = vector.extract_strided_slice %638 {offsets = [0, 48], sizes = [8, 16], strides = [1, 1]} : vector<8x64xf32> to vector<8x16xf32>
    %646 = math.tanh %645 : vector<8x16xf32>
    %647 = vector.extract_strided_slice %644 {offsets = [0, 16], sizes = [8, 16], strides = [1, 1]} : vector<8x48xf32> to vector<8x16xf32>
    %648 = arith.mulf %647, %626 : vector<8x16xf32>
    %649 = vector.extract_strided_slice %644 {offsets = [0, 0], sizes = [8, 16], strides = [1, 1]} : vector<8x48xf32> to vector<8x16xf32>
    %650 = arith.mulf %649, %646 : vector<8x16xf32>
    %651 = arith.addf %648, %650 : vector<8x16xf32>
    %652 = vector.extract_strided_slice %644 {offsets = [0, 32], sizes = [8, 16], strides = [1, 1]} : vector<8x48xf32> to vector<8x16xf32>
    %653 = math.tanh %651 : vector<8x16xf32>
    %654 = arith.mulf %652, %653 : vector<8x16xf32>
    %655 = vector.extract_strided_slice %499 {offsets = [24, 0], sizes = [4, 64], strides = [1, 1]} : vector<32x64xf32> to vector<4x64xf32>
    %656 = vector.extract_strided_slice %654 {offsets = [0, 0], sizes = [4, 16], strides = [1, 1]} : vector<8x16xf32> to vector<4x16xf32>
    %cst_148 = arith.constant dense<0.000000e+00> : vector<4x64xf32>
    %657 = tpu.matmul %656, %490, %cst_148 {dimension_numbers = #tpu.dot_dimension_numbers<[1], [0], [0], [1], [0, 0, 1, 1], [], []>} : vector<4x16xf32>, vector<16x64xf32>, vector<4x64xf32> -> vector<4x64xf32>
    %658 = arith.addf %655, %657 : vector<4x64xf32>
    %659 = vector.extract_strided_slice %502 {offsets = [4, 0], sizes = [4, 64], strides = [1, 1]} : vector<32x64xf32> to vector<4x64xf32>
    %660 = vector.extract_strided_slice %654 {offsets = [4, 0], sizes = [4, 16], strides = [1, 1]} : vector<8x16xf32> to vector<4x16xf32>
    %cst_149 = arith.constant dense<0.000000e+00> : vector<4x64xf32>
    %661 = tpu.matmul %660, %492, %cst_149 {dimension_numbers = #tpu.dot_dimension_numbers<[1], [0], [0], [1], [0, 0, 1, 1], [], []>} : vector<4x16xf32>, vector<16x64xf32>, vector<4x64xf32> -> vector<4x64xf32>
    %662 = arith.addf %659, %661 : vector<4x64xf32>
    %663 = tpu.concatenate %658, %662 in 0 : vector<4x64xf32>, vector<4x64xf32> -> vector<8x64xf32>
    %664 = vector.extract_strided_slice %663 {offsets = [0, 0], sizes = [8, 48], strides = [1, 1]} : vector<8x64xf32> to vector<8x48xf32>
    %665 = arith.negf %664 : vector<8x48xf32>
    %666 = math.exp %665 : vector<8x48xf32>
    %cst_150 = arith.constant 1.000000e+00 : f32
    %667 = vector.broadcast %cst_150 : f32 to vector<8x48xf32>
    %668 = arith.addf %667, %666 : vector<8x48xf32>
    %669 = arith.divf %667, %668 : vector<8x48xf32>
    %670 = vector.extract_strided_slice %663 {offsets = [0, 48], sizes = [8, 16], strides = [1, 1]} : vector<8x64xf32> to vector<8x16xf32>
    %671 = math.tanh %670 : vector<8x16xf32>
    %672 = vector.extract_strided_slice %669 {offsets = [0, 16], sizes = [8, 16], strides = [1, 1]} : vector<8x48xf32> to vector<8x16xf32>
    %673 = arith.mulf %672, %651 : vector<8x16xf32>
    %674 = vector.extract_strided_slice %669 {offsets = [0, 0], sizes = [8, 16], strides = [1, 1]} : vector<8x48xf32> to vector<8x16xf32>
    %675 = arith.mulf %674, %671 : vector<8x16xf32>
    %676 = arith.addf %673, %675 : vector<8x16xf32>
    %677 = vector.extract_strided_slice %669 {offsets = [0, 32], sizes = [8, 16], strides = [1, 1]} : vector<8x48xf32> to vector<8x16xf32>
    %678 = math.tanh %676 : vector<8x16xf32>
    %679 = arith.mulf %677, %678 : vector<8x16xf32>
    %680 = vector.extract_strided_slice %499 {offsets = [28, 0], sizes = [4, 64], strides = [1, 1]} : vector<32x64xf32> to vector<4x64xf32>
    %681 = vector.extract_strided_slice %679 {offsets = [0, 0], sizes = [4, 16], strides = [1, 1]} : vector<8x16xf32> to vector<4x16xf32>
    %cst_151 = arith.constant dense<0.000000e+00> : vector<4x64xf32>
    %682 = tpu.matmul %681, %490, %cst_151 {dimension_numbers = #tpu.dot_dimension_numbers<[1], [0], [0], [1], [0, 0, 1, 1], [], []>} : vector<4x16xf32>, vector<16x64xf32>, vector<4x64xf32> -> vector<4x64xf32>
    %683 = arith.addf %680, %682 : vector<4x64xf32>
    %684 = vector.extract_strided_slice %502 {offsets = [0, 0], sizes = [4, 64], strides = [1, 1]} : vector<32x64xf32> to vector<4x64xf32>
    %685 = vector.extract_strided_slice %679 {offsets = [4, 0], sizes = [4, 16], strides = [1, 1]} : vector<8x16xf32> to vector<4x16xf32>
    %cst_152 = arith.constant dense<0.000000e+00> : vector<4x64xf32>
    %686 = tpu.matmul %685, %492, %cst_152 {dimension_numbers = #tpu.dot_dimension_numbers<[1], [0], [0], [1], [0, 0, 1, 1], [], []>} : vector<4x16xf32>, vector<16x64xf32>, vector<4x64xf32> -> vector<4x64xf32>
    %687 = arith.addf %684, %686 : vector<4x64xf32>
    %688 = tpu.concatenate %683, %687 in 0 : vector<4x64xf32>, vector<4x64xf32> -> vector<8x64xf32>
    %689 = vector.extract_strided_slice %688 {offsets = [0, 0], sizes = [8, 48], strides = [1, 1]} : vector<8x64xf32> to vector<8x48xf32>
    %690 = arith.negf %689 : vector<8x48xf32>
    %691 = math.exp %690 : vector<8x48xf32>
    %cst_153 = arith.constant 1.000000e+00 : f32
    %692 = vector.broadcast %cst_153 : f32 to vector<8x48xf32>
    %693 = arith.addf %692, %691 : vector<8x48xf32>
    %694 = arith.divf %692, %693 : vector<8x48xf32>
    %695 = vector.extract_strided_slice %688 {offsets = [0, 48], sizes = [8, 16], strides = [1, 1]} : vector<8x64xf32> to vector<8x16xf32>
    %696 = math.tanh %695 : vector<8x16xf32>
    %697 = vector.extract_strided_slice %694 {offsets = [0, 16], sizes = [8, 16], strides = [1, 1]} : vector<8x48xf32> to vector<8x16xf32>
    %698 = arith.mulf %697, %676 : vector<8x16xf32>
    %699 = vector.extract_strided_slice %694 {offsets = [0, 0], sizes = [8, 16], strides = [1, 1]} : vector<8x48xf32> to vector<8x16xf32>
    %700 = arith.mulf %699, %696 : vector<8x16xf32>
    %701 = arith.addf %698, %700 : vector<8x16xf32>
    %702 = vector.extract_strided_slice %694 {offsets = [0, 32], sizes = [8, 16], strides = [1, 1]} : vector<8x48xf32> to vector<8x16xf32>
    %703 = math.tanh %701 : vector<8x16xf32>
    %704 = arith.mulf %702, %703 : vector<8x16xf32>
    %c0_154 = arith.constant 0 : index
    %c0_155 = arith.constant 0 : index
    %705 = vector.load %arg18[%c0_154, %c0_155] : memref<8x16xf32, #tpu.memory_space<vmem>>, vector<8x16xf32>
    tpu.vector_store %arg18[%c0_154, %c0_155], %704 {strides = array<i32>} : memref<8x16xf32, #tpu.memory_space<vmem>>, vector<8x16xf32>,
    %c0_156 = arith.constant 0 : index
    %c0_157 = arith.constant 0 : index
    %706 = vector.load %arg19[%c0_156, %c0_157] : memref<8x16xf32, #tpu.memory_space<vmem>>, vector<8x16xf32>
    tpu.vector_store %arg19[%c0_156, %c0_157], %701 {strides = array<i32>} : memref<8x16xf32, #tpu.memory_space<vmem>>, vector<8x16xf32>,
    %707 = vector.extract_strided_slice %529 {offsets = [0, 0], sizes = [4, 16], strides = [1, 1]} : vector<8x16xf32> to vector<4x16xf32>
    %708 = vector.extract_strided_slice %554 {offsets = [0, 0], sizes = [4, 16], strides = [1, 1]} : vector<8x16xf32> to vector<4x16xf32>
    %709 = vector.extract_strided_slice %579 {offsets = [0, 0], sizes = [4, 16], strides = [1, 1]} : vector<8x16xf32> to vector<4x16xf32>
    %710 = vector.extract_strided_slice %604 {offsets = [0, 0], sizes = [4, 16], strides = [1, 1]} : vector<8x16xf32> to vector<4x16xf32>
    %711 = vector.extract_strided_slice %629 {offsets = [0, 0], sizes = [4, 16], strides = [1, 1]} : vector<8x16xf32> to vector<4x16xf32>
    %712 = vector.extract_strided_slice %654 {offsets = [0, 0], sizes = [4, 16], strides = [1, 1]} : vector<8x16xf32> to vector<4x16xf32>
    %713 = vector.extract_strided_slice %679 {offsets = [0, 0], sizes = [4, 16], strides = [1, 1]} : vector<8x16xf32> to vector<4x16xf32>
    %714 = vector.extract_strided_slice %704 {offsets = [0, 0], sizes = [4, 16], strides = [1, 1]} : vector<8x16xf32> to vector<4x16xf32>
    %715 = tpu.concatenate %707, %708, %709, %710, %711, %712, %713, %714 in 0 : vector<4x16xf32>, vector<4x16xf32>, vector<4x16xf32>, vector<4x16xf32>, vector<4x16xf32>, vector<4x16xf32>, vector<4x16xf32>, vector<4x16xf32> -> vector<32x16xf32>
    %716 = vector.extract_strided_slice %704 {offsets = [4, 0], sizes = [4, 16], strides = [1, 1]} : vector<8x16xf32> to vector<4x16xf32>
    %717 = vector.extract_strided_slice %679 {offsets = [4, 0], sizes = [4, 16], strides = [1, 1]} : vector<8x16xf32> to vector<4x16xf32>
    %718 = vector.extract_strided_slice %654 {offsets = [4, 0], sizes = [4, 16], strides = [1, 1]} : vector<8x16xf32> to vector<4x16xf32>
    %719 = vector.extract_strided_slice %629 {offsets = [4, 0], sizes = [4, 16], strides = [1, 1]} : vector<8x16xf32> to vector<4x16xf32>
    %720 = vector.extract_strided_slice %604 {offsets = [4, 0], sizes = [4, 16], strides = [1, 1]} : vector<8x16xf32> to vector<4x16xf32>
    %721 = vector.extract_strided_slice %579 {offsets = [4, 0], sizes = [4, 16], strides = [1, 1]} : vector<8x16xf32> to vector<4x16xf32>
    %722 = vector.extract_strided_slice %554 {offsets = [4, 0], sizes = [4, 16], strides = [1, 1]} : vector<8x16xf32> to vector<4x16xf32>
    %723 = vector.extract_strided_slice %529 {offsets = [4, 0], sizes = [4, 16], strides = [1, 1]} : vector<8x16xf32> to vector<4x16xf32>
    %724 = tpu.concatenate %716, %717, %718, %719, %720, %721, %722, %723 in 0 : vector<4x16xf32>, vector<4x16xf32>, vector<4x16xf32>, vector<4x16xf32>, vector<4x16xf32>, vector<4x16xf32>, vector<4x16xf32>, vector<4x16xf32> -> vector<32x16xf32>
    %cst_158 = arith.constant 0.000000e+00 : f32
    %725 = vector.broadcast %cst_158 : f32 to vector<32x48xf32>
    %726 = tpu.concatenate %235, %475, %715, %725 in 1 : vector<32x32xf32>, vector<32x32xf32>, vector<32x16xf32>, vector<32x48xf32> -> vector<32x128xf32>
    %c0_159 = arith.constant 0 : index
    %c0_160 = arith.constant 0 : index
    %727 = vector.load %arg12[%c0_159, %c0_160] : memref<32x128xf32, #tpu.memory_space<vmem>>, vector<32x128xf32>
    tpu.vector_store %arg12[%c0_159, %c0_160], %726 {strides = array<i32>} : memref<32x128xf32, #tpu.memory_space<vmem>>, vector<32x128xf32>,
    %728 = tpu.concatenate %244, %484, %724, %725 in 1 : vector<32x32xf32>, vector<32x32xf32>, vector<32x16xf32>, vector<32x48xf32> -> vector<32x128xf32>
    %c0_161 = arith.constant 0 : index
    %c0_162 = arith.constant 0 : index
    %729 = vector.load %arg13[%c0_161, %c0_162] : memref<32x128xf32, #tpu.memory_space<vmem>>, vector<32x128xf32>
    tpu.vector_store %arg13[%c0_161, %c0_162], %728 {strides = array<i32>} : memref<32x128xf32, #tpu.memory_space<vmem>>, vector<32x128xf32>,
    return
  }
  func.func @transform_0(%arg0: i32) -> (i32, i32) {
    %c0_i32 = arith.constant 0 : i32
    %c0_i32_0 = arith.constant 0 : i32
    return %arg0, %c0_i32 : i32, i32
  }
  func.func @transform_1(%arg0: i32) -> (i32, i32) {
    %c0_i32 = arith.constant 0 : i32
    %0 = arith.subi %c0_i32, %arg0 : i32
    %c0_i32_0 = arith.constant 0 : i32
    %c0_i32_1 = arith.constant 0 : i32
    return %0, %c0_i32_0 : i32, i32
  }
  func.func @transform_2(%arg0: i32) -> (i32, i32, i32) {
    %c0_i32 = arith.constant 0 : i32
    %c0_i32_0 = arith.constant 0 : i32
    %c0_i32_1 = arith.constant 0 : i32
    %c0_i32_2 = arith.constant 0 : i32
    return %c0_i32, %c0_i32_0, %c0_i32_1 : i32, i32, i32
  }
  func.func @transform_3(%arg0: i32) -> (i32, i32, i32) {
    %c0_i32 = arith.constant 0 : i32
    %c0_i32_0 = arith.constant 0 : i32
    %c0_i32_1 = arith.constant 0 : i32
    %c0_i32_2 = arith.constant 0 : i32
    return %c0_i32, %c0_i32_0, %c0_i32_1 : i32, i32, i32
  }
  func.func @transform_4(%arg0: i32) -> (i32, i32, i32) {
    %c0_i32 = arith.constant 0 : i32
    %c0_i32_0 = arith.constant 0 : i32
    %c0_i32_1 = arith.constant 0 : i32
    %c0_i32_2 = arith.constant 0 : i32
    return %c0_i32, %c0_i32_0, %c0_i32_1 : i32, i32, i32
  }
  func.func @transform_5(%arg0: i32) -> (i32, i32, i32) {
    %c0_i32 = arith.constant 0 : i32
    %c0_i32_0 = arith.constant 0 : i32
    %c0_i32_1 = arith.constant 0 : i32
    %c0_i32_2 = arith.constant 0 : i32
    return %c0_i32, %c0_i32_0, %c0_i32_1 : i32, i32, i32
  }
  func.func @transform_6(%arg0: i32) -> (i32, i32, i32) {
    %c0_i32 = arith.constant 0 : i32
    %c0_i32_0 = arith.constant 0 : i32
    %c0_i32_1 = arith.constant 0 : i32
    %c0_i32_2 = arith.constant 0 : i32
    return %c0_i32, %c0_i32_0, %c0_i32_1 : i32, i32, i32
  }
  func.func @transform_7(%arg0: i32) -> (i32, i32, i32) {
    %c0_i32 = arith.constant 0 : i32
    %c0_i32_0 = arith.constant 0 : i32
    %c0_i32_1 = arith.constant 0 : i32
    %c0_i32_2 = arith.constant 0 : i32
    return %c0_i32, %c0_i32_0, %c0_i32_1 : i32, i32, i32
  }
  func.func @transform_8(%arg0: i32) -> (i32, i32, i32) {
    %c0_i32 = arith.constant 0 : i32
    %c0_i32_0 = arith.constant 0 : i32
    %c0_i32_1 = arith.constant 0 : i32
    %c0_i32_2 = arith.constant 0 : i32
    return %c0_i32, %c0_i32_0, %c0_i32_1 : i32, i32, i32
  }
  func.func @transform_9(%arg0: i32) -> (i32, i32, i32) {
    %c0_i32 = arith.constant 0 : i32
    %c0_i32_0 = arith.constant 0 : i32
    %c0_i32_1 = arith.constant 0 : i32
    %c0_i32_2 = arith.constant 0 : i32
    return %c0_i32, %c0_i32_0, %c0_i32_1 : i32, i32, i32
  }
  func.func @transform_10(%arg0: i32) -> (i32, i32, i32) {
    %c0_i32 = arith.constant 0 : i32
    %c0_i32_0 = arith.constant 0 : i32
    %c0_i32_1 = arith.constant 0 : i32
    %c0_i32_2 = arith.constant 0 : i32
    return %c0_i32, %c0_i32_0, %c0_i32_1 : i32, i32, i32
  }
  func.func @transform_11(%arg0: i32) -> (i32, i32) {
    %c0_i32 = arith.constant 0 : i32
    %c0_i32_0 = arith.constant 0 : i32
    return %arg0, %c0_i32 : i32, i32
  }
  func.func @transform_12(%arg0: i32) -> (i32, i32) {
    %c0_i32 = arith.constant 0 : i32
    %0 = arith.subi %c0_i32, %arg0 : i32
    %c0_i32_0 = arith.constant 0 : i32
    %c0_i32_1 = arith.constant 0 : i32
    return %0, %c0_i32_0 : i32, i32
  }
}

</mosaic_0001>

<bundles_post_ra>
// kernel: model_forward.3
= control target key start
LH: loop header
LB: loop body
LE: loop exit
PB: predicated region body
PF: predicated region fallthrough
CT: control target
= control target key end

     0   :  { %vm262_vm0 = vcmask 261120   ;;  %s710_s3 = inlined_call_operand.vmem [shape: f32[128,32], index: 3, kind: input, shape index: {}]   ;;  %s711_s2 = inlined_call_operand.vmem [shape: f32[128,32], index: 2, kind: input, shape index: {}]   ;;  %s712_s1 = inlined_call_operand.vmem [shape: f32[32,128], index: 1, kind: input, shape index: {}]   ;;  %s713_s0 = inlined_call_operand.vmem [shape: f32[32,128], index: 0, kind: input, shape index: {}]   ;;  %s714_s5 = inlined_call_operand.vmem [shape: f32[32,128], index: 5, kind: input, shape index: {}]   ;;  %s715_s4 = inlined_call_operand.vmem [shape: f32[1,32], index: 4, kind: input, shape index: {}]   ;;  %s716_s6 = inlined_call_operand.vmem [shape: f32[1,128], index: 6, kind: input, shape index: {}]   ;;  %s717_s7 = inlined_call_operand.vmem [shape: f32[32,128], index: 7, kind: output, shape index: {}]  }
   0x1   :  { %v65_v0 = vld [vmem:[%s710_s3 + $0x78] sm:$0xff]  ;;  %v64_v2 = vld [vmem:[%s710_s3 + $0x70] sm:$0xff]  ;;  %v63_v4 = vld [vmem:[%s710_s3 + $0x68] sm:$0xff] }
   0x2   :  { %v45_v1 = vld [vmem:[%s711_s2 + $0x78] sm:$0xff]  ;;  %422 = vmatprep.subr.mxu0 %v65_v0  ;;  %v44_v3 = vld [vmem:[%s711_s2 + $0x70] sm:$0xff]  ;;  %v43_v5 = vld [vmem:[%s711_s2 + $0x68] sm:$0xff] }
   0x3   :  { %460 = vmatprep.subr.mxu1 %v45_v1  ;;  %423 = vmatpush3.msra.mxu0 %v65_v0  ;;  %v62_v6 = vld [vmem:[%s710_s3 + $0x60] sm:$0xff]  ;;  %v61_v8 = vld [vmem:[%s710_s3 + $0x58] sm:$0xff]  ;;  %v60_v10 = vld [vmem:[%s710_s3 + $0x50] sm:$0xff] }
   0x4   :  { %461 = vmatpush3.msra.mxu1 %v45_v1  ;;  %424 = vmatprep.subr.mxu0 %v64_v2  ;;  %v42_v7 = vld [vmem:[%s711_s2 + $0x60] sm:$0xff]  ;;  %v41_v9 = vld [vmem:[%s711_s2 + $0x58] sm:$0xff]  ;;  %v40_v11 = vld [vmem:[%s711_s2 + $0x50] sm:$0xff] }
   0x5   :  { %462 = vmatprep.subr.mxu1 %v44_v3  ;;  %425 = vmatpush3.msra.mxu0 %v64_v2  ;;  %v59_v12 = vld [vmem:[%s710_s3 + $0x48] sm:$0xff]  ;;  %v58_v14 = vld [vmem:[%s710_s3 + $0x40] sm:$0xff]  ;;  %v57_v16 = vld [vmem:[%s710_s3 + $0x38] sm:$0xff] }
   0x6   :  { %463 = vmatpush3.msra.mxu1 %v44_v3  ;;  %426 = vmatprep.subr.mxu0 %v63_v4  ;;  %v39_v13 = vld [vmem:[%s711_s2 + $0x48] sm:$0xff]  ;;  %v38_v15 = vld [vmem:[%s711_s2 + $0x40] sm:$0xff]  ;;  %v37_v17 = vld [vmem:[%s711_s2 + $0x38] sm:$0xff] }
   0x7   :  { %464 = vmatprep.subr.mxu1 %v43_v5  ;;  %427 = vmatpush3.msra.mxu0 %v63_v4  ;;  %v56_v18 = vld [vmem:[%s710_s3 + $0x30] sm:$0xff]  ;;  %v55_v20 = vld [vmem:[%s710_s3 + $0x28] sm:$0xff]  ;;  %v54_v22 = vld [vmem:[%s710_s3 + $0x20] sm:$0xff] }
   0x8   :  { %465 = vmatpush3.msra.mxu1 %v43_v5  ;;  %428 = vmatprep.subr.mxu0 %v62_v6  ;;  %v36_v19 = vld [vmem:[%s711_s2 + $0x30] sm:$0xff]  ;;  %v35_v21 = vld [vmem:[%s711_s2 + $0x28] sm:$0xff]  ;;  %v34_v23 = vld [vmem:[%s711_s2 + $0x20] sm:$0xff] }
   0x9   :  { %466 = vmatprep.subr.mxu1 %v42_v7  ;;  %429 = vmatpush3.msra.mxu0 %v62_v6  ;;  %v53_v24 = vld [vmem:[%s710_s3 + $0x18] sm:$0xff]  ;;  %v52_v26 = vld [vmem:[%s710_s3 + $0x10] sm:$0xff]  ;;  %v51_v28 = vld [vmem:[%s710_s3 + $0x8] sm:$0xff] }
   0xa   :  { %467 = vmatpush3.msra.mxu1 %v42_v7  ;;  %430 = vmatprep.subr.mxu0 %v61_v8  ;;  %v33_v25 = vld [vmem:[%s711_s2 + $0x18] sm:$0xff]  ;;  %v32_v27 = vld [vmem:[%s711_s2 + $0x10] sm:$0xff]  ;;  %v31_v29 = vld [vmem:[%s711_s2 + $0x8] sm:$0xff] }
   0xb   :  { %468 = vmatprep.subr.mxu1 %v41_v9  ;;  %431 = vmatpush3.msra.mxu0 %v61_v8  ;;  %v50_v30 = vld [vmem:[%s710_s3] sm:$0xff]  ;;  %v47_v34 = vld [vmem:[%s712_s1 + $0x8] sm:$0xff]  ;;  %v48_v36 = vld [vmem:[%s712_s1 + $0x10] sm:$0xff] }
   0xc   :  { %469 = vmatpush3.msra.mxu1 %v41_v9  ;;  %432 = vmatprep.subr.mxu0 %v60_v10  ;;  %v30_v31 = vld [vmem:[%s711_s2] sm:$0xff]  ;;  %v27_v35 = vld [vmem:[%s713_s0 + $0x8] sm:$0xff]  ;;  %v28_v37 = vld [vmem:[%s713_s0 + $0x10] sm:$0xff] }
   0xd   :  { %470 = vmatprep.subr.mxu1 %v40_v11  ;;  %433 = vmatpush3.msra.mxu0 %v60_v10  ;;  %v46_v32 = vld [vmem:[%s712_s1] sm:$0xff]  ;;  %v49_v38 = vld [vmem:[%s712_s1 + $0x18] sm:$0xff]  ;;  %v253_v41 = vld [vmem:[%s714_s5 + $0x10] sm:$0xff] }
   0xe   :  { %471 = vmatpush3.msra.mxu1 %v40_v11  ;;  %434 = vmatprep.subr.mxu0 %v59_v12  ;;  %v26_v33 = vld [vmem:[%s713_s0] sm:$0xff]  ;;  %v29_v39 = vld [vmem:[%s713_s0 + $0x18] sm:$0xff]  ;;  %v252_v42 = vld [vmem:[%s714_s5 + $0x8] sm:$0xff] }
   0xf   :  { %472 = vmatprep.subr.mxu1 %v39_v13  ;;  %435 = vmatpush3.msra.mxu0 %v59_v12  ;;  %v254_v40 = vld [vmem:[%s714_s5 + $0x18] sm:$0xff]  ;;  %v251_v43 = vld [vmem:[%s714_s5] sm:$0xff] }
  0x10   :  { %473 = vmatpush3.msra.mxu1 %v39_v13  ;;  %436 = vmatprep.subr.mxu0 %v58_v14  ;;  %v368_v47 = vld [vmem:[%s715_s4] ss:$0 sm:$0xff] }
  0x11   :  { %474 = vmatprep.subr.mxu1 %v38_v15  ;;  %437 = vmatpush3.msra.mxu0 %v58_v14  ;;  %v369_v1 = vld [vmem:[%s716_s6] ss:$0 sm:$0xff] }
  0x12   :  { %475 = vmatpush3.msra.mxu1 %v38_v15  ;;  %438 = vmatprep.subr.mxu0 %v57_v16 }
  0x13   :  { %476 = vmatprep.subr.mxu1 %v37_v17  ;;  %439 = vmatpush3.msra.mxu0 %v57_v16 }
  0x14   :  { %477 = vmatpush3.msra.mxu1 %v37_v17  ;;  %440 = vmatprep.subr.mxu0 %v56_v18 }
  0x15   :  { %478 = vmatprep.subr.mxu1 %v36_v19  ;;  %441 = vmatpush3.msra.mxu0 %v56_v18 }
  0x16   :  { %479 = vmatpush3.msra.mxu1 %v36_v19  ;;  %442 = vmatprep.subr.mxu0 %v55_v20 }
  0x17   :  { %480 = vmatprep.subr.mxu1 %v35_v21  ;;  %443 = vmatpush3.msra.mxu0 %v55_v20 }
  0x18   :  { %481 = vmatpush3.msra.mxu1 %v35_v21  ;;  %444 = vmatprep.subr.mxu0 %v54_v22 }
  0x19   :  { %482 = vmatprep.subr.mxu1 %v34_v23  ;;  %445 = vmatpush3.msra.mxu0 %v54_v22 }
  0x1a   :  { %483 = vmatpush3.msra.mxu1 %v34_v23  ;;  %446 = vmatprep.subr.mxu0 %v53_v24 }
  0x1b   :  { %484 = vmatprep.subr.mxu1 %v33_v25  ;;  %447 = vmatpush3.msra.mxu0 %v53_v24 }
  0x1c   :  { %485 = vmatpush3.msra.mxu1 %v33_v25  ;;  %448 = vmatprep.subr.mxu0 %v52_v26 }
  0x1d   :  { %486 = vmatprep.subr.mxu1 %v32_v27  ;;  %449 = vmatpush3.msra.mxu0 %v52_v26 }
  0x1e   :  { %487 = vmatpush3.msra.mxu1 %v32_v27  ;;  %450 = vmatprep.subr.mxu0 %v51_v28 }
  0x1f   :  { %488 = vmatprep.subr.mxu1 %v31_v29  ;;  %451 = vmatpush3.msra.mxu0 %v51_v28 }
  0x20   :  { %489 = vmatpush3.msra.mxu1 %v31_v29  ;;  %452 = vmatprep.subr.mxu0 %v50_v30 }
  0x21   :  { %490 = vmatprep.subr.mxu1 %v30_v31  ;;  %453 = vmatpush3.msra.mxu0 %v50_v30 }
  0x22   :  { %454 = vmatprep.mubr.f32.mxu0 %v46_v32  ;;  %491 = vmatpush3.msra.mxu1 %v30_v31 }
  0x23   :  { %492 = vmatprep.mubr.f32.mxu1 %v26_v33  ;;  %455 = vmatmul.mubr.f32.vlgmr.msra.gmra.mxu0 %v47_v34 }
  0x24   :  { %493 = vmatmul.mubr.f32.vlgmr.msra.gmra.mxu1 %v27_v35  ;;  %457 = vmatprep.mubr.f32.mxu0 %v48_v36 }
  0x25   :  { %495 = vmatprep.mubr.f32.mxu1 %v28_v37  ;;  %498 = vmatprep.subr.mxu0 %v254_v40 }
  0x26   :  { %512 = vmatprep.subr.mxu1 %v254_v40  ;;  %499 = vmatpush3.msra.mxu0 %v254_v40 }
  0x27   :  { %458 = vmatmul.mubr.f32.gmra.mxu0 %v49_v38  ;;  %516 = vmatpush3.msra.mxu1 %v254_v40 }
  0x28   :  { %496 = vmatmul.mubr.f32.gmra.mxu1 %v29_v39  ;;  %500 = vmatprep.subr.mxu0 %v253_v41 }
  0x29   :  { %513 = vmatprep.subr.mxu1 %v253_v41  ;;  %501 = vmatpush3.msra.mxu0 %v253_v41 }
  0x2a   :  { %517 = vmatpush3.msra.mxu1 %v253_v41  ;;  %502 = vmatprep.subr.mxu0 %v252_v42 }
  0x2b   :  { %514 = vmatprep.subr.mxu1 %v252_v42  ;;  %503 = vmatpush3.msra.mxu0 %v252_v42 }
  0x2c   :  { %518 = vmatpush3.msra.mxu1 %v252_v42  ;;  %504 = vmatprep.subr.mxu0 %v251_v43 }
  0x2d   :  { %515 = vmatprep.subr.mxu1 %v251_v43  ;;  %505 = vmatpush3.msra.mxu0 %v251_v43 }
  0x2e   :  { %519 = vmatpush3.msra.mxu1 %v251_v43 }
  0xe3   :  { %v456_v44 = vpop.f32.mrf.mxu0 }
  0xe4   :  { %v494_v45 = vpop.f32.mrf.mxu1 }
  0xe5   :  { %v223_v46 = vadd.f32 %v494_v45, %v456_v44  ;;  %v132_v48 = vpop.f32.mrf.mxu0 }
  0xe6   :  { %v217_v49 = vpop.f32.mrf.mxu1 }
  0xe7   :  { %v218_v50 = vadd.f32 %v217_v49, %v132_v48  ;;  %v244_v51 = vadd.f32 %v368_v47, %v223_v46  ;;  %v459_v52 = vpop.f32.mrf.mxu0 }
  0xe8   :  { %v497_v53 = vpop.f32.mrf.mxu1 }
  0xe9   :  { %v243_v54 = vadd.f32 %v368_v47, %v218_v50  ;;  %v233_v55 = vadd.f32 %v497_v53, %v459_v52  ;;  %v142_v56 = vpop.f32.mrf.mxu0  ;;  %v248_v60 = vmax.f32 %v244_v51, 0.0 }
  0xea   :  { %v227_v57 = vpop.f32.mrf.mxu1 }
  0xeb   :  { %v247_v58 = vmax.f32 %v243_v54, 0.0  ;;  %v228_v59 = vadd.f32 %v227_v57, %v142_v56  ;;  %v246_v61 = vadd.f32 %v368_v47, %v233_v55 }
  0xed   :  { %v245_v62 = vadd.f32 %v368_v47, %v228_v59  ;;  %506 = vmatprep.mubr.msk.f32.mxu0 %vm262_vm0, %v247_v58  ;;  %v250_v0 = vmax.f32 %v246_v61, 0.0 }
  0xee   :  { %507 = vmatmul.mubr.msk.f32.vlgmr.msra.gmra.mxu0 %vm262_vm0, %v248_v60 }
  0xef   :  { %v249_v63 = vmax.f32 %v245_v62, 0.0 }
  0xf1   :  { %509 = vmatprep.mubr.msk.f32.mxu1 %vm262_vm0, %v249_v63 }
  0xf2   :  { %510 = vmatmul.mubr.msk.f32.vlgmr.msra.gmra.mxu1 %vm262_vm0, %v250_v0 }
 0x1ae   :  { %v508_v2 = vpop.f32.mrf.mxu0 }
 0x1af   :  { %v347_v3 = vadd.f32 %v508_v2, %v369_v1 }
 0x1b0   :  { %v341_v4 = vpop.f32.mrf.mxu0 }
 0x1b1   :  { %361 = vst [vmem:[%s717_s7 + $0x8] sm:$0xff] %v347_v3  ;;  %v342_v5 = vadd.f32 %v369_v1, %v341_v4 }
 0x1b2   :  { %v511_v6 = vpop.f32.mrf.mxu1 }
 0x1b3   :  { %360 = vst [vmem:[%s717_s7] sm:$0xff] %v342_v5  ;;  %v357_v7 = vadd.f32 %v511_v6, %v369_v1 }
 0x1b4   :  { %v351_v8 = vpop.f32.mrf.mxu1 }
 0x1b5   :  { %363 = vst [vmem:[%s717_s7 + $0x18] sm:$0xff] %v357_v7  ;;  %v352_v9 = vadd.f32 %v369_v1, %v351_v8 }
 0x1b7   :  { %362 = vst [vmem:[%s717_s7 + $0x10] sm:$0xff] %v352_v9 }

// kernel: model_forward.2
= control target key start
LH: loop header
LB: loop body
LE: loop exit
PB: predicated region body
PF: predicated region fallthrough
CT: control target
= control target key end

     0   :  { %18 = vsyncpa [#allocation9], 0  ;;  %s7899_s0 = inlined_call_operand.vmem [shape: f32[32,16], index: 0, kind: input, shape index: {}, may-alias: {0,1}]   ;;  %s7900_s1 = inlined_call_operand.vmem [shape: f32[32,16], index: 1, kind: input, shape index: {}, may-alias: {0,1}]   ;;  %s7901_s2 = inlined_call_operand.hbm [shape: f32[2,16,128], index: 2, kind: input, shape index: {}]   ;;  %s7902_s3 = inlined_call_operand.vmem [shape: f32[2,32,128], index: 3, kind: input, shape index: {}]   ;;  %s7903_s4 = inlined_call_operand.vmem [shape: f32[2,1,128], index: 4, kind: input, shape index: {}]   ;;  %s7904_s5 = inlined_call_operand.vmem [shape: f32[2,32,128], index: 5, kind: input, shape index: {}]   ;;  %s7905_s6 = inlined_call_operand.vmem [shape: f32[2,32,128], index: 6, kind: input, shape index: {}]   ;;  %s7906_s7 = inlined_call_operand.vmem [shape: f32[2,1,128], index: 7, kind: input, shape index: {}]   ;;  %s7907_s8 = inlined_call_operand.vmem [shape: f32[2,32,64], index: 8, kind: input, shape index: {}]   ;;  %s7908_s9 = inlined_call_operand.hbm [shape: f32[2,16,64], index: 9, kind: input, shape index: {}]   ;;  %s7909_s10 = inlined_call_operand.vmem [shape: f32[2,1,64], index: 10, kind: input, shape index: {}]   ;;  %s7910_s11 = inlined_call_operand.vmem [shape: f32[32,128], index: 11, kind: output, shape index: {0}]   ;;  %s7911_s12 = inlined_call_operand.vmem [shape: f32[32,128], index: 12, kind: output, shape index: {1}]  }
   0x1   :  { %19 = vsyncpa [#allocation11], 0  ;;  %s6596_s21 = smov [#allocation8]  }
   0x2   :  { %s37_s22 = sshll.u32 %s6596_s21, 4  ;;  %s38_s22 = int_to_ptr.vmem [resolvable:$true] %s37_s22 }
   0x3   :  { %s6560_s23 = scalar_lea.vmem %s38_s22, 512  ;;  %p6565_p1 = scmp.lt.s32.totalorder %s38_s22, %s38_s22 }
   0x4   :  { %p6561_p0 = scmp.ne.s32.totalorder %s38_s22, %s6560_s23  ;;  %p6566_p2 = scmp.lt.s32.totalorder %s6560_s23, %s6560_s23 }
   0x6   :  { %p6567_p3 = por %p6566_p2, %p6565_p1 }
   0x8   :  { %p6568_p4 = pnand %p6567_p3, %p6561_p0 }
   0xa   :  { %6571 = shalt.err (!%p6568_p4)
}
   0xb   :  { %s6597_s24 = smov 128   ;;  %s6598_s25 = smov 8  }
   0xc   :  { %43 = dma.hbm_to_vmem [thread:$0]  %s7901_s2, 512, %s38_s22, [#allocation9], %s6597_s24, %s6597_s24, %s6598_s25  }
   0xd   :  { %s6599_s28 = smov [#allocation10]  }
   0xe   :  { %s61_s29 = sshll.u32 %s6599_s28, 4  ;;  %s62_s29 = int_to_ptr.vmem [resolvable:$true] %s61_s29 }
   0xf   :  { %s6580_s30 = scalar_lea.vmem %s62_s29, 512  ;;  %p6585_p6 = scmp.lt.s32.totalorder %s62_s29, %s62_s29 }
  0x10   :  { %p6581_p5 = scmp.ne.s32.totalorder %s62_s29, %s6580_s30  ;;  %p6586_p7 = scmp.lt.s32.totalorder %s6580_s30, %s6580_s30 }
  0x12   :  { %p6587_p8 = por %p6586_p7, %p6585_p6 }
  0x14   :  { %p6588_p9 = pnand %p6587_p8, %p6581_p5 }
  0x16   :  { %6591 = shalt.err (!%p6588_p9)
}
  0x17   :  { %67 = dma.hbm_to_vmem [thread:$0]  %s7908_s9, 512, %s62_s29, [#allocation11], %s6597_s24, %s6597_s24, %s6598_s25  }
  0x18   :  { %6592 = dma.done.wait [#allocation9], 512  }
  0x19   :  { %6593 = vsyncadd [#allocation9], 4294966784 }
  0x1a   :  { %6594 = dma.done.wait [#allocation11], 512  }
  0x1b   :  { %6595 = vsyncadd [#allocation11], 4294966784  ;;  %vm113_vm0 = vcmask 130048   ;;  %vm108_vm1 = vcmask 261120   ;;  %v6600_v0 = vmov 0.0   ;;  %v125_v1 = vld [vmem:[#allocation8 + $0x8] sm:$0xff] }
  0x1c   :  { %114 = vst.msk [vmem:[#allocation6] sm:$0xff] %vm113_vm0, %v6600_v0  ;;  %115 = vst.msk [vmem:[#allocation7] sm:$0xff] %vm113_vm0, %v6600_v0  ;;  %v128_v2 = vld [vmem:[#allocation8 + $0x18] sm:$0xff]  ;;  %v124_v3 = vld [vmem:[#allocation8] sm:$0xff]  ;;  %5808 = vmatprep.subr.mxu0 %v125_v1  ;;  %vm6601_vm2 = vmmov 0   ;;  %vm502_vm3 = vcmask 1043456  }
  0x1d   :  { %109 = vst.msk [vmem:[#allocation2] sm:$0xff] %vm108_vm1, %v6600_v0  ;;  %110 = vst.msk [vmem:[#allocation3] sm:$0xff] %vm108_vm1, %v6600_v0  ;;  %5818 = vmatprep.subr.mxu1 %v128_v2  ;;  %v127_v4 = vld [vmem:[#allocation8 + $0x10] sm:$0xff]  ;;  %5809 = vmatpush3.msra.mxu0 %v125_v1  ;;  %v117_v7 = vld [vmem:[%s7899_s0 + $0x8] sm:$0xff]  ;;  %s6603_s26 = smov 64   ;;  %s6605_s15 = smov 80  }
  0x1e   :  { %111 = vst.msk [vmem:[#allocation4] sm:$0xff] %vm108_vm1, %v6600_v0  ;;  %112 = vst.msk [vmem:[#allocation5] sm:$0xff] %vm108_vm1, %v6600_v0  ;;  %v116_v5 = vld [vmem:[%s7899_s0] sm:$0xff]  ;;  %5819 = vmatpush3.msra.mxu1 %v128_v2  ;;  %5810 = vmatprep.subr.mxu0 %v124_v3  ;;  %v121_v8 = vld [vmem:[%s7900_s1 + $0x8] sm:$0xff]  ;;  %vm5335_vm4 = vcmask 523264   ;;  %vm5340_vm5 = vcmask 654336  }
  0x1f   :  { %v120_v6 = vld [vmem:[%s7900_s1] sm:$0xff]  ;;  %5820 = vmatprep.subr.mxu1 %v127_v4  ;;  %5811 = vmatpush3.msra.mxu0 %v124_v3  ;;  %v6708_v9 = vld [vmem:[%s7902_s3 + $0x18] sm:$0xff]  ;;  %v118_v11 = vld [vmem:[%s7899_s0 + $0x10] sm:$0xff]  ;;  %s6607_s19 = smov 112  }
  0x20   :  { %5812 = vmatprep.mubr.msk.f32.mxu0 %vm113_vm0, %v116_v5  ;;  %5821 = vmatpush3.msra.mxu1 %v127_v4  ;;  %v6713_v10 = vld [vmem:[%s7902_s3 + $0x38] sm:$0xff]  ;;  %v122_v12 = vld [vmem:[%s7900_s1 + $0x10] sm:$0xff]  ;;  %v6752_v17 = vld [vmem:[%s7902_s3 + $0x8] sm:$0xff] }
  0x21   :  { %5822 = vmatprep.mubr.msk.f32.mxu1 %vm113_vm0, %v120_v6  ;;  %5813 = vmatmul.mubr.msk.f32.vlgmr.msra.gmra.mxu0 %vm113_vm0, %v117_v7  ;;  %v6730_v13 = vld [vmem:[%s7902_s3 + $0x10] sm:$0xff]  ;;  %v119_v15 = vld [vmem:[%s7899_s0 + $0x18] sm:$0xff]  ;;  %v6757_v18 = vld [vmem:[%s7902_s3 + $0x28] sm:$0xff] }
  0x22   :  { %5823 = vmatmul.mubr.msk.f32.vlgmr.msra.gmra.mxu1 %vm113_vm0, %v121_v8  ;;  %5828 = vmatprep.subr.mxu0 %v6600_v0  ;;  %v6735_v14 = vld [vmem:[%s7902_s3 + $0x30] sm:$0xff]  ;;  %v123_v16 = vld [vmem:[%s7900_s1 + $0x18] sm:$0xff]  ;;  %v6766_v20 = vld [vmem:[%s7902_s3] sm:$0xff] }
  0x23   :  { %5839 = vmatprep.subr.mxu1 %v6600_v0  ;;  %5829 = vmatpush3.msra.mxu0 %v6708_v9  ;;  %v6773_v21 = vld [vmem:[%s7902_s3 + $0x20] sm:$0xff] }
  0x24   :  { %5840 = vmatpush3.msra.mxu1 %v6713_v10  ;;  %5830 = vmatprep.subr.mxu0 %v6600_v0  ;;  %v348_v19 = vld [vmem:[#allocation2] sm:$0xff]  ;;  %v349_v50 = vld [vmem:[#allocation3] sm:$0xff] }
  0x25   :  { %5841 = vmatprep.subr.mxu1 %v6600_v0  ;;  %5815 = vmatprep.mubr.msk.f32.mxu0 %vm113_vm0, %v118_v11  ;;  %v425_v22 = vrot.slane %v348_v19, 4  ;;  %v5440_v23 = vld [vmem:[%s7903_s4] ss:$0 sm:$0xff]  ;;  %v5445_v24 = vld [vmem:[%s7903_s4 + $0x1] ss:$0 sm:$0xff]  ;;  %s6602_s4 = smov 32  }
  0x26   :  { %5825 = vmatprep.mubr.msk.f32.mxu1 %vm113_vm0, %v122_v12  ;;  %5831 = vmatpush3.msra.mxu0 %v6730_v13 }
  0x27   :  { %5842 = vmatpush3.msra.mxu1 %v6735_v14  ;;  %5816 = vmatmul.mubr.msk.f32.gmra.mxu0 %vm113_vm0, %v119_v15 }
  0x28   :  { %5826 = vmatmul.mubr.msk.f32.gmra.mxu1 %vm113_vm0, %v123_v16  ;;  %5832 = vmatprep.subr.mxu0 %v6600_v0 }
  0x29   :  { %5843 = vmatprep.subr.mxu1 %v6600_v0  ;;  %5833 = vmatpush3.msra.mxu0 %v6752_v17 }
  0x2a   :  { %5844 = vmatpush3.msra.mxu1 %v6757_v18  ;;  %5834 = vmatprep.subr.mxu0 %v6600_v0 }
  0x2b   :  { %5845 = vmatprep.subr.mxu1 %v6600_v0  ;;  %5835 = vmatpush3.msra.mxu0 %v6766_v20 }
  0x2c   :  { %5836 = vmatprep.mubr.msk.f32.mxu0 %vm6601_vm2, %v6600_v0  ;;  %5846 = vmatpush3.msra.mxu1 %v6773_v21 }
  0x2d   :  { %5847 = vmatprep.mubr.msk.f32.mxu1 %vm6601_vm2, %v6600_v0  ;;  %5837 = vmatmul.mubr.msk.f32.vlgmr.msra.gmra.mxu0 %vm108_vm1, %v348_v19 }
  0x2e   :  { %5848 = vmatmul.mubr.msk.f32.vlgmr.msra.gmra.mxu1 %vm108_vm1, %v425_v22  ;;  %5850 = vmatprep.subr.mxu0 %v6600_v0 }
  0x2f   :  { %5861 = vmatprep.subr.mxu1 %v6600_v0  ;;  %5851 = vmatpush3.msra.mxu0 %v6708_v9 }
  0x30   :  { %5862 = vmatpush3.msra.mxu1 %v6713_v10  ;;  %5852 = vmatprep.subr.mxu0 %v6600_v0 }
  0x31   :  { %5863 = vmatprep.subr.mxu1 %v6600_v0  ;;  %5853 = vmatpush3.msra.mxu0 %v6730_v13 }
  0x32   :  { %5864 = vmatpush3.msra.mxu1 %v6735_v14  ;;  %5854 = vmatprep.subr.mxu0 %v6600_v0 }
  0x33   :  { %5865 = vmatprep.subr.mxu1 %v6600_v0  ;;  %5855 = vmatpush3.msra.mxu0 %v6752_v17 }
  0x34   :  { %5858 = vmatprep.mubr.msk.f32.mxu0 %vm6601_vm2, %v6600_v0  ;;  %5856 = vmatprep.subr.mxu0 %v6600_v0 }
  0x35   :  { %5866 = vmatpush3.msra.mxu1 %v6757_v18  ;;  %5857 = vmatpush3.msra.mxu0 %v6766_v20 }
  0x36   :  { %5867 = vmatprep.subr.mxu1 %v6600_v0  ;;  %5869 = vmatprep.mubr.msk.f32.mxu1 %vm6601_vm2, %v6600_v0 }
  0x37   :  { %5868 = vmatpush3.msra.mxu1 %v6773_v21  ;;  %5872 = vmatprep.subr.mxu0 %v6600_v0 }
  0x38   :  { %5883 = vmatprep.subr.mxu1 %v6600_v0 }
  0xe1   :  { %v5814_v25 = vpop.f32.mrf.mxu0 }
  0xe2   :  { %v5824_v26 = vpop.f32.mrf.mxu1  ;;  %v6813_v27 = vadd.f32 %v5814_v25, %v5440_v23 }
  0xe3   :  { %v6815_v28 = vadd.f32 %v5824_v26, %v5445_v24  ;;  %v226_v29 = vpop.f32.mrf.mxu0 }
  0xe4   :  { %v329_v30 = vpop.f32.mrf.mxu1  ;;  %v6825_v41 = vadd.f32 %v5440_v23, %v226_v29 }
  0xe5   :  { %v6817_v31 = vadd.f32 %v5445_v24, %v329_v30 }
  0xe7   :  { %v5817_v32 = vpop.f32.mrf.mxu0 }
  0xe8   :  { %v5827_v33 = vpop.f32.mrf.mxu1  ;;  %v6819_v34 = vadd.f32 %v5817_v32, %v5440_v23 }
  0xe9   :  { %v236_v35 = vpop.f32.mrf.mxu0  ;;  %v6827_v42 = vadd.f32 %v5827_v33, %v5445_v24 }
  0xea   :  { %v339_v36 = vpop.f32.mrf.mxu1  ;;  %v6821_v37 = vadd.f32 %v5440_v23, %v236_v35 }
  0xeb   :  { %v6823_v38 = vadd.f32 %v5445_v24, %v339_v36 }
  0xed   :  { %v420_v39 = vpop.f32.mrf.mxu0 }
  0xee   :  { %v494_v40 = vpop.f32.mrf.mxu1  ;;  %v424_v46 = vadd.f32 %v420_v39, %v6825_v41 }
  0xef   :  { %v499_v43 = vrot.slane %v494_v40, 4  ;;  %v5838_v45 = vpop.f32.mrf.mxu0 }
  0xf0   :  { %v5849_v44 = vpop.f32.mrf.mxu1 }
  0xf1   :  { %v501_v47 = vadd.f32 %v499_v43, %v6827_v42 }
  0xf3   :  { %v503_v48 = vsel %vm502_vm3, %v424_v46, %v501_v47 }
  0xf4   :  { %6360 = vtanh.f32 %v503_v48  ;;  %v5452_v51 = vmul.f32 -1.442695, %v503_v48 }
  0xf6   :  { %6362 = vpow2.f32 %v5452_v51 }
 0x101   :  { %v6361_v49 = vpop.eup %6360 }
 0x102   :  { %517 = vrot.lane.b32.xlu0 %v6361_v49, %s6602_s4 }
 0x103   :  { %v6363_v52 = vpop.eup %6362 }
 0x104   :  { %v507_v53 = vadd.f32 1.0, %v6363_v52 }
 0x106   :  { %512 = vrot.lane.b32.xlu0 %v349_v50, %s6602_s4  ;;  %6364 = vrcp.f32 %v507_v53 }
 0x113   :  { %v6365_v54 = vpop.eup %6364 }
 0x174   :  { %v518_v55 = vpop.permute.xlu0 %517 }
 0x175   :  { %v520_v56 = vmul.f32 %v6365_v54, %v518_v55 }
 0x177   :  { %522 = vrot.lane.b32.xlu1 %v520_v56, %s6602_s4 }
 0x178   :  { %v513_v57 = vpop.permute.xlu0 %512 }
 0x179   :  { %v515_v58 = vmul.f32 %v6365_v54, %v513_v57 }
 0x1e9   :  { %v523_v59 = vpop.permute.xlu1 %522 }
 0x1ea   :  { %v525_v60 = vadd.f32 %v523_v59, %v515_v58 }
 0x1ec   :  { %6366 = vtanh.f32 %v525_v60 }
 0x1f9   :  { %v6367_v61 = vpop.eup %6366 }
 0x1fa   :  { %528 = vrot.lane.b32.xlu1 %v6367_v61, %s6602_s4 }
 0x26c   :  { %v529_v62 = vpop.permute.xlu1 %528 }
 0x26d   :  { %v6836_v63 = vmul.f32 %v6365_v54, %v529_v62 }
 0x26f   :  { %533 = vrot.lane.b32.xlu0 %v6836_v63, %s6603_s26  ;;  %v611_v1 = vrot.slane %v6836_v63, 4 }
 0x271   :  { %612 = vrot.lane.b32.xlu1 %v611_v1, %s6603_s26 }
 0x2e1   :  { %v534_v2 = vpop.permute.xlu0 %533 }
 0x2e2   :  { %5859 = vmatmul.mubr.msk.f32.vlgmr.msra.gmra.mxu0 %vm108_vm1, %v534_v2 }
 0x2e3   :  { %v613_v3 = vpop.permute.xlu1 %612  ;;  %5873 = vmatpush3.msra.mxu0 %v6708_v9  ;;  %5880 = vmatprep.mubr.msk.f32.mxu0 %vm6601_vm2, %v6600_v0 }
 0x2e4   :  { %5870 = vmatmul.mubr.msk.f32.vlgmr.msra.gmra.mxu1 %vm108_vm1, %v613_v3  ;;  %5874 = vmatprep.subr.mxu0 %v6600_v0 }
 0x2e5   :  { %5875 = vmatpush3.msra.mxu0 %v6730_v13  ;;  %5884 = vmatpush3.msra.mxu1 %v6713_v10 }
 0x2e6   :  { %5876 = vmatprep.subr.mxu0 %v6600_v0  ;;  %5885 = vmatprep.subr.mxu1 %v6600_v0 }
 0x2e7   :  { %5877 = vmatpush3.msra.mxu0 %v6752_v17  ;;  %5886 = vmatpush3.msra.mxu1 %v6735_v14 }
 0x2e8   :  { %5878 = vmatprep.subr.mxu0 %v6600_v0  ;;  %5887 = vmatprep.subr.mxu1 %v6600_v0 }
 0x2e9   :  { %5879 = vmatpush3.msra.mxu0 %v6766_v20  ;;  %5888 = vmatpush3.msra.mxu1 %v6757_v18 }
 0x2ea   :  { %5889 = vmatprep.subr.mxu1 %v6600_v0  ;;  %5891 = vmatprep.mubr.msk.f32.mxu1 %vm6601_vm2, %v6600_v0 }
 0x2eb   :  { %5890 = vmatpush3.msra.mxu1 %v6773_v21  ;;  %5894 = vmatprep.subr.mxu0 %v6600_v0 }
 0x2ec   :  { %5905 = vmatprep.subr.mxu1 %v6600_v0 }
 0x3a2   :  { %v603_v4 = vpop.f32.mrf.mxu0 }
 0x3a3   :  { %v608_v5 = vrot.slane %v603_v4, 4 }
 0x3a4   :  { %v5860_v6 = vpop.f32.mrf.mxu0  ;;  %v682_v7 = vpop.f32.mrf.mxu1 }
 0x3a5   :  { %v610_v8 = vadd.f32 %v608_v5, %v6825_v41  ;;  %v686_v11 = vadd.f32 %v682_v7, %v6827_v42 }
 0x3a6   :  { %v5871_v12 = vpop.f32.mrf.mxu1 }
 0x3a7   :  { %v688_v15 = vrot.slane %v610_v8, 4  ;;  %v691_v16 = vrot.slane %v686_v11, 4 }
 0x3a9   :  { %v693_v19 = vsel %vm502_vm3, %v688_v15, %v691_v16 }
 0x3aa   :  { %6368 = vtanh.f32 %v693_v19  ;;  %v5455_v23 = vmul.f32 -1.442695, %v693_v19 }
 0x3ac   :  { %6370 = vpow2.f32 %v5455_v23 }
 0x3b7   :  { %v6369_v22 = vpop.eup %6368 }
 0x3b8   :  { %703 = vrot.lane.b32.xlu0 %v6369_v22, %s6602_s4 }
 0x3b9   :  { %v6371_v24 = vpop.eup %6370 }
 0x3ba   :  { %v697_v25 = vadd.f32 1.0, %v6371_v24 }
 0x3bc   :  { %6372 = vrcp.f32 %v697_v25 }
 0x3c9   :  { %v6373_v26 = vpop.eup %6372 }
 0x3ca   :  { %v701_v32 = vmul.f32 %v6373_v26, %v525_v60 }
 0x42a   :  { %v704_v29 = vpop.permute.xlu0 %703 }
 0x42b   :  { %v706_v30 = vmul.f32 %v6373_v26, %v704_v29 }
 0x42d   :  { %708 = vrot.lane.b32.xlu1 %v706_v30, %s6602_s4 }
 0x49f   :  { %v709_v33 = vpop.permute.xlu1 %708 }
 0x4a0   :  { %v711_v35 = vadd.f32 %v709_v33, %v701_v32 }
 0x4a2   :  { %6374 = vtanh.f32 %v711_v35 }
 0x4af   :  { %v6375_v36 = vpop.eup %6374 }
 0x4b0   :  { %714 = vrot.lane.b32.xlu0 %v6375_v36, %s6602_s4 }
 0x522   :  { %v715_v39 = vpop.permute.xlu0 %714 }
 0x523   :  { %v717_v40 = vmul.f32 %v6373_v26, %v715_v39 }
 0x525   :  { %v6870_v41 = vrot.slane %v717_v40, 4  ;;  %719 = vrot.lane.b32.xlu0 %v717_v40, %s6603_s26 }
 0x527   :  { %795 = vrot.lane.b32.xlu1 %v6870_v41, %s6603_s26 }
 0x597   :  { %v720_v42 = vpop.permute.xlu0 %719 }
 0x598   :  { %5881 = vmatmul.mubr.msk.f32.vlgmr.msra.gmra.mxu0 %vm108_vm1, %v720_v42 }
 0x599   :  { %v796_v43 = vpop.permute.xlu1 %795  ;;  %5895 = vmatpush3.msra.mxu0 %v6708_v9  ;;  %5902 = vmatprep.mubr.msk.f32.mxu0 %vm6601_vm2, %v6600_v0 }
 0x59a   :  { %5892 = vmatmul.mubr.msk.f32.vlgmr.msra.gmra.mxu1 %vm108_vm1, %v796_v43  ;;  %5896 = vmatprep.subr.mxu0 %v6600_v0 }
 0x59b   :  { %5897 = vmatpush3.msra.mxu0 %v6730_v13  ;;  %5906 = vmatpush3.msra.mxu1 %v6713_v10 }
 0x59c   :  { %5898 = vmatprep.subr.mxu0 %v6600_v0  ;;  %5907 = vmatprep.subr.mxu1 %v6600_v0 }
 0x59d   :  { %5899 = vmatpush3.msra.mxu0 %v6752_v17  ;;  %5908 = vmatpush3.msra.mxu1 %v6735_v14 }
 0x59e   :  { %5900 = vmatprep.subr.mxu0 %v6600_v0  ;;  %5909 = vmatprep.subr.mxu1 %v6600_v0 }
 0x59f   :  { %5901 = vmatpush3.msra.mxu0 %v6766_v20  ;;  %5910 = vmatpush3.msra.mxu1 %v6757_v18 }
 0x5a0   :  { %5911 = vmatprep.subr.mxu1 %v6600_v0  ;;  %5913 = vmatprep.mubr.msk.f32.mxu1 %vm6601_vm2, %v6600_v0 }
 0x5a1   :  { %5912 = vmatpush3.msra.mxu1 %v6773_v21  ;;  %5916 = vmatprep.subr.mxu0 %v6600_v0 }
 0x5a2   :  { %5927 = vmatprep.subr.mxu1 %v6600_v0 }
 0x658   :  { %v789_v44 = vpop.f32.mrf.mxu0 }
 0x659   :  { %v793_v49 = vadd.f32 %v789_v44, %v6813_v27 }
 0x65a   :  { %v5882_v45 = vpop.f32.mrf.mxu0  ;;  %v865_v46 = vpop.f32.mrf.mxu1 }
 0x65b   :  { %v870_v47 = vrot.slane %v865_v46, 4 }
 0x65c   :  { %v5893_v48 = vpop.f32.mrf.mxu1 }
 0x65d   :  { %v872_v50 = vadd.f32 %v870_v47, %v6823_v38 }
 0x65f   :  { %v873_v51 = vsel %vm502_vm3, %v793_v49, %v872_v50 }
 0x660   :  { %6376 = vtanh.f32 %v873_v51  ;;  %v5458_v53 = vmul.f32 -1.442695, %v873_v51 }
 0x662   :  { %6378 = vpow2.f32 %v5458_v53 }
 0x66d   :  { %v6377_v52 = vpop.eup %6376 }
 0x66e   :  { %883 = vrot.lane.b32.xlu1 %v6377_v52, %s6602_s4 }
 0x66f   :  { %v6379_v54 = vpop.eup %6378 }
 0x670   :  { %v877_v55 = vadd.f32 1.0, %v6379_v54 }
 0x672   :  { %6380 = vrcp.f32 %v877_v55 }
 0x67f   :  { %v6381_v56 = vpop.eup %6380 }
 0x680   :  { %v881_v59 = vmul.f32 %v6381_v56, %v711_v35 }
 0x6e0   :  { %v884_v57 = vpop.permute.xlu1 %883 }
 0x6e1   :  { %v886_v58 = vmul.f32 %v6381_v56, %v884_v57 }
 0x6e3   :  { %888 = vrot.lane.b32.xlu0 %v886_v58, %s6602_s4 }
 0x755   :  { %v889_v60 = vpop.permute.xlu0 %888 }
 0x756   :  { %v891_v61 = vadd.f32 %v889_v60, %v881_v59 }
 0x758   :  { %6382 = vtanh.f32 %v891_v61 }
 0x765   :  { %v6383_v62 = vpop.eup %6382 }
 0x766   :  { %894 = vrot.lane.b32.xlu1 %v6383_v62, %s6602_s4 }
 0x7d8   :  { %v895_v1 = vpop.permute.xlu1 %894 }
 0x7d9   :  { %v6903_v2 = vmul.f32 %v6381_v56, %v895_v1 }
 0x7db   :  { %899 = vrot.lane.b32.xlu0 %v6903_v2, %s6603_s26  ;;  %v977_v3 = vrot.slane %v6903_v2, 4 }
 0x7dd   :  { %978 = vrot.lane.b32.xlu1 %v977_v3, %s6603_s26 }
 0x84d   :  { %v900_v4 = vpop.permute.xlu0 %899 }
 0x84e   :  { %5903 = vmatmul.mubr.msk.f32.vlgmr.msra.gmra.mxu0 %vm108_vm1, %v900_v4 }
 0x84f   :  { %v979_v5 = vpop.permute.xlu1 %978  ;;  %5917 = vmatpush3.msra.mxu0 %v6708_v9  ;;  %5924 = vmatprep.mubr.msk.f32.mxu0 %vm6601_vm2, %v6600_v0 }
 0x850   :  { %5914 = vmatmul.mubr.msk.f32.vlgmr.msra.gmra.mxu1 %vm108_vm1, %v979_v5  ;;  %5918 = vmatprep.subr.mxu0 %v6600_v0 }
 0x851   :  { %5919 = vmatpush3.msra.mxu0 %v6730_v13  ;;  %5928 = vmatpush3.msra.mxu1 %v6713_v10 }
 0x852   :  { %5920 = vmatprep.subr.mxu0 %v6600_v0  ;;  %5929 = vmatprep.subr.mxu1 %v6600_v0 }
 0x853   :  { %5921 = vmatpush3.msra.mxu0 %v6752_v17  ;;  %5930 = vmatpush3.msra.mxu1 %v6735_v14 }
 0x854   :  { %5922 = vmatprep.subr.mxu0 %v6600_v0  ;;  %5931 = vmatprep.subr.mxu1 %v6600_v0 }
 0x855   :  { %5923 = vmatpush3.msra.mxu0 %v6766_v20  ;;  %5932 = vmatpush3.msra.mxu1 %v6757_v18 }
 0x856   :  { %5933 = vmatprep.subr.mxu1 %v6600_v0  ;;  %5935 = vmatprep.mubr.msk.f32.mxu1 %vm6601_vm2, %v6600_v0 }
 0x857   :  { %5934 = vmatpush3.msra.mxu1 %v6773_v21  ;;  %5938 = vmatprep.subr.mxu0 %v6600_v0 }
 0x858   :  { %5949 = vmatprep.subr.mxu1 %v6600_v0 }
 0x90e   :  { %v969_v6 = vpop.f32.mrf.mxu0 }
 0x90f   :  { %v974_v7 = vrot.slane %v969_v6, 4 }
 0x910   :  { %v5904_v8 = vpop.f32.mrf.mxu0  ;;  %v1048_v11 = vpop.f32.mrf.mxu1 }
 0x911   :  { %v976_v12 = vadd.f32 %v974_v7, %v6813_v27  ;;  %v1052_v15 = vadd.f32 %v1048_v11, %v6823_v38 }
 0x912   :  { %v5915_v16 = vpop.f32.mrf.mxu1 }
 0x913   :  { %v1054_v19 = vrot.slane %v976_v12, 4  ;;  %v1057_v22 = vrot.slane %v1052_v15, 4 }
 0x915   :  { %v1059_v23 = vsel %vm502_vm3, %v1054_v19, %v1057_v22 }
 0x916   :  { %6384 = vtanh.f32 %v1059_v23  ;;  %v5461_v25 = vmul.f32 -1.442695, %v1059_v23 }
 0x918   :  { %6386 = vpow2.f32 %v5461_v25 }
 0x923   :  { %v6385_v24 = vpop.eup %6384 }
 0x924   :  { %1069 = vrot.lane.b32.xlu0 %v6385_v24, %s6602_s4 }
 0x925   :  { %v6387_v26 = vpop.eup %6386 }
 0x926   :  { %v1063_v29 = vadd.f32 1.0, %v6387_v26 }
 0x928   :  { %6388 = vrcp.f32 %v1063_v29 }
 0x935   :  { %v6389_v30 = vpop.eup %6388 }
 0x936   :  { %v1067_v27 = vmul.f32 %v6389_v30, %v891_v61 }
 0x996   :  { %v1070_v32 = vpop.permute.xlu0 %1069 }
 0x997   :  { %v1072_v33 = vmul.f32 %v6389_v30, %v1070_v32 }
 0x999   :  { %1074 = vrot.lane.b32.xlu1 %v1072_v33, %s6602_s4 }
 0xa0b   :  { %v1075_v38 = vpop.permute.xlu1 %1074 }
 0xa0c   :  { %v1077_v35 = vadd.f32 %v1075_v38, %v1067_v27 }
 0xa0e   :  { %6390 = vtanh.f32 %v1077_v35 }
 0xa1b   :  { %v6391_v36 = vpop.eup %6390 }
 0xa1c   :  { %1080 = vrot.lane.b32.xlu0 %v6391_v36, %s6602_s4 }
 0xa8e   :  { %v1081_v39 = vpop.permute.xlu0 %1080 }
 0xa8f   :  { %v1083_v40 = vmul.f32 %v6389_v30, %v1081_v39 }
 0xa91   :  { %v6937_v42 = vrot.slane %v1083_v40, 4  ;;  %1085 = vrot.lane.b32.xlu0 %v1083_v40, %s6603_s26 }
 0xa93   :  { %1161 = vrot.lane.b32.xlu1 %v6937_v42, %s6603_s26 }
 0xb03   :  { %v1086_v43 = vpop.permute.xlu0 %1085 }
 0xb04   :  { %5925 = vmatmul.mubr.msk.f32.vlgmr.msra.gmra.mxu0 %vm108_vm1, %v1086_v43 }
 0xb05   :  { %v1162_v44 = vpop.permute.xlu1 %1161  ;;  %5939 = vmatpush3.msra.mxu0 %v6708_v9  ;;  %5946 = vmatprep.mubr.msk.f32.mxu0 %vm6601_vm2, %v6600_v0 }
 0xb06   :  { %5936 = vmatmul.mubr.msk.f32.vlgmr.msra.gmra.mxu1 %vm108_vm1, %v1162_v44  ;;  %5940 = vmatprep.subr.mxu0 %v6600_v0 }
 0xb07   :  { %5941 = vmatpush3.msra.mxu0 %v6730_v13  ;;  %5950 = vmatpush3.msra.mxu1 %v6713_v10 }
 0xb08   :  { %5942 = vmatprep.subr.mxu0 %v6600_v0  ;;  %5951 = vmatprep.subr.mxu1 %v6600_v0 }
 0xb09   :  { %5943 = vmatpush3.msra.mxu0 %v6752_v17  ;;  %5952 = vmatpush3.msra.mxu1 %v6735_v14 }
 0xb0a   :  { %5944 = vmatprep.subr.mxu0 %v6600_v0  ;;  %5953 = vmatprep.subr.mxu1 %v6600_v0 }
 0xb0b   :  { %5945 = vmatpush3.msra.mxu0 %v6766_v20  ;;  %5954 = vmatpush3.msra.mxu1 %v6757_v18 }
 0xb0c   :  { %5955 = vmatprep.subr.mxu1 %v6600_v0  ;;  %5957 = vmatprep.mubr.msk.f32.mxu1 %vm6601_vm2, %v6600_v0 }
 0xb0d   :  { %5956 = vmatpush3.msra.mxu1 %v6773_v21  ;;  %5960 = vmatprep.subr.mxu0 %v6600_v0 }
 0xb0e   :  { %5971 = vmatprep.subr.mxu1 %v6600_v0 }
 0xbc4   :  { %v1155_v45 = vpop.f32.mrf.mxu0 }
 0xbc5   :  { %v1159_v50 = vadd.f32 %v1155_v45, %v6821_v37 }
 0xbc6   :  { %v5926_v46 = vpop.f32.mrf.mxu0  ;;  %v1231_v47 = vpop.f32.mrf.mxu1 }
 0xbc7   :  { %v1236_v48 = vrot.slane %v1231_v47, 4 }
 0xbc8   :  { %v5937_v49 = vpop.f32.mrf.mxu1 }
 0xbc9   :  { %v1238_v51 = vadd.f32 %v1236_v48, %v6815_v28 }
 0xbcb   :  { %v1239_v52 = vsel %vm502_vm3, %v1159_v50, %v1238_v51 }
 0xbcc   :  { %6392 = vtanh.f32 %v1239_v52  ;;  %v5464_v54 = vmul.f32 -1.442695, %v1239_v52 }
 0xbce   :  { %6394 = vpow2.f32 %v5464_v54 }
 0xbd9   :  { %v6393_v53 = vpop.eup %6392 }
 0xbda   :  { %1249 = vrot.lane.b32.xlu1 %v6393_v53, %s6602_s4 }
 0xbdb   :  { %v6395_v55 = vpop.eup %6394 }
 0xbdc   :  { %v1243_v56 = vadd.f32 1.0, %v6395_v55 }
 0xbde   :  { %6396 = vrcp.f32 %v1243_v56 }
 0xbeb   :  { %v6397_v57 = vpop.eup %6396 }
 0xbec   :  { %v1247_v60 = vmul.f32 %v6397_v57, %v1077_v35 }
 0xc4c   :  { %v1250_v58 = vpop.permute.xlu1 %1249 }
 0xc4d   :  { %v1252_v59 = vmul.f32 %v6397_v57, %v1250_v58 }
 0xc4f   :  { %1254 = vrot.lane.b32.xlu0 %v1252_v59, %s6602_s4 }
 0xcc1   :  { %v1255_v61 = vpop.permute.xlu0 %1254 }
 0xcc2   :  { %v1257_v62 = vadd.f32 %v1255_v61, %v1247_v60 }
 0xcc4   :  { %6398 = vtanh.f32 %v1257_v62 }
 0xcd1   :  { %v6399_v1 = vpop.eup %6398 }
 0xcd2   :  { %1260 = vrot.lane.b32.xlu1 %v6399_v1, %s6602_s4 }
 0xd44   :  { %v1261_v3 = vpop.permute.xlu1 %1260 }
 0xd45   :  { %v6970_v4 = vmul.f32 %v6397_v57, %v1261_v3 }
 0xd47   :  { %1265 = vrot.lane.b32.xlu0 %v6970_v4, %s6603_s26  ;;  %v1343_v5 = vrot.slane %v6970_v4, 4 }
 0xd49   :  { %1344 = vrot.lane.b32.xlu1 %v1343_v5, %s6603_s26 }
 0xdb9   :  { %v1266_v6 = vpop.permute.xlu0 %1265 }
 0xdba   :  { %5947 = vmatmul.mubr.msk.f32.vlgmr.msra.gmra.mxu0 %vm108_vm1, %v1266_v6 }
 0xdbb   :  { %v1345_v7 = vpop.permute.xlu1 %1344  ;;  %5961 = vmatpush3.msra.mxu0 %v6708_v9  ;;  %5968 = vmatprep.mubr.msk.f32.mxu0 %vm6601_vm2, %v6600_v0 }
 0xdbc   :  { %5958 = vmatmul.mubr.msk.f32.vlgmr.msra.gmra.mxu1 %vm108_vm1, %v1345_v7  ;;  %5962 = vmatprep.subr.mxu0 %v6600_v0 }
 0xdbd   :  { %5963 = vmatpush3.msra.mxu0 %v6730_v13  ;;  %5972 = vmatpush3.msra.mxu1 %v6713_v10 }
 0xdbe   :  { %5964 = vmatprep.subr.mxu0 %v6600_v0  ;;  %5973 = vmatprep.subr.mxu1 %v6600_v0 }
 0xdbf   :  { %5965 = vmatpush3.msra.mxu0 %v6752_v17  ;;  %5974 = vmatpush3.msra.mxu1 %v6735_v14 }
 0xdc0   :  { %5966 = vmatprep.subr.mxu0 %v6600_v0  ;;  %5975 = vmatprep.subr.mxu1 %v6600_v0 }
 0xdc1   :  { %5967 = vmatpush3.msra.mxu0 %v6766_v20  ;;  %5976 = vmatpush3.msra.mxu1 %v6757_v18 }
 0xdc2   :  { %5977 = vmatprep.subr.mxu1 %v6600_v0  ;;  %5979 = vmatprep.mubr.msk.f32.mxu1 %vm6601_vm2, %v6600_v0 }
 0xdc3   :  { %5978 = vmatpush3.msra.mxu1 %v6773_v21  ;;  %5982 = vmatprep.subr.mxu0 %v6600_v0 }
 0xdc4   :  { %5993 = vmatprep.subr.mxu1 %v6600_v0 }
 0xe7a   :  { %v1335_v8 = vpop.f32.mrf.mxu0 }
 0xe7b   :  { %v1340_v11 = vrot.slane %v1335_v8, 4 }
 0xe7c   :  { %v5948_v12 = vpop.f32.mrf.mxu0  ;;  %v1414_v15 = vpop.f32.mrf.mxu1 }
 0xe7d   :  { %v1342_v16 = vadd.f32 %v1340_v11, %v6821_v37  ;;  %v1418_v19 = vadd.f32 %v1414_v15, %v6815_v28 }
 0xe7e   :  { %v5959_v22 = vpop.f32.mrf.mxu1 }
 0xe7f   :  { %v1420_v23 = vrot.slane %v1342_v16, 4  ;;  %v1423_v24 = vrot.slane %v1418_v19, 4 }
 0xe81   :  { %v1425_v25 = vsel %vm502_vm3, %v1420_v23, %v1423_v24 }
 0xe82   :  { %6400 = vtanh.f32 %v1425_v25  ;;  %v5467_v29 = vmul.f32 -1.442695, %v1425_v25 }
 0xe84   :  { %6402 = vpow2.f32 %v5467_v29 }
 0xe8f   :  { %v6401_v26 = vpop.eup %6400 }
 0xe90   :  { %1435 = vrot.lane.b32.xlu0 %v6401_v26, %s6602_s4 }
 0xe91   :  { %v6403_v30 = vpop.eup %6402 }
 0xe92   :  { %v1429_v32 = vadd.f32 1.0, %v6403_v30 }
 0xe94   :  { %6404 = vrcp.f32 %v1429_v32  ;;  %v1842_v32 = vld [vmem:[%s7904_s5 + $0x18] sm:$0xff] }
 0xea1   :  { %v6405_v33 = vpop.eup %6404 }
 0xea2   :  { %v1433_v28 = vmul.f32 %v6405_v33, %v1257_v62 }
 0xf02   :  { %v1436_v27 = vpop.permute.xlu0 %1435 }
 0xf03   :  { %v1438_v38 = vmul.f32 %v6405_v33, %v1436_v27  ;;  %v1841_v27 = vld [vmem:[%s7904_s5 + $0x10] sm:$0xff] }
 0xf05   :  { %1440 = vrot.lane.b32.xlu1 %v1438_v38, %s6602_s4  ;;  %v1840_v38 = vld [vmem:[%s7904_s5 + $0x8] sm:$0xff] }
 0xf77   :  { %v1441_v37 = vpop.permute.xlu1 %1440 }
 0xf78   :  { %v1443_v35 = vadd.f32 %v1441_v37, %v1433_v28  ;;  %v1839_v28 = vld [vmem:[%s7904_s5] sm:$0xff] }
 0xf7a   :  { %6406 = vtanh.f32 %v1443_v35 }
 0xf87   :  { %v6407_v36 = vpop.eup %6406 }
 0xf88   :  { %1446 = vrot.lane.b32.xlu0 %v6407_v36, %s6602_s4  ;;  %v5476_v36 = vld [vmem:[%s7904_s5 + $0x30] sm:$0xff] }
 0xffa   :  { %v1447_v39 = vpop.permute.xlu0 %1446 }
 0xffb   :  { %v1449_v40 = vmul.f32 %v6405_v33, %v1447_v39  ;;  %v5475_v39 = vld [vmem:[%s7904_s5 + $0x28] sm:$0xff] }
 0xffd   :  { %v7004_v43 = vrot.slane %v1449_v40, 4  ;;  %1451 = vrot.lane.b32.xlu0 %v1449_v40, %s6603_s26 }
 0xfff   :  { %1527 = vrot.lane.b32.xlu1 %v7004_v43, %s6603_s26  ;;  %v1836_v40 = vsel %vm502_vm3, %v7004_v43, %v6970_v4 }
0x106f   :  { %v1452_v44 = vpop.permute.xlu0 %1451 }
0x1070   :  { %5969 = vmatmul.mubr.msk.f32.vlgmr.msra.gmra.mxu0 %vm108_vm1, %v1452_v44  ;;  %v5474_v44 = vld [vmem:[%s7904_s5 + $0x20] sm:$0xff] }
0x1071   :  { %v1528_v45 = vpop.permute.xlu1 %1527  ;;  %5983 = vmatpush3.msra.mxu0 %v6708_v9  ;;  %5990 = vmatprep.mubr.msk.f32.mxu0 %vm6601_vm2, %v6600_v0 }
0x1072   :  { %5980 = vmatmul.mubr.msk.f32.vlgmr.msra.gmra.mxu1 %vm108_vm1, %v1528_v45  ;;  %5984 = vmatprep.subr.mxu0 %v6600_v0  ;;  %v1832_v45 = vsel %vm502_vm3, %v6903_v2, %v6937_v42 }
0x1073   :  { %5985 = vmatpush3.msra.mxu0 %v6730_v13  ;;  %5994 = vmatpush3.msra.mxu1 %v6713_v10 }
0x1074   :  { %5986 = vmatprep.subr.mxu0 %v6600_v0  ;;  %5995 = vmatprep.subr.mxu1 %v6600_v0 }
0x1075   :  { %5987 = vmatpush3.msra.mxu0 %v6752_v17  ;;  %5996 = vmatpush3.msra.mxu1 %v6735_v14 }
0x1076   :  { %5988 = vmatprep.subr.mxu0 %v6600_v0  ;;  %5997 = vmatprep.subr.mxu1 %v6600_v0 }
0x1077   :  { %5989 = vmatpush3.msra.mxu0 %v6766_v20  ;;  %5998 = vmatpush3.msra.mxu1 %v6757_v18 }
0x1078   :  { %5999 = vmatprep.subr.mxu1 %v6600_v0  ;;  %6001 = vmatprep.mubr.msk.f32.mxu1 %vm6601_vm2, %v6600_v0 }
0x1079   :  { %6000 = vmatpush3.msra.mxu1 %v6773_v21  ;;  %6004 = vmatprep.subr.mxu0 %v1842_v32 }
0x1130   :  { %v1521_v9 = vpop.f32.mrf.mxu0 }
0x1131   :  { %v1525_v46 = vadd.f32 %v1521_v9, %v6819_v34  ;;  %v1838_v9 = vsel %vm502_vm3, %v6870_v41, %v6836_v63 }
0x1132   :  { %v5970_v10 = vpop.f32.mrf.mxu0  ;;  %v1597_v13 = vpop.f32.mrf.mxu1 }
0x1133   :  { %v1602_v17 = vrot.slane %v1597_v13, 4 }
0x1134   :  { %v5981_v14 = vpop.f32.mrf.mxu1 }
0x1135   :  { %v1604_v47 = vadd.f32 %v1602_v17, %v6817_v31 }
0x1137   :  { %v1605_v20 = vsel %vm502_vm3, %v1525_v46, %v1604_v47 }
0x1138   :  { %6408 = vtanh.f32 %v1605_v20  ;;  %v5470_v48 = vmul.f32 -1.442695, %v1605_v20  ;;  %v1837_v20 = vsel %vm502_vm3, %v6937_v42, %v6903_v2  ;;  %v1833_v2 = vsel %vm502_vm3, %v6970_v4, %v7004_v43  ;;  %v7142_v42 = vld [vmem:[%s7905_s6] sm:$0xff]  ;;  %v7155_v43 = vld [vmem:[%s7905_s6 + $0x38] sm:$0xff] }
0x113a   :  { %6410 = vpow2.f32 %v5470_v48  ;;  %v7132_v48 = vld [vmem:[%s7905_s6 + $0x8] sm:$0xff] }
0x1145   :  { %v6409_v18 = vpop.eup %6408 }
0x1146   :  { %1615 = vrot.lane.b32.xlu1 %v6409_v18, %s6602_s4  ;;  %v7124_v18 = vld [vmem:[%s7905_s6 + $0x10] sm:$0xff] }
0x1147   :  { %v6411_v49 = vpop.eup %6410 }
0x1148   :  { %v1609_v50 = vadd.f32 1.0, %v6411_v49  ;;  %v2083_v49 = vld [vmem:[#allocation5] sm:$0xff] }
0x114a   :  { %6412 = vrcp.f32 %v1609_v50  ;;  %v7164_v50 = vld [vmem:[%s7905_s6 + $0x30] sm:$0xff] }
0x1157   :  { %v6413_v21 = vpop.eup %6412 }
0x1158   :  { %v1613_v53 = vmul.f32 %v6413_v21, %v1443_v35  ;;  %v5477_v35 = vld [vmem:[%s7904_s5 + $0x38] sm:$0xff] }
0x1159   :  { %6018 = vmatprep.subr.mxu1 %v5477_v35 }
0x11b8   :  { %v1616_v51 = vpop.permute.xlu1 %1615 }
0x11b9   :  { %v1618_v52 = vmul.f32 %v6413_v21, %v1616_v51 }
0x11bb   :  { %1620 = vrot.lane.b32.xlu0 %v1618_v52, %s6602_s4  ;;  %v7173_v52 = vld [vmem:[%s7905_s6 + $0x28] sm:$0xff] }
0x122d   :  { %v1621_v54 = vpop.permute.xlu0 %1620 }
0x122e   :  { %v1623_v55 = vadd.f32 %v1621_v54, %v1613_v53  ;;  %v7186_v54 = vld [vmem:[%s7905_s6 + $0x20] sm:$0xff] }
0x1230   :  { %6414 = vtanh.f32 %v1623_v55 }
0x123d   :  { %v6415_v56 = vpop.eup %6414 }
0x123e   :  { %1626 = vrot.lane.b32.xlu1 %v6415_v56, %s6602_s4 }
0x12b0   :  { %v1627_v57 = vpop.permute.xlu1 %1626 }
0x12b1   :  { %v7035_v58 = vmul.f32 %v6413_v21, %v1627_v57  ;;  %v2082_v21 = vld [vmem:[#allocation4] sm:$0xff] }
0x12b3   :  { %1631 = vrot.lane.b32.xlu0 %v7035_v58, %s6603_s26  ;;  %v1709_v59 = vrot.slane %v7035_v58, 4 }
0x12b5   :  { %1710 = vrot.lane.b32.xlu1 %v1709_v59, %s6603_s26 }
0x1325   :  { %v1632_v60 = vpop.permute.xlu0 %1631 }
0x1326   :  { %5991 = vmatmul.mubr.msk.f32.vlgmr.msra.gmra.mxu0 %vm108_vm1, %v1632_v60 }
0x1327   :  { %v1711_v61 = vpop.permute.xlu1 %1710  ;;  %6005 = vmatpush3.msra.mxu0 %v1842_v32 }
0x1328   :  { %6002 = vmatmul.mubr.msk.f32.vlgmr.msra.gmra.mxu1 %vm108_vm1, %v1711_v61  ;;  %6006 = vmatprep.subr.mxu0 %v1841_v27 }
0x1329   :  { %6007 = vmatpush3.msra.mxu0 %v1841_v27  ;;  %6019 = vmatpush3.msra.mxu1 %v5477_v35 }
0x132a   :  { %6008 = vmatprep.subr.mxu0 %v1840_v38  ;;  %6020 = vmatprep.subr.mxu1 %v5476_v36 }
0x132b   :  { %6009 = vmatpush3.msra.mxu0 %v1840_v38  ;;  %6021 = vmatpush3.msra.mxu1 %v5476_v36 }
0x132c   :  { %6010 = vmatprep.subr.mxu0 %v1839_v28  ;;  %6022 = vmatprep.subr.mxu1 %v5475_v39 }
0x132d   :  { %6011 = vmatpush3.msra.mxu0 %v1839_v28  ;;  %6023 = vmatpush3.msra.mxu1 %v5475_v39 }
0x132e   :  { %6032 = vmatprep.subr.mxu0 %v6600_v0  ;;  %6024 = vmatprep.subr.mxu1 %v5474_v44 }
0x132f   :  { %6025 = vmatpush3.msra.mxu1 %v5474_v44 }
0x1330   :  { %6043 = vmatprep.subr.mxu1 %v6600_v0 }
0x13e6   :  { %v1701_v62 = vpop.f32.mrf.mxu0 }
0x13e7   :  { %v1706_v1 = vrot.slane %v1701_v62, 4 }
0x13e8   :  { %v5992_v3 = vpop.f32.mrf.mxu0  ;;  %v1780_v5 = vpop.f32.mrf.mxu1 }
0x13e9   :  { %v1708_v6 = vadd.f32 %v1706_v1, %v6819_v34  ;;  %v1784_v7 = vadd.f32 %v1780_v5, %v6817_v31  ;;  %v1831_v31 = vsel %vm502_vm3, %v6836_v63, %v6870_v41  ;;  %v7112_v63 = vld [vmem:[%s7905_s6 + $0x18] sm:$0xff] }
0x13ea   :  { %v6003_v8 = vpop.f32.mrf.mxu1 }
0x13eb   :  { %v1786_v11 = vrot.slane %v1708_v6, 4  ;;  %v1789_v12 = vrot.slane %v1784_v7, 4 }
0x13ed   :  { %v1791_v15 = vsel %vm502_vm3, %v1786_v11, %v1789_v12 }
0x13ee   :  { %6416 = vtanh.f32 %v1791_v15  ;;  %v5473_v19 = vmul.f32 -1.442695, %v1791_v15  ;;  %v7242_v15 = vld [vmem:[%s7906_s7] ss:$0 sm:$0xff] }
0x13f0   :  { %6418 = vpow2.f32 %v5473_v19 }
0x13fb   :  { %v6417_v16 = vpop.eup %6416 }
0x13fc   :  { %1801 = vrot.lane.b32.xlu0 %v6417_v16, %s6602_s4 }
0x13fd   :  { %v6419_v22 = vpop.eup %6418 }
0x13fe   :  { %v1795_v23 = vadd.f32 1.0, %v6419_v22 }
0x1400   :  { %6420 = vrcp.f32 %v1795_v23 }
0x140d   :  { %v6421_v24 = vpop.eup %6420 }
0x140e   :  { %v1799_v34 = vmul.f32 %v6421_v24, %v1623_v55  ;;  %v2158_v55 = vrot.slane %v2082_v21, 4 }
0x146e   :  { %v1802_v25 = vpop.permute.xlu0 %1801 }
0x146f   :  { %v1804_v26 = vmul.f32 %v6421_v24, %v1802_v25 }
0x1471   :  { %1806 = vrot.lane.b32.xlu1 %v1804_v26, %s6602_s4 }
0x1475   :  { %1870 = vrot.lane.b32.xlu1 %v1831_v31, %s6603_s26 }
0x14e3   :  { %v1807_v29 = vpop.permute.xlu1 %1806 }
0x14e4   :  { %v7052_v30 = vadd.f32 %v1807_v29, %v1799_v34 }
0x14e6   :  { %6422 = vtanh.f32 %v7052_v30 }
0x14e7   :  { %v7058_v33 = vpop.permute.xlu1 %1870 }
0x14e8   :  { %6012 = vmatprep.mubr.msk.f32.mxu0 %vm108_vm1, %v7058_v33 }
0x14f3   :  { %v6423_v37 = vpop.eup %6422 }
0x14f4   :  { %1812 = vrot.lane.b32.xlu0 %v6423_v37, %s6602_s4 }
0x14f8   :  { %1983 = vrot.lane.b32.xlu0 %v1836_v40, %s6603_s26 }
0x14fc   :  { %1872 = vrot.lane.b32.xlu0 %v1832_v45, %s6603_s26 }
0x1500   :  { %1987 = vrot.lane.b32.xlu0 %v1838_v9, %s6603_s26 }
0x1566   :  { %v1813_v10 = vpop.permute.xlu0 %1812 }
0x1567   :  { %v7098_v13 = vmul.f32 %v6421_v24, %v1813_v10 }
0x1569   :  { %v1829_v17 = vrot.slane %v7098_v13, 4 }
0x156a   :  { %v7101_v14 = vpop.permute.xlu0 %1983 }
0x156b   :  { %v1835_v46 = vsel %vm502_vm3, %v1829_v17, %v7035_v58  ;;  %v1834_v47 = vsel %vm502_vm3, %v7035_v58, %v1829_v17  ;;  %v5488_v58 = vld [vmem:[%s7906_s7 + $0x1] ss:$0 sm:$0xff] }
0x156c   :  { %1981 = vrot.lane.b32.xlu1 %v1835_v46, %s6603_s26  ;;  %1876 = vrot.lane.b32.xlu0 %v1834_v47, %s6603_s26 }
0x156e   :  { %v7114_v41 = vpop.permute.xlu0 %1872 }
0x156f   :  { %6013 = vmatmul.mubr.msk.f32.vlgmr.msra.gmra.mxu0 %vm108_vm1, %v7114_v41 }
0x1570   :  { %1985 = vrot.lane.b32.xlu1 %v1837_v20, %s6603_s26  ;;  %6033 = vmatpush3.msra.mxu0 %v7112_v63 }
0x1571   :  { %6034 = vmatprep.subr.mxu0 %v6600_v0  ;;  %2244 = vrot.lane.b32.xlu0 %v2083_v49, %s6602_s4 }
0x1572   :  { %6035 = vmatpush3.msra.mxu0 %v7124_v18  ;;  %v7175_v53 = vpop.permute.xlu0 %1987 }
0x1573   :  { %6036 = vmatprep.subr.mxu0 %v6600_v0 }
0x1574   :  { %1874 = vrot.lane.b32.xlu1 %v1833_v2, %s6603_s26  ;;  %6037 = vmatpush3.msra.mxu0 %v7132_v48 }
0x1575   :  { %6038 = vmatprep.subr.mxu0 %v6600_v0 }
0x1576   :  { %6039 = vmatpush3.msra.mxu0 %v7142_v42 }
0x1577   :  { %6054 = vmatprep.subr.mxu0 %v6600_v0 }
0x15de   :  { %v7150_v4 = vpop.permute.xlu1 %1981  ;;  %v7194_v57 = vpop.permute.xlu0 %1876 }
0x15df   :  { %6026 = vmatprep.mubr.msk.f32.mxu1 %vm108_vm1, %v7150_v4 }
0x15e0   :  { %6027 = vmatmul.mubr.msk.f32.vlgmr.msra.gmra.mxu1 %vm108_vm1, %v7101_v14 }
0x15e1   :  { %6044 = vmatpush3.msra.mxu1 %v7155_v43 }
0x15e2   :  { %v7167_v51 = vpop.permute.xlu1 %1985  ;;  %6045 = vmatprep.subr.mxu1 %v6600_v0 }
0x15e3   :  { %6029 = vmatprep.mubr.msk.f32.mxu1 %vm108_vm1, %v7167_v51  ;;  %6046 = vmatpush3.msra.mxu1 %v7164_v50  ;;  %v2245_v36 = vpop.permute.xlu0 %2244 }
0x15e4   :  { %6030 = vmatmul.mubr.msk.f32.gmra.mxu1 %vm108_vm1, %v7175_v53  ;;  %6047 = vmatprep.subr.mxu1 %v6600_v0 }
0x15e5   :  { %6048 = vmatpush3.msra.mxu1 %v7173_v52  ;;  %6051 = vmatprep.mubr.msk.f32.mxu1 %vm6601_vm2, %v6600_v0 }
0x15e6   :  { %v7191_v56 = vpop.permute.xlu1 %1874  ;;  %6049 = vmatprep.subr.mxu1 %v6600_v0 }
0x15e7   :  { %6015 = vmatprep.mubr.msk.f32.mxu0 %vm108_vm1, %v7191_v56  ;;  %6050 = vmatpush3.msra.mxu1 %v7186_v54 }
0x15e8   :  { %6016 = vmatmul.mubr.msk.f32.gmra.mxu0 %vm108_vm1, %v7194_v57  ;;  %6052 = vmatmul.mubr.msk.f32.vlgmr.msra.gmra.mxu1 %vm108_vm1, %v2158_v55 }
0x15e9   :  { %6040 = vmatprep.mubr.msk.f32.mxu0 %vm6601_vm2, %v6600_v0  ;;  %6065 = vmatprep.subr.mxu1 %v6600_v0 }
0x15ea   :  { %6066 = vmatpush3.msra.mxu1 %v7155_v43  ;;  %6073 = vmatprep.mubr.msk.f32.mxu1 %vm6601_vm2, %v6600_v0 }
0x15eb   :  { %6067 = vmatprep.subr.mxu1 %v6600_v0 }
0x15ec   :  { %6041 = vmatmul.mubr.msk.f32.vlgmr.msra.gmra.mxu0 %vm108_vm1, %v2082_v21  ;;  %6068 = vmatpush3.msra.mxu1 %v7164_v50 }
0x15ed   :  { %6055 = vmatpush3.msra.mxu0 %v7112_v63  ;;  %6069 = vmatprep.subr.mxu1 %v6600_v0 }
0x15ee   :  { %6056 = vmatprep.subr.mxu0 %v6600_v0  ;;  %6062 = vmatprep.mubr.msk.f32.mxu0 %vm6601_vm2, %v6600_v0 }
0x15ef   :  { %6057 = vmatpush3.msra.mxu0 %v7124_v18  ;;  %6070 = vmatpush3.msra.mxu1 %v7173_v52 }
0x15f0   :  { %6058 = vmatprep.subr.mxu0 %v6600_v0  ;;  %6071 = vmatprep.subr.mxu1 %v6600_v0 }
0x15f1   :  { %6059 = vmatpush3.msra.mxu0 %v7132_v48  ;;  %6072 = vmatpush3.msra.mxu1 %v7186_v54 }
0x15f2   :  { %6060 = vmatprep.subr.mxu0 %v6600_v0  ;;  %6087 = vmatprep.subr.mxu1 %v6600_v0 }
0x15f3   :  { %6061 = vmatpush3.msra.mxu0 %v7142_v42 }
0x15f4   :  { %6076 = vmatprep.subr.mxu0 %v6600_v0 }
0x162f   :  { %v7231_v61 = vpop.f32.mrf.mxu0 }
0x1631   :  { %v1952_v5 = vpop.f32.mrf.mxu0 }
0x1632   :  { %v1953_v22 = vadd.f32 %v7242_v15, %v1952_v5 }
0x16a0   :  { %v6028_v59 = vpop.f32.mrf.mxu1 }
0x16a1   :  { %v7229_v60 = vadd.f32 %v6028_v59, %v5488_v58 }
0x16a2   :  { %v2063_v62 = vpop.f32.mrf.mxu1 }
0x16a3   :  { %v7233_v1 = vadd.f32 %v5488_v58, %v2063_v62 }
0x16a4   :  { %v6031_v3 = vpop.f32.mrf.mxu1 }
0x16a5   :  { %v2079_v23 = vadd.f32 %v6031_v3, %v5488_v58 }
0x16a6   :  { %v2073_v6 = vpop.f32.mrf.mxu1 }
0x16a7   :  { %v7235_v7 = vadd.f32 %v5488_v58, %v2073_v6 }
0x16a8   :  { %v7237_v8 = vpop.f32.mrf.mxu0  ;;  %v2227_v11 = vpop.f32.mrf.mxu1 }
0x16a9   :  { %v2232_v12 = vrot.slane %v2227_v11, 4 }
0x16aa   :  { %v7244_v16 = vpop.f32.mrf.mxu0  ;;  %v6053_v19 = vpop.f32.mrf.mxu1 }
0x16ab   :  { %v2234_v25 = vadd.f32 %v2232_v12, %v2079_v23 }
0x16ac   :  { %v2153_v24 = vpop.f32.mrf.mxu0 }
0x16ad   :  { %v2157_v26 = vadd.f32 %v2153_v24, %v1953_v22 }
0x16ae   :  { %v6042_v31 = vpop.f32.mrf.mxu0 }
0x16af   :  { %v2235_v34 = vsel %vm502_vm3, %v2157_v26, %v2234_v25 }
0x16b0   :  { %6424 = vtanh.f32 %v2235_v34  ;;  %v5495_v32 = vmul.f32 -1.442695, %v2235_v34 }
0x16b2   :  { %6426 = vpow2.f32 %v5495_v32 }
0x16bd   :  { %v6425_v29 = vpop.eup %6424 }
0x16be   :  { %2249 = vrot.lane.b32.xlu1 %v6425_v29, %s6602_s4 }
0x16bf   :  { %v6427_v27 = vpop.eup %6426 }
0x16c0   :  { %v2239_v38 = vadd.f32 1.0, %v6427_v27 }
0x16c2   :  { %6428 = vrcp.f32 %v2239_v38 }
0x16cf   :  { %v6429_v28 = vpop.eup %6428 }
0x16d0   :  { %v2247_v39 = vmul.f32 %v6429_v28, %v2245_v36 }
0x1730   :  { %v2250_v37 = vpop.permute.xlu1 %2249 }
0x1731   :  { %v2252_v35 = vmul.f32 %v6429_v28, %v2250_v37 }
0x1733   :  { %2254 = vrot.lane.b32.xlu1 %v2252_v35, %s6602_s4 }
0x17a5   :  { %v2255_v40 = vpop.permute.xlu1 %2254 }
0x17a6   :  { %v2257_v44 = vadd.f32 %v2255_v40, %v2247_v39  ;;  %v1958_v39 = vadd.f32 %v7231_v61, %v7242_v15 }
0x17a8   :  { %6430 = vtanh.f32 %v2257_v44 }
0x17b5   :  { %v6431_v45 = vpop.eup %6430 }
0x17b6   :  { %2260 = vrot.lane.b32.xlu0 %v6431_v45, %s6602_s4 }
0x1828   :  { %v2261_v9 = vpop.permute.xlu0 %2260 }
0x1829   :  { %v7251_v10 = vmul.f32 %v6429_v28, %v2261_v9 }
0x182b   :  { %2265 = vrot.lane.b32.xlu1 %v7251_v10, %s6603_s26  ;;  %v2343_v17 = vrot.slane %v7251_v10, 4 }
0x182d   :  { %2344 = vrot.lane.b32.xlu0 %v2343_v17, %s6603_s26 }
0x189d   :  { %v2266_v46 = vpop.permute.xlu1 %2265 }
0x189e   :  { %6063 = vmatmul.mubr.msk.f32.vlgmr.msra.gmra.mxu0 %vm108_vm1, %v2266_v46 }
0x189f   :  { %v2345_v47 = vpop.permute.xlu0 %2344  ;;  %6077 = vmatpush3.msra.mxu0 %v7112_v63  ;;  %6084 = vmatprep.mubr.msk.f32.mxu0 %vm6601_vm2, %v6600_v0 }
0x18a0   :  { %6074 = vmatmul.mubr.msk.f32.vlgmr.msra.gmra.mxu1 %vm108_vm1, %v2345_v47  ;;  %6078 = vmatprep.subr.mxu0 %v6600_v0 }
0x18a1   :  { %6079 = vmatpush3.msra.mxu0 %v7124_v18  ;;  %6088 = vmatpush3.msra.mxu1 %v7155_v43 }
0x18a2   :  { %6080 = vmatprep.subr.mxu0 %v6600_v0  ;;  %6089 = vmatprep.subr.mxu1 %v6600_v0 }
0x18a3   :  { %6081 = vmatpush3.msra.mxu0 %v7132_v48  ;;  %6090 = vmatpush3.msra.mxu1 %v7164_v50 }
0x18a4   :  { %6082 = vmatprep.subr.mxu0 %v6600_v0  ;;  %6091 = vmatprep.subr.mxu1 %v6600_v0 }
0x18a5   :  { %6083 = vmatpush3.msra.mxu0 %v7142_v42  ;;  %6092 = vmatpush3.msra.mxu1 %v7173_v52 }
0x18a6   :  { %6093 = vmatprep.subr.mxu1 %v6600_v0  ;;  %6095 = vmatprep.mubr.msk.f32.mxu1 %vm6601_vm2, %v6600_v0 }
0x18a7   :  { %6094 = vmatpush3.msra.mxu1 %v7186_v54  ;;  %6098 = vmatprep.subr.mxu0 %v6600_v0 }
0x18a8   :  { %6109 = vmatprep.subr.mxu1 %v6600_v0 }
0x195e   :  { %v2335_v20 = vpop.f32.mrf.mxu0 }
0x195f   :  { %v2340_v2 = vrot.slane %v2335_v20, 4 }
0x1960   :  { %v6064_v49 = vpop.f32.mrf.mxu0  ;;  %v2414_v21 = vpop.f32.mrf.mxu1 }
0x1961   :  { %v2342_v55 = vadd.f32 %v2340_v2, %v1953_v22  ;;  %v2418_v58 = vadd.f32 %v2414_v21, %v2079_v23 }
0x1962   :  { %v6075_v59 = vpop.f32.mrf.mxu1 }
0x1963   :  { %v2420_v62 = vrot.slane %v2342_v55, 4  ;;  %v2423_v3 = vrot.slane %v2418_v58, 4 }
0x1965   :  { %v2425_v5 = vsel %vm502_vm3, %v2420_v62, %v2423_v3 }
0x1966   :  { %6432 = vtanh.f32 %v2425_v5  ;;  %v5498_v11 = vmul.f32 -1.442695, %v2425_v5 }
0x1968   :  { %6434 = vpow2.f32 %v5498_v11 }
0x1973   :  { %v6433_v6 = vpop.eup %6432 }
0x1974   :  { %2435 = vrot.lane.b32.xlu1 %v6433_v6, %s6602_s4 }
0x1975   :  { %v6435_v12 = vpop.eup %6434 }
0x1976   :  { %v2429_v19 = vadd.f32 1.0, %v6435_v12 }
0x1978   :  { %6436 = vrcp.f32 %v2429_v19 }
0x1985   :  { %v6437_v24 = vpop.eup %6436 }
0x1986   :  { %v2433_v22 = vmul.f32 %v6437_v24, %v2257_v44 }
0x19e6   :  { %v2436_v25 = vpop.permute.xlu1 %2435 }
0x19e7   :  { %v2438_v26 = vmul.f32 %v6437_v24, %v2436_v25 }
0x19e9   :  { %2440 = vrot.lane.b32.xlu0 %v2438_v26, %s6602_s4 }
0x1a5b   :  { %v2441_v23 = vpop.permute.xlu0 %2440 }
0x1a5c   :  { %v2443_v31 = vadd.f32 %v2441_v23, %v2433_v22 }
0x1a5e   :  { %6438 = vtanh.f32 %v2443_v31 }
0x1a6b   :  { %v6439_v34 = vpop.eup %6438 }
0x1a6c   :  { %2446 = vrot.lane.b32.xlu1 %v6439_v34, %s6602_s4 }
0x1ade   :  { %v2447_v29 = vpop.permute.xlu1 %2446 }
0x1adf   :  { %v2449_v32 = vmul.f32 %v6437_v24, %v2447_v29 }
0x1ae1   :  { %v7283_v27 = vrot.slane %v2449_v32, 4  ;;  %2451 = vrot.lane.b32.xlu1 %v2449_v32, %s6603_s26 }
0x1ae3   :  { %2527 = vrot.lane.b32.xlu0 %v7283_v27, %s6603_s26 }
0x1b53   :  { %v2452_v38 = vpop.permute.xlu1 %2451 }
0x1b54   :  { %6085 = vmatmul.mubr.msk.f32.vlgmr.msra.gmra.mxu0 %vm108_vm1, %v2452_v38 }
0x1b55   :  { %v2528_v28 = vpop.permute.xlu0 %2527  ;;  %6099 = vmatpush3.msra.mxu0 %v7112_v63  ;;  %6106 = vmatprep.mubr.msk.f32.mxu0 %vm6601_vm2, %v6600_v0 }
0x1b56   :  { %6096 = vmatmul.mubr.msk.f32.vlgmr.msra.gmra.mxu1 %vm108_vm1, %v2528_v28  ;;  %6100 = vmatprep.subr.mxu0 %v6600_v0 }
0x1b57   :  { %6101 = vmatpush3.msra.mxu0 %v7124_v18  ;;  %6110 = vmatpush3.msra.mxu1 %v7155_v43 }
0x1b58   :  { %6102 = vmatprep.subr.mxu0 %v6600_v0  ;;  %6111 = vmatprep.subr.mxu1 %v6600_v0 }
0x1b59   :  { %6103 = vmatpush3.msra.mxu0 %v7132_v48  ;;  %6112 = vmatpush3.msra.mxu1 %v7164_v50 }
0x1b5a   :  { %6104 = vmatprep.subr.mxu0 %v6600_v0  ;;  %6113 = vmatprep.subr.mxu1 %v6600_v0 }
0x1b5b   :  { %6105 = vmatpush3.msra.mxu0 %v7142_v42  ;;  %6114 = vmatpush3.msra.mxu1 %v7173_v52 }
0x1b5c   :  { %6115 = vmatprep.subr.mxu1 %v6600_v0  ;;  %6117 = vmatprep.mubr.msk.f32.mxu1 %vm6601_vm2, %v6600_v0 }
0x1b5d   :  { %6116 = vmatpush3.msra.mxu1 %v7186_v54  ;;  %6120 = vmatprep.subr.mxu0 %v6600_v0 }
0x1b5e   :  { %6131 = vmatprep.subr.mxu1 %v6600_v0 }
0x1c14   :  { %v2521_v37 = vpop.f32.mrf.mxu0 }
0x1c15   :  { %v2525_v45 = vadd.f32 %v2521_v37, %v1958_v39 }
0x1c16   :  { %v6086_v35 = vpop.f32.mrf.mxu0  ;;  %v2597_v36 = vpop.f32.mrf.mxu1 }
0x1c17   :  { %v2602_v40 = vrot.slane %v2597_v36, 4 }
0x1c18   :  { %v6097_v44 = vpop.f32.mrf.mxu1 }
0x1c19   :  { %v2604_v9 = vadd.f32 %v2602_v40, %v7235_v7 }
0x1c1b   :  { %v2605_v17 = vsel %vm502_vm3, %v2525_v45, %v2604_v9 }
0x1c1c   :  { %6440 = vtanh.f32 %v2605_v17  ;;  %v5501_v47 = vmul.f32 -1.442695, %v2605_v17 }
0x1c1e   :  { %6442 = vpow2.f32 %v5501_v47 }
0x1c29   :  { %v6441_v46 = vpop.eup %6440 }
0x1c2a   :  { %2615 = vrot.lane.b32.xlu0 %v6441_v46, %s6602_s4 }
0x1c2b   :  { %v6443_v20 = vpop.eup %6442 }
0x1c2c   :  { %v2609_v2 = vadd.f32 1.0, %v6443_v20 }
0x1c2e   :  { %6444 = vrcp.f32 %v2609_v2 }
0x1c3b   :  { %v6445_v49 = vpop.eup %6444 }
0x1c3c   :  { %v2613_v61 = vmul.f32 %v6445_v49, %v2443_v31 }
0x1c9c   :  { %v2616_v21 = vpop.permute.xlu0 %2615 }
0x1c9d   :  { %v2618_v55 = vmul.f32 %v6445_v49, %v2616_v21 }
0x1c9f   :  { %2620 = vrot.lane.b32.xlu1 %v2618_v55, %s6602_s4 }
0x1d11   :  { %v2621_v58 = vpop.permute.xlu1 %2620 }
0x1d12   :  { %v2623_v59 = vadd.f32 %v2621_v58, %v2613_v61  ;;  %v1963_v61 = vadd.f32 %v7242_v15, %v7244_v16 }
0x1d14   :  { %6446 = vtanh.f32 %v2623_v59 }
0x1d21   :  { %v6447_v62 = vpop.eup %6446 }
0x1d22   :  { %2626 = vrot.lane.b32.xlu0 %v6447_v62, %s6602_s4 }
0x1d94   :  { %v2627_v3 = vpop.permute.xlu0 %2626 }
0x1d95   :  { %v7317_v5 = vmul.f32 %v6445_v49, %v2627_v3 }
0x1d97   :  { %2631 = vrot.lane.b32.xlu1 %v7317_v5, %s6603_s26  ;;  %v2709_v6 = vrot.slane %v7317_v5, 4 }
0x1d99   :  { %2710 = vrot.lane.b32.xlu0 %v2709_v6, %s6603_s26 }
0x1e09   :  { %v2632_v11 = vpop.permute.xlu1 %2631 }
0x1e0a   :  { %6107 = vmatmul.mubr.msk.f32.vlgmr.msra.gmra.mxu0 %vm108_vm1, %v2632_v11 }
0x1e0b   :  { %v2711_v12 = vpop.permute.xlu0 %2710  ;;  %6121 = vmatpush3.msra.mxu0 %v7112_v63  ;;  %6128 = vmatprep.mubr.msk.f32.mxu0 %vm6601_vm2, %v6600_v0 }
0x1e0c   :  { %6118 = vmatmul.mubr.msk.f32.vlgmr.msra.gmra.mxu1 %vm108_vm1, %v2711_v12  ;;  %6122 = vmatprep.subr.mxu0 %v6600_v0 }
0x1e0d   :  { %6123 = vmatpush3.msra.mxu0 %v7124_v18  ;;  %6132 = vmatpush3.msra.mxu1 %v7155_v43 }
0x1e0e   :  { %6124 = vmatprep.subr.mxu0 %v6600_v0  ;;  %6133 = vmatprep.subr.mxu1 %v6600_v0 }
0x1e0f   :  { %6125 = vmatpush3.msra.mxu0 %v7132_v48  ;;  %6134 = vmatpush3.msra.mxu1 %v7164_v50 }
0x1e10   :  { %6126 = vmatprep.subr.mxu0 %v6600_v0  ;;  %6135 = vmatprep.subr.mxu1 %v6600_v0 }
0x1e11   :  { %6127 = vmatpush3.msra.mxu0 %v7142_v42  ;;  %6136 = vmatpush3.msra.mxu1 %v7173_v52 }
0x1e12   :  { %6137 = vmatprep.subr.mxu1 %v6600_v0  ;;  %6139 = vmatprep.mubr.msk.f32.mxu1 %vm6601_vm2, %v6600_v0 }
0x1e13   :  { %6138 = vmatpush3.msra.mxu1 %v7186_v54  ;;  %6142 = vmatprep.subr.mxu0 %v6600_v0 }
0x1e14   :  { %6153 = vmatprep.subr.mxu1 %v6600_v0 }
0x1eca   :  { %v2701_v19 = vpop.f32.mrf.mxu0 }
0x1ecb   :  { %v2706_v24 = vrot.slane %v2701_v19, 4 }
0x1ecc   :  { %v6108_v25 = vpop.f32.mrf.mxu0  ;;  %v2780_v26 = vpop.f32.mrf.mxu1 }
0x1ecd   :  { %v2708_v22 = vadd.f32 %v2706_v24, %v1958_v39  ;;  %v2784_v23 = vadd.f32 %v2780_v26, %v7235_v7 }
0x1ece   :  { %v6119_v31 = vpop.f32.mrf.mxu1 }
0x1ecf   :  { %v2786_v34 = vrot.slane %v2708_v22, 4  ;;  %v2789_v29 = vrot.slane %v2784_v23, 4 }
0x1ed1   :  { %v2791_v32 = vsel %vm502_vm3, %v2786_v34, %v2789_v29 }
0x1ed2   :  { %6448 = vtanh.f32 %v2791_v32  ;;  %v5504_v28 = vmul.f32 -1.442695, %v2791_v32 }
0x1ed4   :  { %6450 = vpow2.f32 %v5504_v28 }
0x1edf   :  { %v6449_v38 = vpop.eup %6448 }
0x1ee0   :  { %2801 = vrot.lane.b32.xlu1 %v6449_v38, %s6602_s4 }
0x1ee1   :  { %v6451_v37 = vpop.eup %6450 }
0x1ee2   :  { %v2795_v35 = vadd.f32 1.0, %v6451_v37 }
0x1ee4   :  { %6452 = vrcp.f32 %v2795_v35 }
0x1ef1   :  { %v6453_v36 = vpop.eup %6452 }
0x1ef2   :  { %v2799_v7 = vmul.f32 %v6453_v36, %v2623_v59 }
0x1f52   :  { %v2802_v40 = vpop.permute.xlu1 %2801 }
0x1f53   :  { %v2804_v44 = vmul.f32 %v6453_v36, %v2802_v40 }
0x1f55   :  { %2806 = vrot.lane.b32.xlu0 %v2804_v44, %s6602_s4 }
0x1fc7   :  { %v2807_v39 = vpop.permute.xlu0 %2806 }
0x1fc8   :  { %v2809_v45 = vadd.f32 %v2807_v39, %v2799_v7 }
0x1fca   :  { %6454 = vtanh.f32 %v2809_v45 }
0x1fd7   :  { %v6455_v9 = vpop.eup %6454 }
0x1fd8   :  { %2812 = vrot.lane.b32.xlu1 %v6455_v9, %s6602_s4 }
0x204a   :  { %v2813_v17 = vpop.permute.xlu1 %2812 }
0x204b   :  { %v2815_v46 = vmul.f32 %v6453_v36, %v2813_v17 }
0x204d   :  { %v7350_v47 = vrot.slane %v2815_v46, 4  ;;  %2817 = vrot.lane.b32.xlu1 %v2815_v46, %s6603_s26 }
0x204f   :  { %2893 = vrot.lane.b32.xlu0 %v7350_v47, %s6603_s26 }
0x20bf   :  { %v2818_v20 = vpop.permute.xlu1 %2817 }
0x20c0   :  { %6129 = vmatmul.mubr.msk.f32.vlgmr.msra.gmra.mxu0 %vm108_vm1, %v2818_v20 }
0x20c1   :  { %v2894_v2 = vpop.permute.xlu0 %2893  ;;  %6143 = vmatpush3.msra.mxu0 %v7112_v63  ;;  %6150 = vmatprep.mubr.msk.f32.mxu0 %vm6601_vm2, %v6600_v0 }
0x20c2   :  { %6140 = vmatmul.mubr.msk.f32.vlgmr.msra.gmra.mxu1 %vm108_vm1, %v2894_v2  ;;  %6144 = vmatprep.subr.mxu0 %v6600_v0 }
0x20c3   :  { %6145 = vmatpush3.msra.mxu0 %v7124_v18  ;;  %6154 = vmatpush3.msra.mxu1 %v7155_v43 }
0x20c4   :  { %6146 = vmatprep.subr.mxu0 %v6600_v0  ;;  %6155 = vmatprep.subr.mxu1 %v6600_v0 }
0x20c5   :  { %6147 = vmatpush3.msra.mxu0 %v7132_v48  ;;  %6156 = vmatpush3.msra.mxu1 %v7164_v50 }
0x20c6   :  { %6148 = vmatprep.subr.mxu0 %v6600_v0  ;;  %6157 = vmatprep.subr.mxu1 %v6600_v0 }
0x20c7   :  { %6149 = vmatpush3.msra.mxu0 %v7142_v42  ;;  %6158 = vmatpush3.msra.mxu1 %v7173_v52 }
0x20c8   :  { %6159 = vmatprep.subr.mxu1 %v6600_v0  ;;  %6161 = vmatprep.mubr.msk.f32.mxu1 %vm6601_vm2, %v6600_v0 }
0x20c9   :  { %6160 = vmatpush3.msra.mxu1 %v7186_v54  ;;  %6164 = vmatprep.subr.mxu0 %v6600_v0 }
0x20ca   :  { %6175 = vmatprep.subr.mxu1 %v6600_v0 }
0x2180   :  { %v2887_v49 = vpop.f32.mrf.mxu0 }
0x2181   :  { %v2891_v62 = vadd.f32 %v2887_v49, %v1963_v61 }
0x2182   :  { %v6130_v21 = vpop.f32.mrf.mxu0  ;;  %v2963_v55 = vpop.f32.mrf.mxu1 }
0x2183   :  { %v2968_v58 = vrot.slane %v2963_v55, 4 }
0x2184   :  { %v6141_v59 = vpop.f32.mrf.mxu1 }
0x2185   :  { %v2970_v3 = vadd.f32 %v2968_v58, %v7229_v60 }
0x2187   :  { %v2971_v6 = vsel %vm502_vm3, %v2891_v62, %v2970_v3 }
0x2188   :  { %6456 = vtanh.f32 %v2971_v6  ;;  %v5507_v12 = vmul.f32 -1.442695, %v2971_v6 }
0x218a   :  { %6458 = vpow2.f32 %v5507_v12 }
0x2195   :  { %v6457_v11 = vpop.eup %6456 }
0x2196   :  { %2981 = vrot.lane.b32.xlu0 %v6457_v11, %s6602_s4 }
0x2197   :  { %v6459_v19 = vpop.eup %6458 }
0x2198   :  { %v2975_v24 = vadd.f32 1.0, %v6459_v19 }
0x219a   :  { %6460 = vrcp.f32 %v2975_v24 }
0x21a7   :  { %v6461_v25 = vpop.eup %6460 }
0x21a8   :  { %v2979_v16 = vmul.f32 %v6461_v25, %v2809_v45 }
0x2208   :  { %v2982_v26 = vpop.permute.xlu0 %2981 }
0x2209   :  { %v2984_v22 = vmul.f32 %v6461_v25, %v2982_v26 }
0x220b   :  { %2986 = vrot.lane.b32.xlu1 %v2984_v22, %s6602_s4 }
0x227d   :  { %v2987_v23 = vpop.permute.xlu1 %2986 }
0x227e   :  { %v2989_v31 = vadd.f32 %v2987_v23, %v2979_v16 }
0x2280   :  { %6462 = vtanh.f32 %v2989_v31 }
0x228d   :  { %v6463_v34 = vpop.eup %6462 }
0x228e   :  { %2992 = vrot.lane.b32.xlu0 %v6463_v34, %s6602_s4 }
0x2300   :  { %v2993_v29 = vpop.permute.xlu0 %2992 }
0x2301   :  { %v7384_v32 = vmul.f32 %v6461_v25, %v2993_v29 }
0x2303   :  { %2997 = vrot.lane.b32.xlu1 %v7384_v32, %s6603_s26  ;;  %v3075_v38 = vrot.slane %v7384_v32, 4 }
0x2305   :  { %3076 = vrot.lane.b32.xlu0 %v3075_v38, %s6603_s26 }
0x2375   :  { %v2998_v28 = vpop.permute.xlu1 %2997 }
0x2376   :  { %6151 = vmatmul.mubr.msk.f32.vlgmr.msra.gmra.mxu0 %vm108_vm1, %v2998_v28 }
0x2377   :  { %v3077_v37 = vpop.permute.xlu0 %3076  ;;  %6165 = vmatpush3.msra.mxu0 %v7112_v63  ;;  %6172 = vmatprep.mubr.msk.f32.mxu0 %vm6601_vm2, %v6600_v0 }
0x2378   :  { %6162 = vmatmul.mubr.msk.f32.vlgmr.msra.gmra.mxu1 %vm108_vm1, %v3077_v37  ;;  %6166 = vmatprep.subr.mxu0 %v6600_v0 }
0x2379   :  { %6167 = vmatpush3.msra.mxu0 %v7124_v18  ;;  %6176 = vmatpush3.msra.mxu1 %v7155_v43 }
0x237a   :  { %6168 = vmatprep.subr.mxu0 %v6600_v0  ;;  %6177 = vmatprep.subr.mxu1 %v6600_v0 }
0x237b   :  { %6169 = vmatpush3.msra.mxu0 %v7132_v48  ;;  %6178 = vmatpush3.msra.mxu1 %v7164_v50 }
0x237c   :  { %6170 = vmatprep.subr.mxu0 %v6600_v0  ;;  %6179 = vmatprep.subr.mxu1 %v6600_v0 }
0x237d   :  { %6171 = vmatpush3.msra.mxu0 %v7142_v42  ;;  %6180 = vmatpush3.msra.mxu1 %v7173_v52 }
0x237e   :  { %6181 = vmatprep.subr.mxu1 %v6600_v0  ;;  %6183 = vmatprep.mubr.msk.f32.mxu1 %vm6601_vm2, %v6600_v0 }
0x237f   :  { %6182 = vmatpush3.msra.mxu1 %v7186_v54  ;;  %6186 = vmatprep.subr.mxu0 %v6600_v0 }
0x2380   :  { %6197 = vmatprep.subr.mxu1 %v6600_v0 }
0x2436   :  { %v3067_v35 = vpop.f32.mrf.mxu0 }
0x2437   :  { %v3072_v36 = vrot.slane %v3067_v35, 4 }
0x2438   :  { %v6152_v40 = vpop.f32.mrf.mxu0  ;;  %v3146_v44 = vpop.f32.mrf.mxu1 }
0x2439   :  { %v3074_v7 = vadd.f32 %v3072_v36, %v1963_v61  ;;  %v3150_v39 = vadd.f32 %v3146_v44, %v7229_v60 }
0x243a   :  { %v6163_v45 = vpop.f32.mrf.mxu1 }
0x243b   :  { %v3152_v9 = vrot.slane %v3074_v7, 4  ;;  %v3155_v17 = vrot.slane %v3150_v39, 4 }
0x243d   :  { %v3157_v46 = vsel %vm502_vm3, %v3152_v9, %v3155_v17 }
0x243e   :  { %6464 = vtanh.f32 %v3157_v46  ;;  %v5510_v2 = vmul.f32 -1.442695, %v3157_v46 }
0x2440   :  { %6466 = vpow2.f32 %v5510_v2 }
0x244b   :  { %v6465_v20 = vpop.eup %6464 }
0x244c   :  { %3167 = vrot.lane.b32.xlu1 %v6465_v20, %s6602_s4 }
0x244d   :  { %v6467_v49 = vpop.eup %6466 }
0x244e   :  { %v3161_v21 = vadd.f32 1.0, %v6467_v49 }
0x2450   :  { %6468 = vrcp.f32 %v3161_v21 }
0x245d   :  { %v6469_v55 = vpop.eup %6468 }
0x245e   :  { %v3165_v60 = vmul.f32 %v6469_v55, %v2989_v31 }
0x24be   :  { %v3168_v58 = vpop.permute.xlu1 %3167 }
0x24bf   :  { %v3170_v59 = vmul.f32 %v6469_v55, %v3168_v58 }
0x24c1   :  { %3172 = vrot.lane.b32.xlu0 %v3170_v59, %s6602_s4 }
0x2533   :  { %v3173_v61 = vpop.permute.xlu0 %3172 }
0x2534   :  { %v3175_v62 = vadd.f32 %v3173_v61, %v3165_v60 }
0x2536   :  { %6470 = vtanh.f32 %v3175_v62 }
0x2543   :  { %v6471_v3 = vpop.eup %6470 }
0x2544   :  { %3178 = vrot.lane.b32.xlu1 %v6471_v3, %s6602_s4 }
0x25b6   :  { %v3179_v6 = vpop.permute.xlu1 %3178 }
0x25b7   :  { %v3181_v11 = vmul.f32 %v6469_v55, %v3179_v6 }
0x25b9   :  { %v7417_v12 = vrot.slane %v3181_v11, 4  ;;  %3183 = vrot.lane.b32.xlu1 %v3181_v11, %s6603_s26 }
0x25bb   :  { %3259 = vrot.lane.b32.xlu0 %v7417_v12, %s6603_s26 }
0x262b   :  { %v3184_v19 = vpop.permute.xlu1 %3183 }
0x262c   :  { %6173 = vmatmul.mubr.msk.f32.vlgmr.msra.gmra.mxu0 %vm108_vm1, %v3184_v19 }
0x262d   :  { %v3260_v24 = vpop.permute.xlu0 %3259  ;;  %6187 = vmatpush3.msra.mxu0 %v7112_v63  ;;  %6194 = vmatprep.mubr.msk.f32.mxu0 %vm6601_vm2, %v6600_v0 }
0x262e   :  { %6184 = vmatmul.mubr.msk.f32.vlgmr.msra.gmra.mxu1 %vm108_vm1, %v3260_v24  ;;  %6188 = vmatprep.subr.mxu0 %v6600_v0  ;;  %v3574_v24 = vld [vmem:[%s7907_s8 + $0x18] sm:$0xff] }
0x262f   :  { %6189 = vmatpush3.msra.mxu0 %v7124_v18  ;;  %6198 = vmatpush3.msra.mxu1 %v7155_v43  ;;  %v1968_v43 = vadd.f32 %v7237_v8, %v7242_v15 }
0x2630   :  { %6190 = vmatprep.subr.mxu0 %v6600_v0  ;;  %6199 = vmatprep.subr.mxu1 %v6600_v0 }
0x2631   :  { %6191 = vmatpush3.msra.mxu0 %v7132_v48  ;;  %6200 = vmatpush3.msra.mxu1 %v7164_v50 }
0x2632   :  { %6192 = vmatprep.subr.mxu0 %v6600_v0  ;;  %6201 = vmatprep.subr.mxu1 %v6600_v0 }
0x2633   :  { %6193 = vmatpush3.msra.mxu0 %v7142_v42  ;;  %6202 = vmatpush3.msra.mxu1 %v7173_v52 }
0x2634   :  { %6203 = vmatprep.subr.mxu1 %v6600_v0  ;;  %6205 = vmatprep.mubr.msk.f32.mxu1 %vm6601_vm2, %v6600_v0 }
0x2635   :  { %6204 = vmatpush3.msra.mxu1 %v7186_v54  ;;  %6208 = vmatprep.subr.mxu0 %v3574_v24 }
0x26ec   :  { %v3253_v63 = vpop.f32.mrf.mxu0 }
0x26ed   :  { %v3257_v26 = vadd.f32 %v3253_v63, %v1968_v43 }
0x26ee   :  { %v6174_v18 = vpop.f32.mrf.mxu0  ;;  %v3329_v48 = vpop.f32.mrf.mxu1 }
0x26ef   :  { %v3334_v50 = vrot.slane %v3329_v48, 4  ;;  %v3573_v18 = vld [vmem:[%s7907_s8 + $0x10] sm:$0xff]  ;;  %v3572_v48 = vld [vmem:[%s7907_s8 + $0x8] sm:$0xff] }
0x26f0   :  { %v6185_v25 = vpop.f32.mrf.mxu1 }
0x26f1   :  { %v3336_v42 = vadd.f32 %v3334_v50, %v7233_v1  ;;  %v5520_v25 = vld [vmem:[%s7907_s8 + $0x38] sm:$0xff] }
0x26f2   :  { %6222 = vmatprep.subr.mxu1 %v5520_v25 }
0x26f3   :  { %v3337_v52 = vsel %vm502_vm3, %v3257_v26, %v3336_v42  ;;  %v5519_v26 = vld [vmem:[%s7907_s8 + $0x30] sm:$0xff]  ;;  %v5518_v42 = vld [vmem:[%s7907_s8 + $0x28] sm:$0xff] }
0x26f4   :  { %6472 = vtanh.f32 %v3337_v52  ;;  %v5513_v16 = vmul.f32 -1.442695, %v3337_v52  ;;  %v7498_v52 = vsel %vm502_vm3, %v7417_v12, %v7384_v32 }
0x26f6   :  { %6474 = vpow2.f32 %v5513_v16  ;;  %v7508_v16 = vsel %vm502_vm3, %v7317_v5, %v7350_v47 }
0x2701   :  { %v6473_v22 = vpop.eup %6472 }
0x2702   :  { %3347 = vrot.lane.b32.xlu0 %v6473_v22, %s6602_s4  ;;  %v5517_v22 = vld [vmem:[%s7907_s8 + $0x20] sm:$0xff] }
0x2703   :  { %v6475_v54 = vpop.eup %6474 }
0x2704   :  { %v3341_v23 = vadd.f32 1.0, %v6475_v54  ;;  %v7516_v54 = vsel %vm502_vm3, %v7283_v27, %v7251_v10 }
0x2706   :  { %6476 = vrcp.f32 %v3341_v23 }
0x2713   :  { %v6477_v31 = vpop.eup %6476 }
0x2714   :  { %v3345_v8 = vmul.f32 %v6477_v31, %v3175_v62 }
0x2774   :  { %v3348_v34 = vpop.permute.xlu0 %3347 }
0x2775   :  { %v3350_v29 = vmul.f32 %v6477_v31, %v3348_v34 }
0x2777   :  { %3352 = vrot.lane.b32.xlu1 %v3350_v29, %s6602_s4 }
0x27e9   :  { %v3353_v15 = vpop.permute.xlu1 %3352 }
0x27ea   :  { %v3355_v38 = vadd.f32 %v3353_v15, %v3345_v8 }
0x27ec   :  { %6478 = vtanh.f32 %v3355_v38 }
0x27f9   :  { %v6479_v28 = vpop.eup %6478 }
0x27fa   :  { %3358 = vrot.lane.b32.xlu0 %v6479_v28, %s6602_s4  ;;  %v7543_v28 = vld [vmem:[#allocation10] sm:$0xff] }
0x286c   :  { %v3359_v37 = vpop.permute.xlu0 %3358 }
0x286d   :  { %v7449_v35 = vmul.f32 %v6477_v31, %v3359_v37  ;;  %v7553_v37 = vsel %vm502_vm3, %v7384_v32, %v7417_v12  ;;  %v3810_v32 = vld [vmem:[#allocation6] sm:$0xff] }
0x286f   :  { %3363 = vrot.lane.b32.xlu1 %v7449_v35, %s6603_s26  ;;  %v3441_v36 = vrot.slane %v7449_v35, 4 }
0x2871   :  { %3442 = vrot.lane.b32.xlu0 %v3441_v36, %s6603_s26  ;;  %v7563_v36 = vld [vmem:[#allocation10 + $0x10] sm:$0xff] }
0x28e1   :  { %v3364_v40 = vpop.permute.xlu1 %3363 }
0x28e2   :  { %6195 = vmatmul.mubr.msk.f32.vlgmr.msra.gmra.mxu0 %vm108_vm1, %v3364_v40 }
0x28e3   :  { %v3443_v44 = vpop.permute.xlu0 %3442  ;;  %6209 = vmatpush3.msra.mxu0 %v3574_v24 }
0x28e4   :  { %6206 = vmatmul.mubr.msk.f32.vlgmr.msra.gmra.mxu1 %vm108_vm1, %v3443_v44  ;;  %6210 = vmatprep.subr.mxu0 %v3573_v18  ;;  %v3886_v44 = vrot.slane %v3810_v32, 4 }
0x28e5   :  { %6211 = vmatpush3.msra.mxu0 %v3573_v18  ;;  %6223 = vmatpush3.msra.mxu1 %v5520_v25 }
0x28e6   :  { %6212 = vmatprep.subr.mxu0 %v3572_v48  ;;  %6224 = vmatprep.subr.mxu1 %v5519_v26 }
0x28e7   :  { %6213 = vmatpush3.msra.mxu0 %v3572_v48  ;;  %6225 = vmatpush3.msra.mxu1 %v5519_v26 }
0x28e8   :  { %6226 = vmatprep.subr.mxu1 %v5518_v42 }
0x28e9   :  { %6227 = vmatpush3.msra.mxu1 %v5518_v42 }
0x28ea   :  { %6228 = vmatprep.subr.mxu1 %v5517_v22 }
0x28eb   :  { %6229 = vmatpush3.msra.mxu1 %v5517_v22 }
0x28ec   :  { %6243 = vmatprep.subr.mxu1 %v6600_v0 }
0x29a2   :  { %v3433_v7 = vpop.f32.mrf.mxu0 }
0x29a3   :  { %v3438_v39 = vrot.slane %v3433_v7, 4 }
0x29a4   :  { %v6196_v45 = vpop.f32.mrf.mxu0  ;;  %v3512_v9 = vpop.f32.mrf.mxu1 }
0x29a5   :  { %v3440_v17 = vadd.f32 %v3438_v39, %v1968_v43  ;;  %v3516_v46 = vadd.f32 %v3512_v9, %v7233_v1  ;;  %v7464_v1 = vsel %vm502_vm3, %v7251_v10, %v7283_v27  ;;  %v3571_v43 = vld [vmem:[%s7907_s8] sm:$0xff]  ;;  %v7535_v10 = vld [vmem:[#allocation10 + $0x8] sm:$0xff]  ;;  %s6604_s8 = smov 16  }
0x29a6   :  { %v6207_v20 = vpop.f32.mrf.mxu1  ;;  %6214 = vmatprep.subr.mxu0 %v3571_v43  ;;  %v5527_v45 = vld [vmem:[%s7909_s10 + $0x1] ss:$0 sm:$0xff] }
0x29a7   :  { %v3518_v2 = vrot.slane %v3440_v17, 4  ;;  %v3521_v49 = vrot.slane %v3516_v46, 4  ;;  %6215 = vmatpush3.msra.mxu0 %v3571_v43 }
0x29a8   :  { %6236 = vmatprep.subr.mxu0 %v6600_v0 }
0x29a9   :  { %v3523_v21 = vsel %vm502_vm3, %v3518_v2, %v3521_v49 }
0x29aa   :  { %6480 = vtanh.f32 %v3523_v21  ;;  %v5516_v58 = vmul.f32 -1.442695, %v3523_v21 }
0x29ac   :  { %6482 = vpow2.f32 %v5516_v58 }
0x29b7   :  { %v6481_v55 = vpop.eup %6480 }
0x29b8   :  { %3533 = vrot.lane.b32.xlu1 %v6481_v55, %s6602_s4 }
0x29b9   :  { %v6483_v59 = vpop.eup %6482 }
0x29ba   :  { %v3527_v60 = vadd.f32 1.0, %v6483_v59 }
0x29bc   :  { %6484 = vrcp.f32 %v3527_v60 }
0x29c9   :  { %v6485_v61 = vpop.eup %6484 }
0x29ca   :  { %v3531_v6 = vmul.f32 %v6485_v61, %v3355_v38  ;;  %v7541_v38 = vsel %vm502_vm3, %v7350_v47, %v7317_v5  ;;  %v3811_v5 = vld [vmem:[#allocation7] sm:$0xff] }
0x2a2a   :  { %v3534_v62 = vpop.permute.xlu1 %3533 }
0x2a2b   :  { %v3536_v3 = vmul.f32 %v6485_v61, %v3534_v62  ;;  %v7607_v62 = vld [vmem:[%s7909_s10] ss:$0 sm:$0xff]  ;;  %s6606_s10 = smov 96  }
0x2a2d   :  { %3538 = vrot.lane.b32.xlu0 %v3536_v3, %s6602_s4 }
0x2a31   :  { %3598 = vrot.lane.b32.xlu0 %v7464_v1, %s6603_s26 }
0x2a9f   :  { %v3539_v11 = vpop.permute.xlu0 %3538 }
0x2aa0   :  { %v7468_v19 = vadd.f32 %v3539_v11, %v3531_v6 }
0x2aa2   :  { %6486 = vtanh.f32 %v7468_v19 }
0x2aa3   :  { %v3599_v63 = vpop.permute.xlu0 %3598 }
0x2aa4   :  { %6216 = vmatprep.mubr.msk.f32.mxu0 %vm108_vm1, %v3599_v63 }
0x2aaf   :  { %v6487_v50 = vpop.eup %6486 }
0x2ab0   :  { %3544 = vrot.lane.b32.xlu1 %v6487_v50, %s6602_s4 }
0x2ab4   :  { %3711 = vrot.lane.b32.xlu1 %v7498_v52, %s6603_s26 }
0x2ab8   :  { %3600 = vrot.lane.b32.xlu1 %v7508_v16, %s6603_s26 }
0x2abc   :  { %3715 = vrot.lane.b32.xlu1 %v7516_v54, %s6603_s26 }
0x2b22   :  { %v3545_v23 = vpop.permute.xlu1 %3544 }
0x2b23   :  { %v7520_v31 = vmul.f32 %v6485_v61, %v3545_v23 }
0x2b25   :  { %v3561_v34 = vrot.slane %v7520_v31, 4 }
0x2b26   :  { %v3712_v29 = vpop.permute.xlu1 %3711 }
0x2b27   :  { %v7525_v8 = vsel %vm502_vm3, %v3561_v34, %v7449_v35  ;;  %v7529_v15 = vsel %vm502_vm3, %v7449_v35, %v3561_v34  ;;  %v7559_v35 = vld [vmem:[#allocation10 + $0x18] sm:$0xff] }
0x2b28   :  { %3709 = vrot.lane.b32.xlu0 %v7525_v8, %s6603_s26  ;;  %3604 = vrot.lane.b32.xlu1 %v7529_v15, %s6603_s26 }
0x2b2a   :  { %v3601_v27 = vpop.permute.xlu1 %3600 }
0x2b2b   :  { %6217 = vmatmul.mubr.msk.f32.vlgmr.msra.gmra.mxu0 %vm108_vm1, %v3601_v27 }
0x2b2c   :  { %3713 = vrot.lane.b32.xlu0 %v7541_v38, %s6603_s26  ;;  %6237 = vmatpush3.msra.mxu0 %v7535_v10 }
0x2b2d   :  { %6238 = vmatprep.subr.mxu0 %v6600_v0  ;;  %3972 = vrot.lane.b32.xlu1 %v3811_v5, %s6604_s8 }
0x2b2e   :  { %6239 = vmatpush3.msra.mxu0 %v7543_v28  ;;  %v3716_v40 = vpop.permute.xlu1 %3715 }
0x2b2f   :  { %6250 = vmatprep.subr.mxu0 %v6600_v0 }
0x2b30   :  { %3602 = vrot.lane.b32.xlu0 %v7553_v37, %s6603_s26 }
0x2b9a   :  { %v3710_v47 = vpop.permute.xlu0 %3709  ;;  %v3605_v39 = vpop.permute.xlu1 %3604 }
0x2b9b   :  { %6230 = vmatprep.mubr.msk.f32.mxu1 %vm108_vm1, %v3710_v47 }
0x2b9c   :  { %6231 = vmatmul.mubr.msk.f32.vlgmr.msra.gmra.mxu1 %vm108_vm1, %v3712_v29 }
0x2b9d   :  { %6244 = vmatpush3.msra.mxu1 %v7559_v35 }
0x2b9e   :  { %v3714_v12 = vpop.permute.xlu0 %3713  ;;  %6245 = vmatprep.subr.mxu1 %v6600_v0 }
0x2b9f   :  { %6233 = vmatprep.mubr.msk.f32.mxu1 %vm108_vm1, %v3714_v12  ;;  %6246 = vmatpush3.msra.mxu1 %v7563_v36  ;;  %v3973_v27 = vpop.permute.xlu1 %3972 }
0x2ba0   :  { %6234 = vmatmul.mubr.msk.f32.gmra.mxu1 %vm108_vm1, %v3716_v40  ;;  %6257 = vmatprep.subr.mxu1 %v6600_v0 }
0x2ba1   :  { %6247 = vmatprep.mubr.msk.f32.mxu1 %vm6601_vm2, %v6600_v0 }
0x2ba2   :  { %v3603_v7 = vpop.permute.xlu0 %3602 }
0x2ba3   :  { %6219 = vmatprep.mubr.msk.f32.mxu0 %vm108_vm1, %v3603_v7 }
0x2ba4   :  { %6220 = vmatmul.mubr.msk.f32.gmra.mxu0 %vm108_vm1, %v3605_v39  ;;  %6248 = vmatmul.mubr.msk.f32.vlgmr.msra.gmra.mxu1 %vm113_vm0, %v3886_v44 }
0x2ba5   :  { %6240 = vmatprep.mubr.msk.f32.mxu0 %vm6601_vm2, %v6600_v0  ;;  %6258 = vmatpush3.msra.mxu1 %v7559_v35 }
0x2ba6   :  { %6259 = vmatprep.subr.mxu1 %v6600_v0  ;;  %6261 = vmatprep.mubr.msk.f32.mxu1 %vm6601_vm2, %v6600_v0 }
0x2ba7   :  { %6260 = vmatpush3.msra.mxu1 %v7563_v36 }
0x2ba8   :  { %6241 = vmatmul.mubr.msk.f32.vlgmr.msra.gmra.mxu0 %vm113_vm0, %v3810_v32  ;;  %6271 = vmatprep.subr.mxu1 %v6600_v0 }
0x2ba9   :  { %6251 = vmatpush3.msra.mxu0 %v7535_v10  ;;  %6254 = vmatprep.mubr.msk.f32.mxu0 %vm6601_vm2, %v6600_v0 }
0x2baa   :  { %6252 = vmatprep.subr.mxu0 %v6600_v0 }
0x2bab   :  { %6253 = vmatpush3.msra.mxu0 %v7543_v28 }
0x2bac   :  { %6264 = vmatprep.subr.mxu0 %v6600_v0 }
0x2beb   :  { %v7596_v46 = vpop.f32.mrf.mxu0 }
0x2bed   :  { %v3680_v21 = vpop.f32.mrf.mxu0 }
0x2bee   :  { %v3681_v11 = vadd.f32 %v7607_v62, %v3680_v21 }
0x2c5c   :  { %v6232_v9 = vpop.f32.mrf.mxu1 }
0x2c5d   :  { %v7594_v17 = vadd.f32 %v6232_v9, %v5527_v45 }
0x2c5e   :  { %v3791_v20 = vpop.f32.mrf.mxu1 }
0x2c5f   :  { %v7598_v2 = vadd.f32 %v5527_v45, %v3791_v20 }
0x2c60   :  { %v6235_v49 = vpop.f32.mrf.mxu1 }
0x2c61   :  { %v3807_v24 = vadd.f32 %v6235_v49, %v5527_v45 }
0x2c62   :  { %v3801_v55 = vpop.f32.mrf.mxu1 }
0x2c63   :  { %v7600_v58 = vadd.f32 %v5527_v45, %v3801_v55 }
0x2c64   :  { %v7602_v59 = vpop.f32.mrf.mxu0  ;;  %v3955_v60 = vpop.f32.mrf.mxu1 }
0x2c65   :  { %v3960_v61 = vrot.slane %v3955_v60, 4 }
0x2c66   :  { %v7609_v3 = vpop.f32.mrf.mxu0  ;;  %v6249_v6 = vpop.f32.mrf.mxu1 }
0x2c67   :  { %v3962_v18 = vadd.f32 %v3960_v61, %v3807_v24 }
0x2c68   :  { %v3881_v63 = vpop.f32.mrf.mxu0 }
0x2c69   :  { %v3885_v48 = vadd.f32 %v3881_v63, %v3681_v11 }
0x2c6a   :  { %v6242_v43 = vpop.f32.mrf.mxu0 }
0x2c6b   :  { %v3963_v50 = vsel %vm502_vm3, %v3885_v48, %v3962_v18 }
0x2c6c   :  { %6488 = vtanh.f32 %v3963_v50  ;;  %v5534_v26 = vmul.f32 -1.442695, %v3963_v50 }
0x2c6e   :  { %6490 = vpow2.f32 %v5534_v26 }
0x2c79   :  { %v6489_v25 = vpop.eup %6488 }
0x2c7a   :  { %3977 = vrot.lane.b32.xlu0 %v6489_v25, %s6605_s15 }
0x2c7b   :  { %v6491_v42 = vpop.eup %6490 }
0x2c7c   :  { %v3967_v22 = vadd.f32 1.0, %v6491_v42 }
0x2c7e   :  { %6492 = vrcp.f32 %v3967_v22 }
0x2c8b   :  { %v6493_v23 = vpop.eup %6492 }
0x2c8c   :  { %v3975_v5 = vmul.f32 %v6493_v23, %v3973_v27 }
0x2cec   :  { %v3978_v34 = vpop.permute.xlu0 %3977 }
0x2ced   :  { %v3980_v29 = vmul.f32 %v6493_v23, %v3978_v34 }
0x2cef   :  { %3982 = vrot.lane.b32.xlu0 %v3980_v29, %s6604_s8 }
0x2d61   :  { %v3983_v47 = vpop.permute.xlu0 %3982 }
0x2d62   :  { %v3985_v32 = vadd.f32 %v3983_v47, %v3975_v5 }
0x2d64   :  { %6494 = vtanh.f32 %v3985_v32 }
0x2d71   :  { %v6495_v12 = vpop.eup %6494 }
0x2d72   :  { %3988 = vrot.lane.b32.xlu1 %v6495_v12, %s6604_s8 }
0x2de4   :  { %v3989_v40 = vpop.permute.xlu1 %3988 }
0x2de5   :  { %v7616_v44 = vmul.f32 %v6493_v23, %v3989_v40 }
0x2de7   :  { %3993 = vrot.lane.b32.xlu0 %v7616_v44, %s6606_s10  ;;  %v4071_v7 = vrot.slane %v7616_v44, 4 }
0x2de9   :  { %4072 = vrot.lane.b32.xlu1 %v4071_v7, %s6606_s10 }
0x2e59   :  { %v3994_v39 = vpop.permute.xlu0 %3993 }
0x2e5a   :  { %6255 = vmatmul.mubr.msk.f32.vlgmr.msra.gmra.mxu0 %vm113_vm0, %v3994_v39  ;;  %v3686_v39 = vadd.f32 %v7596_v46, %v7607_v62 }
0x2e5b   :  { %v4073_v45 = vpop.permute.xlu1 %4072  ;;  %6265 = vmatpush3.msra.mxu0 %v7535_v10  ;;  %6268 = vmatprep.mubr.msk.f32.mxu0 %vm6601_vm2, %v6600_v0 }
0x2e5c   :  { %6262 = vmatmul.mubr.msk.f32.vlgmr.msra.gmra.mxu1 %vm113_vm0, %v4073_v45  ;;  %6266 = vmatprep.subr.mxu0 %v6600_v0 }
0x2e5d   :  { %6267 = vmatpush3.msra.mxu0 %v7543_v28  ;;  %6272 = vmatpush3.msra.mxu1 %v7559_v35 }
0x2e5e   :  { %6273 = vmatprep.subr.mxu1 %v6600_v0  ;;  %6275 = vmatprep.mubr.msk.f32.mxu1 %vm6601_vm2, %v6600_v0 }
0x2e5f   :  { %6274 = vmatpush3.msra.mxu1 %v7563_v36  ;;  %6278 = vmatprep.subr.mxu0 %v6600_v0 }
0x2e60   :  { %6285 = vmatprep.subr.mxu1 %v6600_v0 }
0x2f1a   :  { %v4063_v9 = vpop.f32.mrf.mxu0 }
0x2f1b   :  { %v4068_v20 = vrot.slane %v4063_v9, 4 }
0x2f1c   :  { %v6256_v49 = vpop.f32.mrf.mxu0  ;;  %v4142_v21 = vpop.f32.mrf.mxu1 }
0x2f1d   :  { %v4070_v55 = vadd.f32 %v4068_v20, %v3681_v11  ;;  %v4146_v60 = vadd.f32 %v4142_v21, %v3807_v24 }
0x2f1e   :  { %v6263_v61 = vpop.f32.mrf.mxu1 }
0x2f1f   :  { %v4148_v6 = vrot.slane %v4070_v55, 4  ;;  %v4151_v63 = vrot.slane %v4146_v60, 4 }
0x2f21   :  { %v4153_v18 = vsel %vm502_vm3, %v4148_v6, %v4151_v63 }
0x2f22   :  { %6496 = vtanh.f32 %v4153_v18  ;;  %v5537_v43 = vmul.f32 -1.442695, %v4153_v18 }
0x2f24   :  { %6498 = vpow2.f32 %v5537_v43 }
0x2f2f   :  { %v6497_v48 = vpop.eup %6496 }
0x2f30   :  { %4163 = vrot.lane.b32.xlu0 %v6497_v48, %s6605_s15 }
0x2f31   :  { %v6499_v50 = vpop.eup %6498 }
0x2f32   :  { %v4157_v25 = vadd.f32 1.0, %v6499_v50 }
0x2f34   :  { %6500 = vrcp.f32 %v4157_v25 }
0x2f41   :  { %v6501_v26 = vpop.eup %6500 }
0x2f42   :  { %v4161_v11 = vmul.f32 %v6501_v26, %v3985_v32 }
0x2fa2   :  { %v4164_v42 = vpop.permute.xlu0 %4163 }
0x2fa3   :  { %v4166_v22 = vmul.f32 %v6501_v26, %v4164_v42 }
0x2fa5   :  { %4168 = vrot.lane.b32.xlu1 %v4166_v22, %s6604_s8 }
0x3017   :  { %v4169_v24 = vpop.permute.xlu1 %4168 }
0x3018   :  { %v4171_v23 = vadd.f32 %v4169_v24, %v4161_v11 }
0x301a   :  { %6502 = vtanh.f32 %v4171_v23 }
0x3027   :  { %v6503_v34 = vpop.eup %6502 }
0x3028   :  { %4174 = vrot.lane.b32.xlu0 %v6503_v34, %s6604_s8 }
0x309a   :  { %v4175_v29 = vpop.permute.xlu0 %4174 }
0x309b   :  { %v4177_v27 = vmul.f32 %v6501_v26, %v4175_v29 }
0x309d   :  { %v7640_v5 = vrot.slane %v4177_v27, 4  ;;  %4179 = vrot.lane.b32.xlu0 %v4177_v27, %s6606_s10 }
0x309f   :  { %4255 = vrot.lane.b32.xlu1 %v7640_v5, %s6606_s10 }
0x310f   :  { %v4180_v47 = vpop.permute.xlu0 %4179 }
0x3110   :  { %6269 = vmatmul.mubr.msk.f32.vlgmr.msra.gmra.mxu0 %vm113_vm0, %v4180_v47 }
0x3111   :  { %v4256_v12 = vpop.permute.xlu1 %4255  ;;  %6279 = vmatpush3.msra.mxu0 %v7535_v10  ;;  %6282 = vmatprep.mubr.msk.f32.mxu0 %vm6601_vm2, %v6600_v0 }
0x3112   :  { %6276 = vmatmul.mubr.msk.f32.vlgmr.msra.gmra.mxu1 %vm113_vm0, %v4256_v12  ;;  %6280 = vmatprep.subr.mxu0 %v6600_v0 }
0x3113   :  { %6281 = vmatpush3.msra.mxu0 %v7543_v28  ;;  %6286 = vmatpush3.msra.mxu1 %v7559_v35 }
0x3114   :  { %6287 = vmatprep.subr.mxu1 %v6600_v0  ;;  %6289 = vmatprep.mubr.msk.f32.mxu1 %vm6601_vm2, %v6600_v0 }
0x3115   :  { %6288 = vmatpush3.msra.mxu1 %v7563_v36  ;;  %6292 = vmatprep.subr.mxu0 %v6600_v0 }
0x3116   :  { %6299 = vmatprep.subr.mxu1 %v6600_v0 }
0x31d0   :  { %v4249_v32 = vpop.f32.mrf.mxu0 }
0x31d1   :  { %v4253_v20 = vadd.f32 %v4249_v32, %v3686_v39 }
0x31d2   :  { %v6270_v40 = vpop.f32.mrf.mxu0  ;;  %v4325_v7 = vpop.f32.mrf.mxu1 }
0x31d3   :  { %v4330_v45 = vrot.slane %v4325_v7, 4 }
0x31d4   :  { %v6277_v9 = vpop.f32.mrf.mxu1 }
0x31d5   :  { %v4332_v49 = vadd.f32 %v4330_v45, %v7600_v58 }
0x31d7   :  { %v4333_v21 = vsel %vm502_vm3, %v4253_v20, %v4332_v49 }
0x31d8   :  { %6504 = vtanh.f32 %v4333_v21  ;;  %v5540_v60 = vmul.f32 -1.442695, %v4333_v21 }
0x31da   :  { %6506 = vpow2.f32 %v5540_v60 }
0x31e5   :  { %v6505_v55 = vpop.eup %6504 }
0x31e6   :  { %4343 = vrot.lane.b32.xlu1 %v6505_v55, %s6605_s15 }
0x31e7   :  { %v6507_v61 = vpop.eup %6506 }
0x31e8   :  { %v4337_v6 = vadd.f32 1.0, %v6507_v61 }
0x31ea   :  { %6508 = vrcp.f32 %v4337_v6 }
0x31f7   :  { %v6509_v63 = vpop.eup %6508 }
0x31f8   :  { %v4341_v46 = vmul.f32 %v6509_v63, %v4171_v23 }
0x3258   :  { %v4344_v18 = vpop.permute.xlu1 %4343 }
0x3259   :  { %v4346_v48 = vmul.f32 %v6509_v63, %v4344_v18 }
0x325b   :  { %4348 = vrot.lane.b32.xlu0 %v4346_v48, %s6604_s8 }
0x32cd   :  { %v4349_v43 = vpop.permute.xlu0 %4348 }
0x32ce   :  { %v4351_v50 = vadd.f32 %v4349_v43, %v4341_v46 }
0x32d0   :  { %6510 = vtanh.f32 %v4351_v50 }
0x32dd   :  { %v6511_v25 = vpop.eup %6510 }
0x32de   :  { %4354 = vrot.lane.b32.xlu1 %v6511_v25, %s6604_s8 }
0x3350   :  { %v4355_v26 = vpop.permute.xlu1 %4354 }
0x3351   :  { %v7666_v42 = vmul.f32 %v6509_v63, %v4355_v26 }
0x3353   :  { %4359 = vrot.lane.b32.xlu0 %v7666_v42, %s6606_s10  ;;  %v4437_v22 = vrot.slane %v7666_v42, 4 }
0x3355   :  { %4438 = vrot.lane.b32.xlu1 %v4437_v22, %s6606_s10 }
0x33c5   :  { %v4360_v11 = vpop.permute.xlu0 %4359 }
0x33c6   :  { %6283 = vmatmul.mubr.msk.f32.vlgmr.msra.gmra.mxu0 %vm113_vm0, %v4360_v11  ;;  %v3691_v11 = vadd.f32 %v7607_v62, %v7609_v3 }
0x33c7   :  { %v4439_v24 = vpop.permute.xlu1 %4438  ;;  %6293 = vmatpush3.msra.mxu0 %v7535_v10  ;;  %6296 = vmatprep.mubr.msk.f32.mxu0 %vm6601_vm2, %v6600_v0 }
0x33c8   :  { %6290 = vmatmul.mubr.msk.f32.vlgmr.msra.gmra.mxu1 %vm113_vm0, %v4439_v24  ;;  %6294 = vmatprep.subr.mxu0 %v6600_v0 }
0x33c9   :  { %6295 = vmatpush3.msra.mxu0 %v7543_v28  ;;  %6300 = vmatpush3.msra.mxu1 %v7559_v35 }
0x33ca   :  { %6301 = vmatprep.subr.mxu1 %v6600_v0  ;;  %6303 = vmatprep.mubr.msk.f32.mxu1 %vm6601_vm2, %v6600_v0 }
0x33cb   :  { %6302 = vmatpush3.msra.mxu1 %v7563_v36  ;;  %6306 = vmatprep.subr.mxu0 %v6600_v0 }
0x33cc   :  { %6313 = vmatprep.subr.mxu1 %v6600_v0 }
0x3486   :  { %v4429_v23 = vpop.f32.mrf.mxu0 }
0x3487   :  { %v4434_v34 = vrot.slane %v4429_v23, 4 }
0x3488   :  { %v6284_v29 = vpop.f32.mrf.mxu0  ;;  %v4508_v27 = vpop.f32.mrf.mxu1 }
0x3489   :  { %v4436_v47 = vadd.f32 %v4434_v34, %v3686_v39  ;;  %v4512_v12 = vadd.f32 %v4508_v27, %v7600_v58 }
0x348a   :  { %v6291_v32 = vpop.f32.mrf.mxu1 }
0x348b   :  { %v4514_v40 = vrot.slane %v4436_v47, 4  ;;  %v4517_v7 = vrot.slane %v4512_v12, 4 }
0x348d   :  { %v4519_v45 = vsel %vm502_vm3, %v4514_v40, %v4517_v7 }
0x348e   :  { %6512 = vtanh.f32 %v4519_v45  ;;  %v5543_v20 = vmul.f32 -1.442695, %v4519_v45 }
0x3490   :  { %6514 = vpow2.f32 %v5543_v20 }
0x349b   :  { %v6513_v9 = vpop.eup %6512 }
0x349c   :  { %4529 = vrot.lane.b32.xlu0 %v6513_v9, %s6605_s15 }
0x349d   :  { %v6515_v49 = vpop.eup %6514 }
0x349e   :  { %v4523_v21 = vadd.f32 1.0, %v6515_v49 }
0x34a0   :  { %6516 = vrcp.f32 %v4523_v21 }
0x34ad   :  { %v6517_v55 = vpop.eup %6516 }
0x34ae   :  { %v4527_v58 = vmul.f32 %v6517_v55, %v4351_v50 }
0x350e   :  { %v4530_v60 = vpop.permute.xlu0 %4529 }
0x350f   :  { %v4532_v61 = vmul.f32 %v6517_v55, %v4530_v60 }
0x3511   :  { %4534 = vrot.lane.b32.xlu1 %v4532_v61, %s6604_s8 }
0x3583   :  { %v4535_v39 = vpop.permute.xlu1 %4534 }
0x3584   :  { %v4537_v6 = vadd.f32 %v4535_v39, %v4527_v58 }
0x3586   :  { %6518 = vtanh.f32 %v4537_v6 }
0x3593   :  { %v6519_v63 = vpop.eup %6518 }
0x3594   :  { %4540 = vrot.lane.b32.xlu0 %v6519_v63, %s6604_s8 }
0x3606   :  { %v4541_v18 = vpop.permute.xlu0 %4540 }
0x3607   :  { %v4543_v48 = vmul.f32 %v6517_v55, %v4541_v18 }
0x3609   :  { %v7691_v46 = vrot.slane %v4543_v48, 4  ;;  %4545 = vrot.lane.b32.xlu0 %v4543_v48, %s6606_s10 }
0x360b   :  { %4621 = vrot.lane.b32.xlu1 %v7691_v46, %s6606_s10 }
0x367b   :  { %v4546_v43 = vpop.permute.xlu0 %4545 }
0x367c   :  { %6297 = vmatmul.mubr.msk.f32.vlgmr.msra.gmra.mxu0 %vm113_vm0, %v4546_v43 }
0x367d   :  { %v4622_v25 = vpop.permute.xlu1 %4621  ;;  %6307 = vmatpush3.msra.mxu0 %v7535_v10  ;;  %6310 = vmatprep.mubr.msk.f32.mxu0 %vm6601_vm2, %v6600_v0 }
0x367e   :  { %6304 = vmatmul.mubr.msk.f32.vlgmr.msra.gmra.mxu1 %vm113_vm0, %v4622_v25  ;;  %6308 = vmatprep.subr.mxu0 %v6600_v0 }
0x367f   :  { %6309 = vmatpush3.msra.mxu0 %v7543_v28  ;;  %6314 = vmatpush3.msra.mxu1 %v7559_v35 }
0x3680   :  { %6315 = vmatprep.subr.mxu1 %v6600_v0  ;;  %6317 = vmatprep.mubr.msk.f32.mxu1 %vm6601_vm2, %v6600_v0 }
0x3681   :  { %6316 = vmatpush3.msra.mxu1 %v7563_v36  ;;  %6320 = vmatprep.subr.mxu0 %v6600_v0 }
0x3682   :  { %6327 = vmatprep.subr.mxu1 %v6600_v0 }
0x373c   :  { %v4615_v50 = vpop.f32.mrf.mxu0 }
0x373d   :  { %v4619_v34 = vadd.f32 %v4615_v50, %v3691_v11 }
0x373e   :  { %v6298_v26 = vpop.f32.mrf.mxu0  ;;  %v4691_v22 = vpop.f32.mrf.mxu1 }
0x373f   :  { %v4696_v24 = vrot.slane %v4691_v22, 4 }
0x3740   :  { %v6305_v23 = vpop.f32.mrf.mxu1 }
0x3741   :  { %v4698_v29 = vadd.f32 %v4696_v24, %v7594_v17 }
0x3743   :  { %v4699_v27 = vsel %vm502_vm3, %v4619_v34, %v4698_v29 }
0x3744   :  { %6520 = vtanh.f32 %v4699_v27  ;;  %v5546_v12 = vmul.f32 -1.442695, %v4699_v27 }
0x3746   :  { %6522 = vpow2.f32 %v5546_v12 }
0x3751   :  { %v6521_v47 = vpop.eup %6520 }
0x3752   :  { %4709 = vrot.lane.b32.xlu1 %v6521_v47, %s6605_s15 }
0x3753   :  { %v6523_v32 = vpop.eup %6522 }
0x3754   :  { %v4703_v40 = vadd.f32 1.0, %v6523_v32 }
0x3756   :  { %6524 = vrcp.f32 %v4703_v40 }
0x3763   :  { %v6525_v7 = vpop.eup %6524 }
0x3764   :  { %v4707_v3 = vmul.f32 %v6525_v7, %v4537_v6 }
0x37c4   :  { %v4710_v45 = vpop.permute.xlu1 %4709 }
0x37c5   :  { %v4712_v9 = vmul.f32 %v6525_v7, %v4710_v45 }
0x37c7   :  { %4714 = vrot.lane.b32.xlu0 %v4712_v9, %s6604_s8 }
0x3839   :  { %v4715_v20 = vpop.permute.xlu0 %4714 }
0x383a   :  { %v4717_v49 = vadd.f32 %v4715_v20, %v4707_v3 }
0x383c   :  { %6526 = vtanh.f32 %v4717_v49 }
0x3849   :  { %v6527_v21 = vpop.eup %6526 }
0x384a   :  { %4720 = vrot.lane.b32.xlu1 %v6527_v21, %s6604_s8 }
0x38bc   :  { %v4721_v55 = vpop.permute.xlu1 %4720 }
0x38bd   :  { %v7717_v60 = vmul.f32 %v6525_v7, %v4721_v55 }
0x38bf   :  { %4725 = vrot.lane.b32.xlu0 %v7717_v60, %s6606_s10  ;;  %v4803_v61 = vrot.slane %v7717_v60, 4 }
0x38c1   :  { %4804 = vrot.lane.b32.xlu1 %v4803_v61, %s6606_s10  ;;  %v3696_v61 = vadd.f32 %v7602_v59, %v7607_v62 }
0x3931   :  { %v4726_v58 = vpop.permute.xlu0 %4725 }
0x3932   :  { %6311 = vmatmul.mubr.msk.f32.vlgmr.msra.gmra.mxu0 %vm113_vm0, %v4726_v58 }
0x3933   :  { %v4805_v39 = vpop.permute.xlu1 %4804  ;;  %6321 = vmatpush3.msra.mxu0 %v7535_v10  ;;  %6324 = vmatprep.mubr.msk.f32.mxu0 %vm6601_vm2, %v6600_v0 }
0x3934   :  { %6318 = vmatmul.mubr.msk.f32.vlgmr.msra.gmra.mxu1 %vm113_vm0, %v4805_v39  ;;  %6322 = vmatprep.subr.mxu0 %v6600_v0 }
0x3935   :  { %6323 = vmatpush3.msra.mxu0 %v7543_v28  ;;  %6328 = vmatpush3.msra.mxu1 %v7559_v35 }
0x3936   :  { %6329 = vmatprep.subr.mxu1 %v6600_v0  ;;  %6331 = vmatprep.mubr.msk.f32.mxu1 %vm6601_vm2, %v6600_v0 }
0x3937   :  { %6330 = vmatpush3.msra.mxu1 %v7563_v36  ;;  %6334 = vmatprep.subr.mxu0 %v6600_v0 }
0x3938   :  { %6341 = vmatprep.subr.mxu1 %v6600_v0 }
0x39f2   :  { %v4795_v6 = vpop.f32.mrf.mxu0 }
0x39f3   :  { %v4800_v63 = vrot.slane %v4795_v6, 4 }
0x39f4   :  { %v6312_v18 = vpop.f32.mrf.mxu0  ;;  %v4874_v48 = vpop.f32.mrf.mxu1 }
0x39f5   :  { %v4802_v43 = vadd.f32 %v4800_v63, %v3691_v11  ;;  %v4878_v25 = vadd.f32 %v4874_v48, %v7594_v17 }
0x39f6   :  { %v6319_v50 = vpop.f32.mrf.mxu1 }
0x39f7   :  { %v4880_v26 = vrot.slane %v4802_v43, 4  ;;  %v4883_v22 = vrot.slane %v4878_v25, 4 }
0x39f9   :  { %v4885_v24 = vsel %vm502_vm3, %v4880_v26, %v4883_v22 }
0x39fa   :  { %6528 = vtanh.f32 %v4885_v24  ;;  %v5549_v34 = vmul.f32 -1.442695, %v4885_v24 }
0x39fc   :  { %6530 = vpow2.f32 %v5549_v34 }
0x3a07   :  { %v6529_v23 = vpop.eup %6528 }
0x3a08   :  { %4895 = vrot.lane.b32.xlu0 %v6529_v23, %s6605_s15 }
0x3a09   :  { %v6531_v29 = vpop.eup %6530 }
0x3a0a   :  { %v4889_v27 = vadd.f32 1.0, %v6531_v29 }
0x3a0c   :  { %6532 = vrcp.f32 %v4889_v27 }
0x3a19   :  { %v6533_v47 = vpop.eup %6532 }
0x3a1a   :  { %v4893_v17 = vmul.f32 %v6533_v47, %v4717_v49 }
0x3a7a   :  { %v4896_v12 = vpop.permute.xlu0 %4895 }
0x3a7b   :  { %v4898_v32 = vmul.f32 %v6533_v47, %v4896_v12 }
0x3a7d   :  { %4900 = vrot.lane.b32.xlu1 %v4898_v32, %s6604_s8 }
0x3aef   :  { %v4901_v11 = vpop.permute.xlu1 %4900 }
0x3af0   :  { %v4903_v40 = vadd.f32 %v4901_v11, %v4893_v17 }
0x3af2   :  { %6534 = vtanh.f32 %v4903_v40 }
0x3aff   :  { %v6535_v7 = vpop.eup %6534 }
0x3b00   :  { %4906 = vrot.lane.b32.xlu0 %v6535_v7, %s6604_s8 }
0x3b72   :  { %v4907_v45 = vpop.permute.xlu0 %4906 }
0x3b73   :  { %v4909_v9 = vmul.f32 %v6533_v47, %v4907_v45 }
0x3b75   :  { %v7742_v3 = vrot.slane %v4909_v9, 4  ;;  %4911 = vrot.lane.b32.xlu0 %v4909_v9, %s6606_s10 }
0x3b77   :  { %4987 = vrot.lane.b32.xlu1 %v7742_v3, %s6606_s10 }
0x3be7   :  { %v4912_v20 = vpop.permute.xlu0 %4911 }
0x3be8   :  { %6325 = vmatmul.mubr.msk.f32.vlgmr.msra.gmra.mxu0 %vm113_vm0, %v4912_v20 }
0x3be9   :  { %v4988_v21 = vpop.permute.xlu1 %4987  ;;  %6335 = vmatpush3.msra.mxu0 %v7535_v10  ;;  %6338 = vmatprep.mubr.msk.f32.mxu0 %vm6601_vm2, %v6600_v0 }
0x3bea   :  { %6332 = vmatmul.mubr.msk.f32.vlgmr.msra.gmra.mxu1 %vm113_vm0, %v4988_v21  ;;  %6336 = vmatprep.subr.mxu0 %v6600_v0 }
0x3beb   :  { %6337 = vmatpush3.msra.mxu0 %v7543_v28  ;;  %6342 = vmatpush3.msra.mxu1 %v7559_v35 }
0x3bec   :  { %6343 = vmatprep.subr.mxu1 %v6600_v0  ;;  %6345 = vmatprep.mubr.msk.f32.mxu1 %vm6601_vm2, %v6600_v0 }
0x3bed   :  { %6344 = vmatpush3.msra.mxu1 %v7563_v36 }
0x3ca8   :  { %v4981_v49 = vpop.f32.mrf.mxu0 }
0x3ca9   :  { %v4985_v6 = vadd.f32 %v4981_v49, %v3696_v61 }
0x3caa   :  { %v6326_v10 = vpop.f32.mrf.mxu0  ;;  %v5057_v55 = vpop.f32.mrf.mxu1 }
0x3cab   :  { %v5062_v58 = vrot.slane %v5057_v55, 4 }
0x3cac   :  { %v6333_v39 = vpop.f32.mrf.mxu1 }
0x3cad   :  { %v5064_v28 = vadd.f32 %v5062_v58, %v7598_v2 }
0x3caf   :  { %v5065_v35 = vsel %vm502_vm3, %v4985_v6, %v5064_v28 }
0x3cb0   :  { %6536 = vtanh.f32 %v5065_v35  ;;  %v5552_v0 = vmul.f32 -1.442695, %v5065_v35 }
0x3cb2   :  { %6538 = vpow2.f32 %v5552_v0 }
0x3cbd   :  { %v6537_v63 = vpop.eup %6536 }
0x3cbe   :  { %5075 = vrot.lane.b32.xlu1 %v6537_v63, %s6605_s15 }
0x3cbf   :  { %v6539_v36 = vpop.eup %6538 }
0x3cc0   :  { %v5069_v18 = vadd.f32 1.0, %v6539_v36 }
0x3cc2   :  { %6540 = vrcp.f32 %v5069_v18 }
0x3ccf   :  { %v6541_v48 = vpop.eup %6540 }
0x3cd0   :  { %v5073_v59 = vmul.f32 %v6541_v48, %v4903_v40 }
0x3d30   :  { %v5076_v43 = vpop.permute.xlu1 %5075 }
0x3d31   :  { %v5078_v25 = vmul.f32 %v6541_v48, %v5076_v43 }
0x3d33   :  { %5080 = vrot.lane.b32.xlu0 %v5078_v25, %s6604_s8 }
0x3da5   :  { %v5081_v62 = vpop.permute.xlu0 %5080 }
0x3da6   :  { %v5083_v50 = vadd.f32 %v5081_v62, %v5073_v59 }
0x3da8   :  { %6542 = vtanh.f32 %v5083_v50 }
0x3db5   :  { %v6543_v26 = vpop.eup %6542 }
0x3db6   :  { %5086 = vrot.lane.b32.xlu1 %v6543_v26, %s6604_s8  ;;  %v5298_v26 = vsel %vm502_vm3, %v7640_v5, %v7616_v44 }
0x3e28   :  { %v5087_v22 = vpop.permute.xlu1 %5086 }
0x3e29   :  { %v7766_v24 = vmul.f32 %v6541_v48, %v5087_v22 }
0x3e2b   :  { %5091 = vrot.lane.b32.xlu0 %v7766_v24, %s6606_s10  ;;  %v5169_v23 = vrot.slane %v7766_v24, 4 }
0x3e2d   :  { %5170 = vrot.lane.b32.xlu1 %v5169_v23, %s6606_s10 }
0x3e9d   :  { %v5092_v34 = vpop.permute.xlu0 %5091 }
0x3e9e   :  { %6339 = vmatmul.mubr.msk.f32.vlgmr.msra.gmra.mxu0 %vm113_vm0, %v5092_v34 }
0x3e9f   :  { %v5171_v29 = vpop.permute.xlu1 %5170 }
0x3ea0   :  { %6346 = vmatmul.mubr.msk.f32.vlgmr.msra.gmra.mxu1 %vm113_vm0, %v5171_v29 }
0x3f5e   :  { %v5161_v27 = vpop.f32.mrf.mxu0 }
0x3f5f   :  { %v5166_v47 = vrot.slane %v5161_v27, 4 }
0x3f60   :  { %v6340_v12 = vpop.f32.mrf.mxu0  ;;  %v5240_v32 = vpop.f32.mrf.mxu1 }
0x3f61   :  { %v5168_v17 = vadd.f32 %v5166_v47, %v3696_v61  ;;  %v5244_v11 = vadd.f32 %v5240_v32, %v7598_v2  ;;  %v5291_v2 = vsel %vm502_vm3, %v7616_v44, %v7640_v5  ;;  %v5293_v61 = vsel %vm502_vm3, %v7717_v60, %v7742_v3 }
0x3f62   :  { %v6347_v40 = vpop.f32.mrf.mxu1 }
0x3f63   :  { %v5246_v7 = vrot.slane %v5168_v17, 4  ;;  %v5249_v45 = vrot.slane %v5244_v11, 4 }
0x3f65   :  { %v5251_v9 = vsel %vm502_vm3, %v5246_v7, %v5249_v45 }
0x3f66   :  { %6544 = vtanh.f32 %v5251_v9  ;;  %v5555_v21 = vmul.f32 -1.442695, %v5251_v9 }
0x3f68   :  { %6546 = vpow2.f32 %v5555_v21 }
0x3f73   :  { %v6545_v20 = vpop.eup %6544 }
0x3f74   :  { %5261 = vrot.lane.b32.xlu0 %v6545_v20, %s6605_s15 }
0x3f75   :  { %v6547_v49 = vpop.eup %6546 }
0x3f76   :  { %v5255_v10 = vadd.f32 1.0, %v6547_v49 }
0x3f78   :  { %6548 = vrcp.f32 %v5255_v10 }
0x3f85   :  { %v6549_v55 = vpop.eup %6548 }
0x3fe6   :  { %v5262_v58 = vpop.permute.xlu0 %5261 }
0x3fe7   :  { %v5264_v39 = vmul.f32 %v6549_v55, %v5262_v58 }
0x3fe9   :  { %5266 = vrot.lane.b32.xlu1 %v5264_v39, %s6604_s8 }
0x3fed   :  { %5303 = vrot.lane.b32.xlu1 %v7464_v1, %s6606_s10  ;;  %v5297_v1 = vsel %vm502_vm3, %v7691_v46, %v7666_v42 }
0x3ff1   :  { %5307 = vrot.lane.b32.xlu1 %v7553_v37, %s6606_s10 }
0x3ff5   :  { %5353 = vrot.lane.b32.xlu1 %v7525_v8, %s6606_s10  ;;  %v5259_v8 = vmul.f32 %v6549_v55, %v5083_v50 }
0x3ff9   :  { %5357 = vrot.lane.b32.xlu1 %v7541_v38, %s6606_s10 }
0x3ffd   :  { %5319 = vrot.lane.b32.xlu1 %v5291_v2, %s6602_s4 }
0x4001   :  { %5323 = vrot.lane.b32.xlu1 %v5293_v61, %s6602_s4 }
0x4005   :  { %5373 = vrot.lane.b32.xlu1 %v5297_v1, %s6602_s4 }
0x4009   :  { %1817 = vrot.lane.b32.xlu1 %v7098_v13, %s6603_s26 }
0x400d   :  { %3549 = vrot.lane.b32.xlu1 %v7520_v31, %s6603_s26 }
0x405b   :  { %v5267_v38 = vpop.permute.xlu1 %5266 }
0x405c   :  { %v5269_v37 = vadd.f32 %v5267_v38, %v5259_v8 }
0x405e   :  { %6550 = vtanh.f32 %v5269_v37 }
0x405f   :  { %v5304_v6 = vpop.permute.xlu1 %5303 }
0x4060   :  { %v5331_v13 = vsel %vm108_vm1, %v7058_v33, %v5304_v6 }
0x4063   :  { %v5308_v28 = vpop.permute.xlu1 %5307 }
0x4064   :  { %v5333_v48 = vsel %vm108_vm1, %v7191_v56, %v5308_v28 }
0x4067   :  { %v7802_v35 = vpop.permute.xlu1 %5353 }
0x4068   :  { %v5381_v7 = vsel %vm108_vm1, %v7150_v4, %v7802_v35 }
0x406b   :  { %v6551_v63 = vpop.eup %6550  ;;  %v5358_v0 = vpop.permute.xlu1 %5357 }
0x406c   :  { %5272 = vrot.lane.b32.xlu0 %v6551_v63, %s6604_s8 }
0x406f   :  { %v5320_v36 = vpop.permute.xlu1 %5319 }
0x4070   :  { %v5336_v31 = vsel %vm5335_vm4, %v5331_v13, %v5320_v36  ;;  %5305 = vrot.lane.b32.xlu0 %v7508_v16, %s6606_s10  ;;  %v5383_v16 = vsel %vm108_vm1, %v7167_v51, %v5358_v0  ;;  %v5292_v51 = vsel %vm502_vm3, %v7666_v42, %v7691_v46 }
0x4071   :  { %v5341_v18 = vsel %vm5340_vm5, %v5336_v31, 0.0 }
0x4072   :  { %5345 = vst [vmem:[%s7910_s11] sm:$0xff] %v5341_v18 }
0x4073   :  { %v5324_v43 = vpop.permute.xlu1 %5323 }
0x4074   :  { %v5338_v25 = vsel %vm5335_vm4, %v5333_v48, %v5324_v43  ;;  %5309 = vrot.lane.b32.xlu0 %v7529_v15, %s6606_s10 }
0x4075   :  { %v5343_v33 = vsel %vm5340_vm5, %v5338_v25, 0.0 }
0x4076   :  { %5347 = vst [vmem:[%s7910_s11 + $0x10] sm:$0xff] %v5343_v33 }
0x4077   :  { %v5374_v59 = vpop.permute.xlu1 %5373 }
0x4078   :  { %v5387_v62 = vsel %vm5335_vm4, %v5383_v16, %v5374_v59  ;;  %5355 = vrot.lane.b32.xlu0 %v7498_v52, %s6606_s10  ;;  %v5296_v52 = vsel %vm502_vm3, %v7742_v3, %v7717_v60 }
0x4079   :  { %v5391_v56 = vsel %vm5340_vm5, %v5387_v62, 0.0 }
0x407a   :  { %5395 = vst [vmem:[%s7911_s12 + $0x10] sm:$0xff] %v5391_v56 }
0x407b   :  { %v1818_v15 = vpop.permute.xlu1 %1817 }
0x407c   :  { %1820 = vst.msk [vmem:[#allocation2] sm:$0xff] %vm108_vm1, %v1818_v15  ;;  %5359 = vrot.lane.b32.xlu0 %v7516_v54, %s6606_s10 }
0x407f   :  { %v3550_v50 = vpop.permute.xlu1 %3549 }
0x4080   :  { %3552 = vst.msk [vmem:[#allocation4] sm:$0xff] %vm108_vm1, %v3550_v50  ;;  %5321 = vrot.lane.b32.xlu0 %v5292_v51, %s6602_s4 }
0x4084   :  { %5371 = vrot.lane.b32.xlu0 %v5296_v52, %s6602_s4 }
0x4088   :  { %5375 = vrot.lane.b32.xlu0 %v5298_v26, %s6602_s4 }
0x408c   :  { %1822 = vrot.lane.b32.xlu0 %v7052_v30, %s6606_s10 }
0x4090   :  { %3554 = vrot.lane.b32.xlu0 %v7468_v19, %s6606_s10 }
0x40de   :  { %v5273_v54 = vpop.permute.xlu0 %5272 }
0x40df   :  { %v5275_v42 = vmul.f32 %v6549_v55, %v5273_v54 }
0x40e1   :  { %v5289_v46 = vrot.slane %v5275_v42, 4 }
0x40e2   :  { %v5306_v22 = vpop.permute.xlu0 %5305 }
0x40e3   :  { %v5295_v60 = vsel %vm502_vm3, %v5289_v46, %v7766_v24  ;;  %v5294_v3 = vsel %vm502_vm3, %v7766_v24, %v5289_v46  ;;  %v5332_v5 = vsel %vm108_vm1, %v7114_v41, %v5306_v22 }
0x40e4   :  { %5369 = vrot.lane.b32.xlu1 %v5295_v60, %s6602_s4  ;;  %5325 = vrot.lane.b32.xlu0 %v5294_v3, %s6602_s4 }
0x40e6   :  { %v5310_v44 = vpop.permute.xlu0 %5309 }
0x40e8   :  { %5277 = vrot.lane.b32.xlu1 %v5275_v42, %s6606_s10  ;;  %5282 = vrot.lane.b32.xlu0 %v5269_v37, %s6607_s19 }
0x40ea   :  { %v5356_v30 = vpop.permute.xlu0 %5355 }
0x40eb   :  { %v5382_v24 = vsel %vm108_vm1, %v7101_v14, %v5356_v30 }
0x40ee   :  { %v5360_v19 = vpop.permute.xlu0 %5359 }
0x40ef   :  { %v5384_v41 = vsel %vm108_vm1, %v7175_v53, %v5360_v19  ;;  %v5334_v53 = vsel %vm108_vm1, %v7194_v57, %v5310_v44 }
0x40f2   :  { %v5322_v23 = vpop.permute.xlu0 %5321 }
0x40f3   :  { %v5337_v34 = vsel %vm5335_vm4, %v5332_v5, %v5322_v23 }
0x40f4   :  { %v5342_v29 = vsel %vm5340_vm5, %v5337_v34, 0.0 }
0x40f5   :  { %5346 = vst [vmem:[%s7910_s11 + $0x8] sm:$0xff] %v5342_v29 }
0x40f6   :  { %v5372_v27 = vpop.permute.xlu0 %5371 }
0x40f7   :  { %v5386_v47 = vsel %vm5335_vm4, %v5382_v24, %v5372_v27 }
0x40f8   :  { %v5390_v12 = vsel %vm5340_vm5, %v5386_v47, 0.0 }
0x40f9   :  { %5394 = vst [vmem:[%s7911_s12 + $0x8] sm:$0xff] %v5390_v12 }
0x40fa   :  { %v5376_v32 = vpop.permute.xlu0 %5375 }
0x40fb   :  { %v5388_v17 = vsel %vm5335_vm4, %v5384_v41, %v5376_v32 }
0x40fc   :  { %v5392_v11 = vsel %vm5340_vm5, %v5388_v17, 0.0 }
0x40fd   :  { %5396 = vst [vmem:[%s7911_s12 + $0x18] sm:$0xff] %v5392_v11 }
0x40fe   :  { %v1823_v14 = vpop.permute.xlu0 %1822 }
0x40ff   :  { %1825 = vst.msk [vmem:[#allocation3] sm:$0xff] %vm108_vm1, %v1823_v14 }
0x4102   :  { %v3555_v40 = vpop.permute.xlu0 %3554 }
0x4103   :  { %3557 = vst.msk [vmem:[#allocation5] sm:$0xff] %vm108_vm1, %v3555_v40 }
0x4156   :  { %v5370_v45 = vpop.permute.xlu1 %5369  ;;  %v5326_v9 = vpop.permute.xlu0 %5325 }
0x4157   :  { %v5385_v20 = vsel %vm5335_vm4, %v5381_v7, %v5370_v45  ;;  %v5339_v21 = vsel %vm5335_vm4, %v5334_v53, %v5326_v9 }
0x4158   :  { %v5389_v49 = vsel %vm5340_vm5, %v5385_v20, 0.0  ;;  %v5344_v10 = vsel %vm5340_vm5, %v5339_v21, 0.0 }
0x4159   :  { %5393 = vst [vmem:[%s7911_s12] sm:$0xff] %v5389_v49  ;;  %5348 = vst [vmem:[%s7910_s11 + $0x18] sm:$0xff] %v5344_v10 }
0x415a   :  { %v5278_v4 = vpop.permute.xlu1 %5277  ;;  %v5283_v57 = vpop.permute.xlu0 %5282 }
0x415b   :  { %5280 = vst.msk [vmem:[#allocation6] sm:$0xff] %vm113_vm0, %v5278_v4  ;;  %5285 = vst.msk [vmem:[#allocation7] sm:$0xff] %vm113_vm0, %v5283_v57 }
0x415c   :  { %5419 = vsyncpa [#allocation9], 1 }
0x415d   :  { %5420 = vsyncpa [#allocation11], 1 }

</bundles_post_ra>
